<compile_context>
chip_gen: v6e
topology: v6e:2x2x1
jax: 0.10.0
libtpu: 0.0.40
codegen_flags: <defaults>
</compile_context>

<pallas_src>
import jax
import jax.numpy as jnp
from jax.experimental import pallas as pl
from jax.experimental.pallas import tpu as pltpu


def _round_up(x, m):
    return (x + m - 1) // m * m


def make_tff_kernel(lomax, nc, M):
    """Fused TensorFeedForward kernel for a fixed lomax (all degrees in one body)."""
    L1 = lomax + 1

    def kernel(*refs):
        i = 0
        x_refs = refs[i:i + L1]; i += L1          # (tile, c_in*M_l)   input dtype
        w1_refs = refs[i:i + L1]; i += L1         # (c_in*M_l, M_l*nc) compute dtype
        a_ref = refs[i]; i += 1                   # (L1, nc, L1*nc)    f32 gate weights
        b_ref = refs[i]; i += 1                   # (1, L1*nc)         f32 gate bias
        sum_refs = refs[i:i + L1 - 1]; i += L1 - 1   # (M_l*nc, nc)   0/1, f32
        bc_refs = refs[i:i + L1 - 1]; i += L1 - 1    # (nc, M_l*nc)   0/1, f32
        w2_refs = refs[i:i + L1]; i += L1         # (M_l*nc, nc*M_l)   compute dtype
        o_refs = refs[i:i + L1]                   # (tile, nc*M_l)     out dtype

        cdt = w1_refs[0].dtype                    # MXU operand dtype (f32 or bf16)

        # ---- mix1: one lane-dense MXU dot per degree, f32 accumulation -------------
        t1 = []                                    # t1[l]: (tile, M_l*nc) f32, m-major
        for l in range(L1):
            x = x_refs[l][...].astype(cdt)         # in-kernel cast (VPU, free vs. HBM)
            t1.append(jnp.dot(x, w1_refs[l][...], preferred_element_type=jnp.float32))

        # ---- gate feed: [t1_0, ||t1_1||^2, ...], all f32 ----------------------------
        # squared norms over components via a 0/1 selection matrix on the MXU (no
        # lane-strided reductions / relayouts).
        feats = [t1[0]]
        for l in range(1, L1):
            feats.append(jnp.dot(t1[l] * t1[l], sum_refs[l - 1][...],
                                 preferred_element_type=jnp.float32))

        # ---- fused gate logits Z: (tile, L1*nc), f32 throughout ---------------------
        z = jnp.dot(feats[0], a_ref[0], preferred_element_type=jnp.float32)
        for j in range(1, L1):
            z = z + jnp.dot(feats[j], a_ref[j], preferred_element_type=jnp.float32)
        z = z + b_ref[...]
        sig = jax.nn.sigmoid(z)                    # one EUP stream for all gates

        # ---- l = 0: SiLU gate, then mix2 --------------------------------------------
        y0 = (z[:, :nc] * sig[:, :nc]).astype(cdt)
        o0 = jnp.dot(y0, w2_refs[0][...], preferred_element_type=jnp.float32)
        o_refs[0][...] = o0.astype(o_refs[0].dtype)

        # ---- l >= 1: broadcast gate over components (MXU), scale, mix2 --------------
        # mix2's Kronecker weight also reorders (m, o) -> (o, m) so the store is already
        # in the consumer layout (N, nc, 3,..,3).
        for l in range(1, L1):
            g = sig[:, l * nc:(l + 1) * nc]                         # (tile, nc) f32
            gb = jnp.dot(g, bc_refs[l - 1][...], preferred_element_type=jnp.float32)
            y = (t1[l] * gb).astype(cdt)                            # (tile, M_l*nc)
            o = jnp.dot(y, w2_refs[l][...], preferred_element_type=jnp.float32)
            o_refs[l][...] = o.astype(o_refs[l].dtype)

    return kernel


def tensor_feed_forward(inputs, params, *, lomax, nc, tile_n=1024,
                        compute_dtype=jnp.float32, out_dtype=jnp.float32):
    """Pallas wrapper.  inputs[l] is (N, C) for l=0 and (N, C, 3, ..., 3) for l>=1."""
    L1 = lomax + 1
    M = [3 ** l for l in range(L1)]
    N = inputs[0].shape[0]
    c_in = inputs[0].shape[1]

    # Zero-copy flat views in PyTorch-native (c-major, m-minor) ordering: (N, c_in*M_l).
    x_flat = [inputs[l].reshape(N, c_in * M[l]) for l in range(L1)]

    # Tile selection (N axis).  No host padding on the fast path.
    if tile_n >= N:
        tile, npad = N, N
    else:
        tile = max(8, (tile_n // 8) * 8)
        npad = _round_up(N, tile)
        if npad != N:
            # TODO(synk): producers should supply N % tile == 0 so this extra HBM pass
            # (and the garbage-in-padded-rows caveat) never triggers.
            x_flat = [jnp.pad(x, ((0, npad - N), (0, 0))) for x in x_flat]
    grid = (npad // tile,)

    # ---- host-side weight prep (tiny, done once; all weights stay VMEM-resident) ----
    cdt = compute_dtype
    w1_big, w2_big = [], []
    for l in range(L1):
        w1T = params["w1"][l].T.astype(jnp.float32)          # (c_in, nc)
        w2T = params["w2"][l].T.astype(jnp.float32)          # (nc, nc)
        if l == 0:
            w1_big.append(w1T.astype(cdt))
            w2_big.append(w2T.astype(cdt))
        else:
            eye = jnp.eye(M[l], dtype=jnp.float32)
            # W1[(c,m),(m',o)] = w1T[c,o] * delta(m,m')  -> input (c,m), output (m,o)
            W1 = jnp.einsum("co,mp->cmpo", w1T, eye).reshape(c_in * M[l], M[l] * nc)
            # W2[(m,o),(o',m')] = w2T[o,o'] * delta(m,m') -> input (m,o), output (o,m)
            W2 = jnp.einsum("oq,mp->moqp", w2T, eye).reshape(M[l] * nc, nc * M[l])
            w1_big.append(W1.astype(cdt))
            w2_big.append(W2.astype(cdt))

    # Gate weights, fused along the output-lane axis; kept f32 (precision of ||t||^2).
    a_cat = jnp.concatenate([params["a"][l].T for l in range(L1)], axis=1).astype(jnp.float32)
    a_slices = jnp.stack([a_cat[j * nc:(j + 1) * nc, :] for j in range(L1)])  # (L1, nc, L1*nc)
    b_cat = jnp.concatenate([params["b"][l] for l in range(L1)]).reshape(1, L1 * nc).astype(jnp.float32)

    # 0/1 selection matrices: component-norm reduction and gate broadcast (MXU tricks).
    sum_mats = [jnp.tile(jnp.eye(nc, dtype=jnp.float32), (M[l], 1)) for l in range(1, L1)]
    bcast_mats = [jnp.tile(jnp.eye(nc, dtype=jnp.float32), (1, M[l])) for l in range(1, L1)]

    args = x_flat + w1_big + [a_slices, b_cat] + sum_mats + bcast_mats + w2_big

    # ---- BlockSpecs: activations/outputs streamed over N, everything else resident ---
    x_specs = [pl.BlockSpec((tile, c_in * M[l]), lambda i: (i, 0)) for l in range(L1)]
    w1_specs = [pl.BlockSpec(w1_big[l].shape, lambda i: (0, 0)) for l in range(L1)]
    a_spec = pl.BlockSpec(a_slices.shape, lambda i: (0, 0, 0))
    b_spec = pl.BlockSpec(b_cat.shape, lambda i: (0, 0))
    sum_specs = [pl.BlockSpec(m.shape, lambda i: (0, 0)) for m in sum_mats]
    bc_specs = [pl.BlockSpec(m.shape, lambda i: (0, 0)) for m in bcast_mats]
    w2_specs = [pl.BlockSpec(w2_big[l].shape, lambda i: (0, 0)) for l in range(L1)]
    out_specs = tuple(pl.BlockSpec((tile, nc * M[l]), lambda i: (i, 0)) for l in range(L1))
    out_shape = tuple(jax.ShapeDtypeStruct((npad, nc * M[l]), out_dtype) for l in range(L1))

    # Per-generation VMEM limit: generous on v5e/v6e (128 MiB physical), capped on v7x (64 MiB).
    try:
        cap = int(pltpu.get_tpu_info().vmem_capacity_bytes)
    except Exception:  # pragma: no cover - conservative fallback
        cap = 64 * 1024 * 1024
    vmem_limit = max(32 * 1024 * 1024, min(cap - 16 * 1024 * 1024, 100 * 1024 * 1024))

    outs = pl.pallas_call(
        make_tff_kernel(lomax, nc, M),
        grid=grid,
        in_specs=x_specs + w1_specs + [a_spec, b_spec] + sum_specs + bc_specs + w2_specs,
        out_specs=out_specs,
        out_shape=out_shape,
        compiler_params=pltpu.CompilerParams(
            dimension_semantics=("parallel",),
            vmem_limit_bytes=vmem_limit,
        ),
    )(*args)

    # Zero-copy back to the PyTorch layout (N, nc, 3, ..., 3).
    result = {}
    for l in range(L1):
        o = outs[l][:N] if npad != N else outs[l]
        result[l] = o.reshape((N, nc) + (3,) * l)
    return result


def init_params(key, lomax, nc, c_in):
    """Deterministic synthetic parameters (PyTorch (out, in) convention)."""
    L1 = lomax + 1
    feed_dim = nc * L1
    k1, k2, k3, k4 = jax.random.split(key, 4)
    return {
        "w1": [0.1 * jax.random.normal(jax.random.fold_in(k1, l), (nc, c_in), jnp.float32)
               for l in range(L1)],
        "a": [0.1 * jax.random.normal(jax.random.fold_in(k2, l), (nc, feed_dim), jnp.float32)
              for l in range(L1)],
        "b": [0.1 * jax.random.normal(jax.random.fold_in(k3, l), (nc,), jnp.float32)
              for l in range(L1)],
        "w2": [0.1 * jax.random.normal(jax.random.fold_in(k4, l), (nc, nc), jnp.float32)
               for l in range(L1)],
    }


def ref_forward(inputs, params, lomax):
    """Pure-JAX reference mirroring the PyTorch module exactly (f32)."""
    L1 = lomax + 1
    # mix1
    t1 = {l: jnp.einsum("oc,nc...->no...", params["w1"][l], inputs[l]) for l in range(L1)}
    # gate feed
    feats = [t1[0]]
    for l in range(1, L1):
        t = t1[l].reshape(t1[l].shape[0], t1[l].shape[1], -1)
        feats.append(jnp.sum(t * t, axis=2))
    feed = jnp.concatenate(feats, axis=1)
    # gate
    y = {0: jax.nn.silu(feed @ params["a"][0].T + params["b"][0])}
    for l in range(1, L1):
        g = jax.nn.sigmoid(feed @ params["a"][l].T + params["b"][l])
        y[l] = t1[l] * g.reshape(g.shape + (1,) * l)
    # mix2
    return {l: jnp.einsum("oc,nc...->no...", params["w2"][l], y[l]) for l in range(L1)}


if __name__ == "__main__":
    lomax, N, c_in, nc = 2, 512, 16, 32

    key = jax.random.PRNGKey(0)
    kp, kx = jax.random.split(key)
    params = init_params(kp, lomax, nc, c_in)

    inputs = {}
    for l in range(lomax + 1):
        shape = (N, c_in) + (3,) * l
        inputs[l] = jax.random.normal(jax.random.fold_in(kx, l), shape, jnp.float32)

    ref = ref_forward(inputs, params, lomax)

    # f32 MXU operands, tile_n=256 -> grid of 2 tiles: near-exact match with the reference.
    out = tensor_feed_forward(inputs, params, lomax=lomax, nc=nc, tile_n=256,
                              compute_dtype=jnp.float32, out_dtype=jnp.float32)
    out = jax.block_until_ready(out)
    for l in range(lomax + 1):
        assert out[l].shape == ref[l].shape, (out[l].shape, ref[l].shape)
        err = float(jnp.max(jnp.abs(out[l] - ref[l])))
        assert err < 5e-4, (l, err)

    # bf16 MXU operands + bf16 output stream (f32 accumulation, f32 gate math): looser tol.
    out_bf16 = tensor_feed_forward(inputs, params, lomax=lomax, nc=nc,
                                   compute_dtype=jnp.bfloat16, out_dtype=jnp.bfloat16)
    out_bf16 = jax.block_until_ready(out_bf16)
    for l in range(lomax + 1):
        err = float(jnp.max(jnp.abs(out_bf16[l].astype(jnp.float32) - ref[l])))
        scale = float(jnp.max(jnp.abs(ref[l]))) + 1.0
        assert err < 5e-2 * scale, (l, err, scale)

    print("KERNEL_OK")
</pallas_src>

<mosaic_0001>
module attributes {stable_mosaic.version = 11 : i64} {
  func.func @kernel(%arg0: i32, %arg1: memref<256x16xf32, #tpu.memory_space<vmem>>, %arg2: memref<256x48xf32, #tpu.memory_space<vmem>>, %arg3: memref<256x144xf32, #tpu.memory_space<vmem>>, %arg4: memref<16x32xf32, #tpu.memory_space<vmem>>, %arg5: memref<48x96xf32, #tpu.memory_space<vmem>>, %arg6: memref<144x288xf32, #tpu.memory_space<vmem>>, %arg7: memref<3x32x96xf32, #tpu.memory_space<vmem>>, %arg8: memref<1x96xf32, #tpu.memory_space<vmem>>, %arg9: memref<96x32xf32, #tpu.memory_space<vmem>>, %arg10: memref<288x32xf32, #tpu.memory_space<vmem>>, %arg11: memref<32x96xf32, #tpu.memory_space<vmem>>, %arg12: memref<32x288xf32, #tpu.memory_space<vmem>>, %arg13: memref<32x32xf32, #tpu.memory_space<vmem>>, %arg14: memref<96x96xf32, #tpu.memory_space<vmem>>, %arg15: memref<288x288xf32, #tpu.memory_space<vmem>>, %arg16: memref<256x32xf32, #tpu.memory_space<vmem>>, %arg17: memref<256x96xf32, #tpu.memory_space<vmem>>, %arg18: memref<256x288xf32, #tpu.memory_space<vmem>>) attributes {dimension_semantics = [#tpu.dimension_semantics<parallel>], iteration_bounds = array<i64: 2>, scalar_prefetch = 0 : i64, scratch_operands = 0 : i64, tpu.core_type = #tpu.core_type<tc>, window_params = [{transform_indices = @transform_0, window_bounds = array<i64: 256, 16>}, {transform_indices = @transform_1, window_bounds = array<i64: 256, 48>}, {transform_indices = @transform_2, window_bounds = array<i64: 256, 144>}, {pipeline_mode = #tpu.pipeline_mode<synchronous>, transform_indices = @transform_3, window_bounds = array<i64: 16, 32>}, {pipeline_mode = #tpu.pipeline_mode<synchronous>, transform_indices = @transform_4, window_bounds = array<i64: 48, 96>}, {pipeline_mode = #tpu.pipeline_mode<synchronous>, transform_indices = @transform_5, window_bounds = array<i64: 144, 288>}, {pipeline_mode = #tpu.pipeline_mode<synchronous>, transform_indices = @transform_6, window_bounds = array<i64: 3, 32, 96>}, {pipeline_mode = #tpu.pipeline_mode<synchronous>, transform_indices = @transform_7, window_bounds = array<i64: 1, 96>}, {pipeline_mode = #tpu.pipeline_mode<synchronous>, transform_indices = @transform_8, window_bounds = array<i64: 96, 32>}, {pipeline_mode = #tpu.pipeline_mode<synchronous>, transform_indices = @transform_9, window_bounds = array<i64: 288, 32>}, {pipeline_mode = #tpu.pipeline_mode<synchronous>, transform_indices = @transform_10, window_bounds = array<i64: 32, 96>}, {pipeline_mode = #tpu.pipeline_mode<synchronous>, transform_indices = @transform_11, window_bounds = array<i64: 32, 288>}, {pipeline_mode = #tpu.pipeline_mode<synchronous>, transform_indices = @transform_12, window_bounds = array<i64: 32, 32>}, {pipeline_mode = #tpu.pipeline_mode<synchronous>, transform_indices = @transform_13, window_bounds = array<i64: 96, 96>}, {pipeline_mode = #tpu.pipeline_mode<synchronous>, transform_indices = @transform_14, window_bounds = array<i64: 288, 288>}, {transform_indices = @transform_15, window_bounds = array<i64: 256, 32>}, {transform_indices = @transform_16, window_bounds = array<i64: 256, 96>}, {transform_indices = @transform_17, window_bounds = array<i64: 256, 288>}]} {
    %c0 = arith.constant 0 : index
    %c0_0 = arith.constant 0 : index
    %0 = vector.load %arg1[%c0, %c0_0] : memref<256x16xf32, #tpu.memory_space<vmem>>, vector<256x16xf32>
    %c0_1 = arith.constant 0 : index
    %c0_2 = arith.constant 0 : index
    %1 = vector.load %arg4[%c0_1, %c0_2] : memref<16x32xf32, #tpu.memory_space<vmem>>, vector<16x32xf32>
    %cst = arith.constant dense<0.000000e+00> : vector<256x32xf32>
    %2 = tpu.matmul %0, %1, %cst {dimension_numbers = #tpu.dot_dimension_numbers<[1], [0], [0], [1], [0, 0, 1, 1], [], []>} : vector<256x16xf32>, vector<16x32xf32>, vector<256x32xf32> -> vector<256x32xf32>
    %c0_3 = arith.constant 0 : index
    %c0_4 = arith.constant 0 : index
    %3 = vector.load %arg2[%c0_3, %c0_4] : memref<256x48xf32, #tpu.memory_space<vmem>>, vector<256x48xf32>
    %c0_5 = arith.constant 0 : index
    %c0_6 = arith.constant 0 : index
    %4 = vector.load %arg5[%c0_5, %c0_6] : memref<48x96xf32, #tpu.memory_space<vmem>>, vector<48x96xf32>
    %cst_7 = arith.constant dense<0.000000e+00> : vector<256x96xf32>
    %5 = tpu.matmul %3, %4, %cst_7 {dimension_numbers = #tpu.dot_dimension_numbers<[1], [0], [0], [1], [0, 0, 1, 1], [], []>} : vector<256x48xf32>, vector<48x96xf32>, vector<256x96xf32> -> vector<256x96xf32>
    %c0_8 = arith.constant 0 : index
    %c0_9 = arith.constant 0 : index
    %6 = vector.load %arg3[%c0_8, %c0_9] : memref<256x144xf32, #tpu.memory_space<vmem>>, vector<256x144xf32>
    %c0_10 = arith.constant 0 : index
    %c0_11 = arith.constant 0 : index
    %7 = vector.load %arg6[%c0_10, %c0_11] : memref<144x288xf32, #tpu.memory_space<vmem>>, vector<144x288xf32>
    %cst_12 = arith.constant dense<0.000000e+00> : vector<256x288xf32>
    %8 = tpu.matmul %6, %7, %cst_12 {dimension_numbers = #tpu.dot_dimension_numbers<[1], [0], [0], [1], [0, 0, 1, 1], [], []>} : vector<256x144xf32>, vector<144x288xf32>, vector<256x288xf32> -> vector<256x288xf32>
    %9 = arith.mulf %5, %5 : vector<256x96xf32>
    %c0_13 = arith.constant 0 : index
    %c0_14 = arith.constant 0 : index
    %10 = vector.load %arg9[%c0_13, %c0_14] : memref<96x32xf32, #tpu.memory_space<vmem>>, vector<96x32xf32>
    %cst_15 = arith.constant dense<0.000000e+00> : vector<256x32xf32>
    %11 = tpu.matmul %9, %10, %cst_15 {dimension_numbers = #tpu.dot_dimension_numbers<[1], [0], [0], [1], [0, 0, 1, 1], [], []>} : vector<256x96xf32>, vector<96x32xf32>, vector<256x32xf32> -> vector<256x32xf32>
    %12 = arith.mulf %8, %8 : vector<256x288xf32>
    %c0_16 = arith.constant 0 : index
    %c0_17 = arith.constant 0 : index
    %13 = vector.load %arg10[%c0_16, %c0_17] : memref<288x32xf32, #tpu.memory_space<vmem>>, vector<288x32xf32>
    %cst_18 = arith.constant dense<0.000000e+00> : vector<256x32xf32>
    %14 = tpu.matmul %12, %13, %cst_18 {dimension_numbers = #tpu.dot_dimension_numbers<[1], [0], [0], [1], [0, 0, 1, 1], [], []>} : vector<256x288xf32>, vector<288x32xf32>, vector<256x32xf32> -> vector<256x32xf32>
    %c0_19 = arith.constant 0 : index
    %c0_20 = arith.constant 0 : index
    %c0_21 = arith.constant 0 : index
    %15 = vector.load %arg7[%c0_19, %c0_20, %c0_21] : memref<3x32x96xf32, #tpu.memory_space<vmem>>, vector<1x32x96xf32>
    %16 = vector.shape_cast %15 : vector<1x32x96xf32> to vector<32x96xf32>
    %cst_22 = arith.constant dense<0.000000e+00> : vector<256x96xf32>
    %17 = tpu.matmul %2, %16, %cst_22 {dimension_numbers = #tpu.dot_dimension_numbers<[1], [0], [0], [1], [0, 0, 1, 1], [], []>} : vector<256x32xf32>, vector<32x96xf32>, vector<256x96xf32> -> vector<256x96xf32>
    %c1 = arith.constant 1 : index
    %c0_23 = arith.constant 0 : index
    %c0_24 = arith.constant 0 : index
    %18 = vector.load %arg7[%c1, %c0_23, %c0_24] : memref<3x32x96xf32, #tpu.memory_space<vmem>>, vector<1x32x96xf32>
    %19 = vector.shape_cast %18 : vector<1x32x96xf32> to vector<32x96xf32>
    %cst_25 = arith.constant dense<0.000000e+00> : vector<256x96xf32>
    %20 = tpu.matmul %11, %19, %cst_25 {dimension_numbers = #tpu.dot_dimension_numbers<[1], [0], [0], [1], [0, 0, 1, 1], [], []>} : vector<256x32xf32>, vector<32x96xf32>, vector<256x96xf32> -> vector<256x96xf32>
    %21 = arith.addf %17, %20 : vector<256x96xf32>
    %c2 = arith.constant 2 : index
    %c0_26 = arith.constant 0 : index
    %c0_27 = arith.constant 0 : index
    %22 = vector.load %arg7[%c2, %c0_26, %c0_27] : memref<3x32x96xf32, #tpu.memory_space<vmem>>, vector<1x32x96xf32>
    %23 = vector.shape_cast %22 : vector<1x32x96xf32> to vector<32x96xf32>
    %cst_28 = arith.constant dense<0.000000e+00> : vector<256x96xf32>
    %24 = tpu.matmul %14, %23, %cst_28 {dimension_numbers = #tpu.dot_dimension_numbers<[1], [0], [0], [1], [0, 0, 1, 1], [], []>} : vector<256x32xf32>, vector<32x96xf32>, vector<256x96xf32> -> vector<256x96xf32>
    %25 = arith.addf %21, %24 : vector<256x96xf32>
    %c0_29 = arith.constant 0 : index
    %c0_30 = arith.constant 0 : index
    %26 = vector.load %arg8[%c0_29, %c0_30] : memref<1x96xf32, #tpu.memory_space<vmem>>, vector<1x96xf32>
    %27 = vector.broadcast %26 : vector<1x96xf32> to vector<256x96xf32>
    %28 = arith.addf %25, %27 : vector<256x96xf32>
    %29 = arith.negf %28 : vector<256x96xf32>
    %30 = math.exp %29 : vector<256x96xf32>
    %cst_31 = arith.constant 1.000000e+00 : f32
    %31 = vector.broadcast %cst_31 : f32 to vector<256x96xf32>
    %32 = arith.addf %31, %30 : vector<256x96xf32>
    %33 = arith.divf %31, %32 : vector<256x96xf32>
    %34 = vector.extract_strided_slice %28 {offsets = [0, 0], sizes = [256, 32], strides = [1, 1]} : vector<256x96xf32> to vector<256x32xf32>
    %35 = vector.extract_strided_slice %33 {offsets = [0, 0], sizes = [256, 32], strides = [1, 1]} : vector<256x96xf32> to vector<256x32xf32>
    %36 = arith.mulf %34, %35 : vector<256x32xf32>
    %c0_32 = arith.constant 0 : index
    %c0_33 = arith.constant 0 : index
    %37 = vector.load %arg13[%c0_32, %c0_33] : memref<32x32xf32, #tpu.memory_space<vmem>>, vector<32x32xf32>
    %cst_34 = arith.constant dense<0.000000e+00> : vector<256x32xf32>
    %38 = tpu.matmul %36, %37, %cst_34 {dimension_numbers = #tpu.dot_dimension_numbers<[1], [0], [0], [1], [0, 0, 1, 1], [], []>} : vector<256x32xf32>, vector<32x32xf32>, vector<256x32xf32> -> vector<256x32xf32>
    %c0_35 = arith.constant 0 : index
    %c0_36 = arith.constant 0 : index
    %39 = vector.load %arg16[%c0_35, %c0_36] : memref<256x32xf32, #tpu.memory_space<vmem>>, vector<256x32xf32>
    tpu.vector_store %arg16[%c0_35, %c0_36], %38 {strides = array<i32>} : memref<256x32xf32, #tpu.memory_space<vmem>>, vector<256x32xf32>,
    %40 = vector.extract_strided_slice %33 {offsets = [0, 32], sizes = [256, 32], strides = [1, 1]} : vector<256x96xf32> to vector<256x32xf32>
    %c0_37 = arith.constant 0 : index
    %c0_38 = arith.constant 0 : index
    %41 = vector.load %arg11[%c0_37, %c0_38] : memref<32x96xf32, #tpu.memory_space<vmem>>, vector<32x96xf32>
    %cst_39 = arith.constant dense<0.000000e+00> : vector<256x96xf32>
    %42 = tpu.matmul %40, %41, %cst_39 {dimension_numbers = #tpu.dot_dimension_numbers<[1], [0], [0], [1], [0, 0, 1, 1], [], []>} : vector<256x32xf32>, vector<32x96xf32>, vector<256x96xf32> -> vector<256x96xf32>
    %43 = arith.mulf %5, %42 : vector<256x96xf32>
    %c0_40 = arith.constant 0 : index
    %c0_41 = arith.constant 0 : index
    %44 = vector.load %arg14[%c0_40, %c0_41] : memref<96x96xf32, #tpu.memory_space<vmem>>, vector<96x96xf32>
    %cst_42 = arith.constant dense<0.000000e+00> : vector<256x96xf32>
    %45 = tpu.matmul %43, %44, %cst_42 {dimension_numbers = #tpu.dot_dimension_numbers<[1], [0], [0], [1], [0, 0, 1, 1], [], []>} : vector<256x96xf32>, vector<96x96xf32>, vector<256x96xf32> -> vector<256x96xf32>
    %c0_43 = arith.constant 0 : index
    %c0_44 = arith.constant 0 : index
    %46 = vector.load %arg17[%c0_43, %c0_44] : memref<256x96xf32, #tpu.memory_space<vmem>>, vector<256x96xf32>
    tpu.vector_store %arg17[%c0_43, %c0_44], %45 {strides = array<i32>} : memref<256x96xf32, #tpu.memory_space<vmem>>, vector<256x96xf32>,
    %47 = vector.extract_strided_slice %33 {offsets = [0, 64], sizes = [256, 32], strides = [1, 1]} : vector<256x96xf32> to vector<256x32xf32>
    %c0_45 = arith.constant 0 : index
    %c0_46 = arith.constant 0 : index
    %48 = vector.load %arg12[%c0_45, %c0_46] : memref<32x288xf32, #tpu.memory_space<vmem>>, vector<32x288xf32>
    %cst_47 = arith.constant dense<0.000000e+00> : vector<256x288xf32>
    %49 = tpu.matmul %47, %48, %cst_47 {dimension_numbers = #tpu.dot_dimension_numbers<[1], [0], [0], [1], [0, 0, 1, 1], [], []>} : vector<256x32xf32>, vector<32x288xf32>, vector<256x288xf32> -> vector<256x288xf32>
    %50 = arith.mulf %8, %49 : vector<256x288xf32>
    %c0_48 = arith.constant 0 : index
    %c0_49 = arith.constant 0 : index
    %51 = vector.load %arg15[%c0_48, %c0_49] : memref<288x288xf32, #tpu.memory_space<vmem>>, vector<288x288xf32>
    %cst_50 = arith.constant dense<0.000000e+00> : vector<256x288xf32>
    %52 = tpu.matmul %50, %51, %cst_50 {dimension_numbers = #tpu.dot_dimension_numbers<[1], [0], [0], [1], [0, 0, 1, 1], [], []>} : vector<256x288xf32>, vector<288x288xf32>, vector<256x288xf32> -> vector<256x288xf32>
    %c0_51 = arith.constant 0 : index
    %c0_52 = arith.constant 0 : index
    %53 = vector.load %arg18[%c0_51, %c0_52] : memref<256x288xf32, #tpu.memory_space<vmem>>, vector<256x288xf32>
    tpu.vector_store %arg18[%c0_51, %c0_52], %52 {strides = array<i32>} : memref<256x288xf32, #tpu.memory_space<vmem>>, vector<256x288xf32>,
    return
  }
  func.func @transform_0(%arg0: i32) -> (i32, i32) {
    %c0_i32 = arith.constant 0 : i32
    %c0_i32_0 = arith.constant 0 : i32
    return %arg0, %c0_i32 : i32, i32
  }
  func.func @transform_1(%arg0: i32) -> (i32, i32) {
    %c0_i32 = arith.constant 0 : i32
    %c0_i32_0 = arith.constant 0 : i32
    return %arg0, %c0_i32 : i32, i32
  }
  func.func @transform_2(%arg0: i32) -> (i32, i32) {
    %c0_i32 = arith.constant 0 : i32
    %c0_i32_0 = arith.constant 0 : i32
    return %arg0, %c0_i32 : i32, i32
  }
  func.func @transform_3(%arg0: i32) -> (i32, i32) {
    %c0_i32 = arith.constant 0 : i32
    %c0_i32_0 = arith.constant 0 : i32
    %c0_i32_1 = arith.constant 0 : i32
    return %c0_i32, %c0_i32_0 : i32, i32
  }
  func.func @transform_4(%arg0: i32) -> (i32, i32) {
    %c0_i32 = arith.constant 0 : i32
    %c0_i32_0 = arith.constant 0 : i32
    %c0_i32_1 = arith.constant 0 : i32
    return %c0_i32, %c0_i32_0 : i32, i32
  }
  func.func @transform_5(%arg0: i32) -> (i32, i32) {
    %c0_i32 = arith.constant 0 : i32
    %c0_i32_0 = arith.constant 0 : i32
    %c0_i32_1 = arith.constant 0 : i32
    return %c0_i32, %c0_i32_0 : i32, i32
  }
  func.func @transform_6(%arg0: i32) -> (i32, i32, i32) {
    %c0_i32 = arith.constant 0 : i32
    %c0_i32_0 = arith.constant 0 : i32
    %c0_i32_1 = arith.constant 0 : i32
    %c0_i32_2 = arith.constant 0 : i32
    return %c0_i32, %c0_i32_0, %c0_i32_1 : i32, i32, i32
  }
  func.func @transform_7(%arg0: i32) -> (i32, i32) {
    %c0_i32 = arith.constant 0 : i32
    %c0_i32_0 = arith.constant 0 : i32
    %c0_i32_1 = arith.constant 0 : i32
    return %c0_i32, %c0_i32_0 : i32, i32
  }
  func.func @transform_8(%arg0: i32) -> (i32, i32) {
    %c0_i32 = arith.constant 0 : i32
    %c0_i32_0 = arith.constant 0 : i32
    %c0_i32_1 = arith.constant 0 : i32
    return %c0_i32, %c0_i32_0 : i32, i32
  }
  func.func @transform_9(%arg0: i32) -> (i32, i32) {
    %c0_i32 = arith.constant 0 : i32
    %c0_i32_0 = arith.constant 0 : i32
    %c0_i32_1 = arith.constant 0 : i32
    return %c0_i32, %c0_i32_0 : i32, i32
  }
  func.func @transform_10(%arg0: i32) -> (i32, i32) {
    %c0_i32 = arith.constant 0 : i32
    %c0_i32_0 = arith.constant 0 : i32
    %c0_i32_1 = arith.constant 0 : i32
    return %c0_i32, %c0_i32_0 : i32, i32
  }
  func.func @transform_11(%arg0: i32) -> (i32, i32) {
    %c0_i32 = arith.constant 0 : i32
    %c0_i32_0 = arith.constant 0 : i32
    %c0_i32_1 = arith.constant 0 : i32
    return %c0_i32, %c0_i32_0 : i32, i32
  }
  func.func @transform_12(%arg0: i32) -> (i32, i32) {
    %c0_i32 = arith.constant 0 : i32
    %c0_i32_0 = arith.constant 0 : i32
    %c0_i32_1 = arith.constant 0 : i32
    return %c0_i32, %c0_i32_0 : i32, i32
  }
  func.func @transform_13(%arg0: i32) -> (i32, i32) {
    %c0_i32 = arith.constant 0 : i32
    %c0_i32_0 = arith.constant 0 : i32
    %c0_i32_1 = arith.constant 0 : i32
    return %c0_i32, %c0_i32_0 : i32, i32
  }
  func.func @transform_14(%arg0: i32) -> (i32, i32) {
    %c0_i32 = arith.constant 0 : i32
    %c0_i32_0 = arith.constant 0 : i32
    %c0_i32_1 = arith.constant 0 : i32
    return %c0_i32, %c0_i32_0 : i32, i32
  }
  func.func @transform_15(%arg0: i32) -> (i32, i32) {
    %c0_i32 = arith.constant 0 : i32
    %c0_i32_0 = arith.constant 0 : i32
    return %arg0, %c0_i32 : i32, i32
  }
  func.func @transform_16(%arg0: i32) -> (i32, i32) {
    %c0_i32 = arith.constant 0 : i32
    %c0_i32_0 = arith.constant 0 : i32
    return %arg0, %c0_i32 : i32, i32
  }
  func.func @transform_17(%arg0: i32) -> (i32, i32) {
    %c0_i32 = arith.constant 0 : i32
    %c0_i32_0 = arith.constant 0 : i32
    return %arg0, %c0_i32 : i32, i32
  }
}

</mosaic_0001>

<bundles_post_ra>
// kernel: tpu_custom_call.1
= control target key start
LH: loop header
LB: loop body
LE: loop exit
PB: predicated region body
PF: predicated region fallthrough
CT: control target
= control target key end

     0   :  { %s9599_s24 = smov 0   ;;  %s13690_s0 = inlined_call_operand.vmem [shape: f32[512,16], index: 0, kind: input, shape index: {}]   ;;  %s13691_s1 = inlined_call_operand.vmem [shape: f32[512,48], index: 1, kind: input, shape index: {}]   ;;  %s13692_s2 = inlined_call_operand.vmem [shape: f32[512,144], index: 2, kind: input, shape index: {}]   ;;  %s13693_s3 = inlined_call_operand.vmem [shape: f32[16,32], index: 3, kind: input, shape index: {}]   ;;  %s13694_s4 = inlined_call_operand.vmem [shape: f32[48,96], index: 4, kind: input, shape index: {}]   ;;  %s13695_s5 = inlined_call_operand.vmem [shape: f32[144,288], index: 5, kind: input, shape index: {}]   ;;  %s13696_s6 = inlined_call_operand.vmem [shape: f32[3,32,96], index: 6, kind: input, shape index: {}]   ;;  %s13697_s7 = inlined_call_operand.vmem [shape: f32[1,96], index: 7, kind: input, shape index: {}]   ;;  %s13698_s8 = inlined_call_operand.vmem [shape: f32[96,32], index: 8, kind: input, shape index: {}]   ;;  %s13699_s9 = inlined_call_operand.vmem [shape: f32[288,32], index: 9, kind: input, shape index: {}]   ;;  %s13700_s10 = inlined_call_operand.vmem [shape: f32[32,96], index: 10, kind: input, shape index: {}]   ;;  %s13701_s11 = inlined_call_operand.vmem [shape: f32[32,288], index: 11, kind: input, shape index: {}]   ;;  %s13702_s12 = inlined_call_operand.vmem [shape: f32[32,32], index: 12, kind: input, shape index: {}]   ;;  %s13703_s13 = inlined_call_operand.vmem [shape: f32[96,96], index: 13, kind: input, shape index: {}]   ;;  %s13704_s14 = inlined_call_operand.vmem [shape: f32[288,288], index: 14, kind: input, shape index: {}]   ;;  %s13705_s15 = inlined_call_operand.vmem [shape: f32[512,32], index: 15, kind: output, shape index: {0}]   ;;  %s13706_s16 = inlined_call_operand.vmem [shape: f32[512,96], index: 16, kind: output, shape index: {1}]   ;;  %s13707_s17 = inlined_call_operand.vmem [shape: f32[512,288], index: 17, kind: output, shape index: {2}]  }
   0x1   :  { %13834 = sst [smem:[#allocation115_spill]] %s13690_s0 }
   0x2   :  { %13835 = sst [smem:[#allocation116_spill]] %s13691_s1 }
   0x3 LB: > { %s7632_s25 = sadd.s32 4294967295, %s9504_s24   ;;  %p7636_p0 = scmp.ge.s32.totalorder %s9504_s24, 1  ;;  %s9504_s24 = sphi %s9599_s24, %s28_s24  }
   0x4   : > { %p516_p1 = scmp.lt.s32.totalorder %s9504_s24, 3 }
   0x6   : > { %p517_p2 = pnand %p7636_p0, %p516_p1 }
   0x8   : > { %520 = sbr.rel (%p517_p2) target bundleno = 1744 (0x6d0), region = 80 }
   0xd   : > { %v1021_v0 = vld [vmem:[%s13694_s4 + $0x28] sm:$0xff]  ;;  %v1020_v1 = vld [vmem:[%s13694_s4 + $0x20] sm:$0xff]  ;;  %s7637_s18 = sshll.u32 %s7632_s25, 5  ;;  %v1019_v4 = vld [vmem:[%s13694_s4 + $0x18] sm:$0xff]  ;;  %vm662_vm0 = vcmask 130048   ;;  %s13836_s0 = sld [smem:[#allocation115_spill]] }
   0xe   : > { %v661_v2 = vld [vmem:[%s13693_s3 + $0x8] sm:$0xff]  ;;  %8706 = vmatprep.subr.mxu1 %v1021_v0  ;;  %v660_v3 = vld [vmem:[%s13693_s3] sm:$0xff]  ;;  %p591_p3 = scmp.lt.s32.totalorder %s7637_s18, 63  ;;  %v1454_v5 = vld [vmem:[%s13695_s5 + $0x170] sm:$0xff]  ;;  %s13837_s22 = sld [smem:[#allocation116_spill]]  ;;  %vm1022_vm1 = vcmask 392192  }
   0xf   : > { %8654 = vmatprep.subr.mxu0 %v661_v2  ;;  %8707 = vmatpush3.msra.mxu1 %v1021_v0  ;;  %v1018_v6 = vld [vmem:[%s13694_s4 + $0x10] sm:$0xff]  ;;  %v1017_v7 = vld [vmem:[%s13694_s4 + $0x8] sm:$0xff]  ;;  %v1016_v11 = vld [vmem:[%s13694_s4] sm:$0xff]  ;;  %v13708_v20 = vmov 0.0   ;;  %vm2084_vm2 = vcmask 785408   ;;  %vm2538_vm3 = vcmask 261120  }
  0x10   : > { %8655 = vmatpush3.msra.mxu0 %v661_v2  ;;  %8708 = vmatprep.subr.mxu1 %v1020_v1  ;;  %s14114_s18 = smov (!%p591_p3, %s7637_s18), 63  ;;  %v1453_v13 = vld [vmem:[%s13695_s5 + $0x168] sm:$0xff]  ;;  %v1455_v17 = vld [vmem:[%s13695_s5 + $0x178] sm:$0xff]  ;;  %v1450_v23 = vld [vmem:[%s13695_s5 + $0x150] sm:$0xff]  ;;  %s9508_s29 = smov 64  }
  0x11   : > { %8656 = vmatprep.subr.mxu0 %v660_v3  ;;  %8709 = vmatpush3.msra.mxu1 %v1020_v1  ;;  %s9631_s27 = sshll.u32 %s14114_s18, 3  ;;  %v1451_v19 = vld [vmem:[%s13695_s5 + $0x158] sm:$0xff]  ;;  %v1452_v24 = vld [vmem:[%s13695_s5 + $0x160] sm:$0xff]  ;;  %v1449_v31 = vld [vmem:[%s13695_s5 + $0x148] sm:$0xff]  ;;  %s8205_s28 = sshll.u32 %s14114_s18, 4 }
  0x12   : > { %8657 = vmatpush3.msra.mxu0 %v660_v3  ;;  %8710 = vmatprep.subr.mxu1 %v1019_v4  ;;  %v1448_v27 = vld [vmem:[%s13695_s5 + $0x140] sm:$0xff]  ;;  %v1447_v30 = vld [vmem:[%s13695_s5 + $0x138] sm:$0xff]  ;;  %v1445_v34 = vld [vmem:[%s13695_s5 + $0x128] sm:$0xff]  ;;  %s9937_s26 = scalar_lea.vmem %s13692_s2, %s8205_s28  ;;  %s11685_s25 = scalar_lea.vmem %s13705_s15, %s9631_s27 }
  0x13   : > { %1558 = vmatprep.subr.mxu0 %v1454_v5  ;;  %8711 = vmatpush3.msra.mxu1 %v1019_v4  ;;  %s9637_s30 = scalar_lea.vmem %s13836_s0, %s9631_s27  ;;  %v1444_v37 = vld [vmem:[%s13695_s5 + $0x120] sm:$0xff]  ;;  %v1446_v38 = vld [vmem:[%s13695_s5 + $0x130] sm:$0xff]  ;;  %v1441_v44 = vld [vmem:[%s13695_s5 + $0x108] sm:$0xff]  ;;  %s12395_s19 = scalar_lea.vmem %s13706_s16, %s9631_s27 }
  0x14   : > { %s9646_s23 = scalar_lea.vmem %s13837_s22, %s9631_s27  ;;  %8712 = vmatprep.subr.mxu1 %v1018_v6  ;;  %v628_v8 = vld [vmem:[%s9637_s30] sm:$0xff]  ;;  %v629_v9 = vld [vmem:[%s9637_s30 + $0x8] sm:$0xff]  ;;  %v630_v10 = vld [vmem:[%s9637_s30 + $0x10] sm:$0xff] }
  0x15   : > { %8658 = vmatprep.mubr.msk.f32.mxu0 %vm662_vm0, %v628_v8  ;;  %8713 = vmatpush3.msra.mxu1 %v1018_v6  ;;  %v984_v12 = vld [vmem:[%s9646_s23] sm:$0xff]  ;;  %v631_v14 = vld [vmem:[%s9637_s30 + $0x18] sm:$0xff]  ;;  %v985_v15 = vld [vmem:[%s9646_s23 + $0x8] sm:$0xff] }
  0x16   : > { %8659 = vmatmul.mubr.msk.f32.vlgmr.msra.gmra.mxu0 %vm662_vm0, %v629_v9  ;;  %8714 = vmatprep.subr.mxu1 %v1017_v7  ;;  %v632_v16 = vld [vmem:[%s9637_s30 + $0x20] sm:$0xff]  ;;  %v986_v18 = vld [vmem:[%s9646_s23 + $0x10] sm:$0xff]  ;;  %v633_v21 = vld [vmem:[%s9637_s30 + $0x28] sm:$0xff] }
  0x17   : > { %8715 = vmatpush3.msra.mxu1 %v1017_v7  ;;  %8661 = vmatprep.mubr.msk.f32.mxu0 %vm662_vm0, %v630_v10  ;;  %v987_v22 = vld [vmem:[%s9646_s23 + $0x18] sm:$0xff]  ;;  %v634_v25 = vld [vmem:[%s9637_s30 + $0x30] sm:$0xff]  ;;  %v988_v26 = vld [vmem:[%s9646_s23 + $0x20] sm:$0xff] }
  0x18   : > { %8716 = vmatprep.subr.mxu1 %v1016_v11  ;;  %8718 = vmatprep.mubr.msk.f32.mxu1 %vm1022_vm1, %v984_v12  ;;  %v635_v28 = vld [vmem:[%s9637_s30 + $0x38] sm:$0xff]  ;;  %v989_v29 = vld [vmem:[%s9646_s23 + $0x28] sm:$0xff]  ;;  %v636_v32 = vld [vmem:[%s9637_s30 + $0x40] sm:$0xff] }
  0x19   : > { %8717 = vmatpush3.msra.mxu1 %v1016_v11  ;;  %1559 = vmatpush1.msra.mxu0 %v1453_v13  ;;  %v990_v33 = vld [vmem:[%s9646_s23 + $0x30] sm:$0xff]  ;;  %v637_v35 = vld [vmem:[%s9637_s30 + $0x48] sm:$0xff]  ;;  %v991_v36 = vld [vmem:[%s9646_s23 + $0x38] sm:$0xff] }
  0x1a   : > { %8662 = vmatmul.mubr.msk.f32.gmra.mxu0 %vm662_vm0, %v631_v14  ;;  %8719 = vmatmul.mubr.msk.f32.vlgmr.msra.gmra.mxu1 %vm1022_vm1, %v985_v15  ;;  %v638_v39 = vld [vmem:[%s9637_s30 + $0x50] sm:$0xff]  ;;  %v992_v40 = vld [vmem:[%s9646_s23 + $0x40] sm:$0xff]  ;;  %v639_v42 = vld [vmem:[%s9637_s30 + $0x58] sm:$0xff] }
  0x1b   : > { %1815 = vmatprep.subr.mxu1 %v13708_v20  ;;  %8664 = vmatprep.mubr.msk.f32.mxu0 %vm662_vm0, %v632_v16  ;;  %v1442_v41 = vld [vmem:[%s13695_s5 + $0x110] sm:$0xff]  ;;  %v993_v43 = vld [vmem:[%s9646_s23 + $0x48] sm:$0xff]  ;;  %v1443_v45 = vld [vmem:[%s13695_s5 + $0x118] sm:$0xff] }
  0x1c   : > { %1816 = vmatpush1.msra.mxu1 %v1455_v17  ;;  %8721 = vmatprep.mubr.msk.f32.mxu1 %vm1022_vm1, %v986_v18  ;;  %v1439_v46 = vld [vmem:[%s13695_s5 + $0xf8] sm:$0xff]  ;;  %v640_v47 = vld [vmem:[%s9637_s30 + $0x60] sm:$0xff]  ;;  %v994_v48 = vld [vmem:[%s9646_s23 + $0x50] sm:$0xff] }
  0x1d   : > { %1560 = vmatprep.subr.mxu0 %v1451_v19  ;;  %1817 = vmatprep.subr.mxu1 %v13708_v20  ;;  %v1438_v49 = vld [vmem:[%s13695_s5 + $0xf0] sm:$0xff]  ;;  %v1440_v50 = vld [vmem:[%s13695_s5 + $0x100] sm:$0xff]  ;;  %v641_v51 = vld [vmem:[%s9637_s30 + $0x68] sm:$0xff] }
  0x1e   : > { %8665 = vmatmul.mubr.msk.f32.gmra.mxu0 %vm662_vm0, %v633_v21  ;;  %8722 = vmatmul.mubr.msk.f32.gmra.mxu1 %vm1022_vm1, %v987_v22  ;;  %v995_v52 = vld [vmem:[%s9646_s23 + $0x58] sm:$0xff]  ;;  %v1436_v53 = vld [vmem:[%s13695_s5 + $0xe0] sm:$0xff]  ;;  %v642_v54 = vld [vmem:[%s9637_s30 + $0x70] sm:$0xff] }
  0x1f   : > { %1561 = vmatpush1.msra.mxu0 %v1450_v23  ;;  %1818 = vmatpush1.msra.mxu1 %v1452_v24  ;;  %v996_v55 = vld [vmem:[%s9646_s23 + $0x60] sm:$0xff]  ;;  %v1435_v56 = vld [vmem:[%s13695_s5 + $0xd8] sm:$0xff]  ;;  %v1437_v57 = vld [vmem:[%s13695_s5 + $0xe8] sm:$0xff] }
  0x20   : > { %8667 = vmatprep.mubr.msk.f32.mxu0 %vm662_vm0, %v634_v25  ;;  %8724 = vmatprep.mubr.msk.f32.mxu1 %vm1022_vm1, %v988_v26  ;;  %v643_v58 = vld [vmem:[%s9637_s30 + $0x78] sm:$0xff]  ;;  %v997_v59 = vld [vmem:[%s9646_s23 + $0x68] sm:$0xff]  ;;  %v1432_v61 = vld [vmem:[%s13695_s5 + $0xc0] sm:$0xff] }
  0x21   : > { %1562 = vmatprep.subr.mxu0 %v1448_v27  ;;  %1819 = vmatprep.subr.mxu1 %v13708_v20  ;;  %v1433_v60 = vld [vmem:[%s13695_s5 + $0xc8] sm:$0xff]  ;;  %v1434_v62 = vld [vmem:[%s13695_s5 + $0xd0] sm:$0xff]  ;;  %v644_v63 = vld [vmem:[%s9637_s30 + $0x80] sm:$0xff] }
  0x22   : > { %8668 = vmatmul.mubr.msk.f32.gmra.mxu0 %vm662_vm0, %v635_v28  ;;  %8725 = vmatmul.mubr.msk.f32.gmra.mxu1 %vm1022_vm1, %v989_v29  ;;  %v998_v0 = vld [vmem:[%s9646_s23 + $0x70] sm:$0xff]  ;;  %v645_v1 = vld [vmem:[%s9637_s30 + $0x88] sm:$0xff]  ;;  %v999_v2 = vld [vmem:[%s9646_s23 + $0x78] sm:$0xff] }
  0x23   : > { %1563 = vmatpush1.msra.mxu0 %v1447_v30  ;;  %1820 = vmatpush1.msra.mxu1 %v1449_v31  ;;  %v1430_v3 = vld [vmem:[%s13695_s5 + $0xb0] sm:$0xff]  ;;  %v1429_v4 = vld [vmem:[%s13695_s5 + $0xa8] sm:$0xff]  ;;  %v1431_v5 = vld [vmem:[%s13695_s5 + $0xb8] sm:$0xff] }
  0x24   : > { %8670 = vmatprep.mubr.msk.f32.mxu0 %vm662_vm0, %v636_v32  ;;  %8727 = vmatprep.mubr.msk.f32.mxu1 %vm1022_vm1, %v990_v33  ;;  %v646_v6 = vld [vmem:[%s9637_s30 + $0x90] sm:$0xff]  ;;  %v1000_v7 = vld [vmem:[%s9646_s23 + $0x80] sm:$0xff]  ;;  %v647_v8 = vld [vmem:[%s9637_s30 + $0x98] sm:$0xff] }
  0x25   : > { %1564 = vmatprep.subr.mxu0 %v1445_v34  ;;  %1821 = vmatprep.subr.mxu1 %v13708_v20  ;;  %v1001_v9 = vld [vmem:[%s9646_s23 + $0x88] sm:$0xff]  ;;  %v1427_v10 = vld [vmem:[%s13695_s5 + $0x98] sm:$0xff]  ;;  %v1426_v11 = vld [vmem:[%s13695_s5 + $0x90] sm:$0xff] }
  0x26   : > { %8671 = vmatmul.mubr.msk.f32.gmra.mxu0 %vm662_vm0, %v637_v35  ;;  %8728 = vmatmul.mubr.msk.f32.gmra.mxu1 %vm1022_vm1, %v991_v36  ;;  %v1428_v12 = vld [vmem:[%s13695_s5 + $0xa0] sm:$0xff]  ;;  %v1002_v14 = vld [vmem:[%s9646_s23 + $0x90] sm:$0xff]  ;;  %v649_v15 = vld [vmem:[%s9637_s30 + $0xa8] sm:$0xff] }
  0x27   : > { %1565 = vmatpush1.msra.mxu0 %v1444_v37  ;;  %1822 = vmatpush1.msra.mxu1 %v1446_v38  ;;  %v648_v13 = vld [vmem:[%s9637_s30 + $0xa0] sm:$0xff]  ;;  %v1003_v16 = vld [vmem:[%s9646_s23 + $0x98] sm:$0xff]  ;;  %v1425_v19 = vld [vmem:[%s13695_s5 + $0x88] sm:$0xff] }
  0x28   : > { %8673 = vmatprep.mubr.msk.f32.mxu0 %vm662_vm0, %v638_v39  ;;  %8730 = vmatprep.mubr.msk.f32.mxu1 %vm1022_vm1, %v992_v40  ;;  %v1424_v17 = vld [vmem:[%s13695_s5 + $0x80] sm:$0xff]  ;;  %v1423_v18 = vld [vmem:[%s13695_s5 + $0x78] sm:$0xff]  ;;  %v650_v21 = vld [vmem:[%s9637_s30 + $0xb0] sm:$0xff] }
  0x29   : > { %1566 = vmatprep.subr.mxu0 %v1442_v41  ;;  %1823 = vmatprep.subr.mxu1 %v13708_v20  ;;  %v1004_v22 = vld [vmem:[%s9646_s23 + $0xa0] sm:$0xff]  ;;  %v651_v23 = vld [vmem:[%s9637_s30 + $0xb8] sm:$0xff]  ;;  %v1005_v24 = vld [vmem:[%s9646_s23 + $0xa8] sm:$0xff] }
  0x2a   : > { %8674 = vmatmul.mubr.msk.f32.gmra.mxu0 %vm662_vm0, %v639_v42  ;;  %8731 = vmatmul.mubr.msk.f32.gmra.mxu1 %vm1022_vm1, %v993_v43  ;;  %v1421_v25 = vld [vmem:[%s13695_s5 + $0x68] sm:$0xff]  ;;  %v1420_v26 = vld [vmem:[%s13695_s5 + $0x60] sm:$0xff]  ;;  %v1422_v27 = vld [vmem:[%s13695_s5 + $0x70] sm:$0xff] }
  0x2b   : > { %1567 = vmatpush1.msra.mxu0 %v1441_v44  ;;  %1824 = vmatpush1.msra.mxu1 %v1443_v45  ;;  %v652_v28 = vld [vmem:[%s9637_s30 + $0xc0] sm:$0xff]  ;;  %v1006_v29 = vld [vmem:[%s9646_s23 + $0xb0] sm:$0xff]  ;;  %v653_v31 = vld [vmem:[%s9637_s30 + $0xc8] sm:$0xff] }
  0x2c   : > { %1568 = vmatprep.subr.mxu0 %v1439_v46  ;;  %1825 = vmatprep.subr.mxu1 %v13708_v20  ;;  %v1418_v30 = vld [vmem:[%s13695_s5 + $0x50] sm:$0xff]  ;;  %v1007_v32 = vld [vmem:[%s9646_s23 + $0xb8] sm:$0xff]  ;;  %v1417_v33 = vld [vmem:[%s13695_s5 + $0x48] sm:$0xff] }
  0x2d   : > { %8676 = vmatprep.mubr.msk.f32.mxu0 %vm662_vm0, %v640_v47  ;;  %8733 = vmatprep.mubr.msk.f32.mxu1 %vm1022_vm1, %v994_v48  ;;  %v1419_v34 = vld [vmem:[%s13695_s5 + $0x58] sm:$0xff]  ;;  %v654_v35 = vld [vmem:[%s9637_s30 + $0xd0] sm:$0xff]  ;;  %v1008_v36 = vld [vmem:[%s9646_s23 + $0xc0] sm:$0xff] }
  0x2e   : > { %1569 = vmatpush1.msra.mxu0 %v1438_v49  ;;  %1826 = vmatpush1.msra.mxu1 %v1440_v50  ;;  %v1415_v37 = vld [vmem:[%s13695_s5 + $0x38] sm:$0xff]  ;;  %v1009_v39 = vld [vmem:[%s9646_s23 + $0xc8] sm:$0xff]  ;;  %v1414_v40 = vld [vmem:[%s13695_s5 + $0x30] sm:$0xff] }
  0x2f   : > { %8677 = vmatmul.mubr.msk.f32.gmra.mxu0 %vm662_vm0, %v641_v51  ;;  %8734 = vmatmul.mubr.msk.f32.gmra.mxu1 %vm1022_vm1, %v995_v52  ;;  %v655_v38 = vld [vmem:[%s9637_s30 + $0xd8] sm:$0xff]  ;;  %v1416_v41 = vld [vmem:[%s13695_s5 + $0x40] sm:$0xff]  ;;  %v1010_v44 = vld [vmem:[%s9646_s23 + $0xd0] sm:$0xff] }
  0x30   : > { %1570 = vmatprep.subr.mxu0 %v1436_v53  ;;  %1827 = vmatprep.subr.mxu1 %v13708_v20  ;;  %v1412_v42 = vld [vmem:[%s13695_s5 + $0x20] sm:$0xff]  ;;  %v1411_v45 = vld [vmem:[%s13695_s5 + $0x18] sm:$0xff]  ;;  %v1413_v46 = vld [vmem:[%s13695_s5 + $0x28] sm:$0xff] }
  0x31   : > { %8679 = vmatprep.mubr.msk.f32.mxu0 %vm662_vm0, %v642_v54  ;;  %8736 = vmatprep.mubr.msk.f32.mxu1 %vm1022_vm1, %v996_v55  ;;  %v656_v43 = vld [vmem:[%s9637_s30 + $0xe0] sm:$0xff]  ;;  %v657_v47 = vld [vmem:[%s9637_s30 + $0xe8] sm:$0xff]  ;;  %v1011_v48 = vld [vmem:[%s9646_s23 + $0xd8] sm:$0xff] }
  0x32   : > { %1571 = vmatpush1.msra.mxu0 %v1435_v56  ;;  %1828 = vmatpush1.msra.mxu1 %v1437_v57  ;;  %v1409_v49 = vld [vmem:[%s13695_s5 + $0x8] sm:$0xff]  ;;  %v658_v50 = vld [vmem:[%s9637_s30 + $0xf0] sm:$0xff]  ;;  %v1012_v51 = vld [vmem:[%s9646_s23 + $0xe0] sm:$0xff] }
  0x33   : > { %8680 = vmatmul.mubr.msk.f32.gmra.mxu0 %vm662_vm0, %v643_v58  ;;  %8737 = vmatmul.mubr.msk.f32.gmra.mxu1 %vm1022_vm1, %v997_v59  ;;  %v1408_v52 = vld [vmem:[%s13695_s5] sm:$0xff]  ;;  %v1410_v53 = vld [vmem:[%s13695_s5 + $0x10] sm:$0xff]  ;;  %v659_v54 = vld [vmem:[%s9637_s30 + $0xf8] sm:$0xff] }
  0x34   : > { %1572 = vmatprep.subr.mxu0 %v1433_v60  ;;  %1829 = vmatprep.subr.mxu1 %v13708_v20  ;;  %v1013_v55 = vld [vmem:[%s9646_s23 + $0xe8] sm:$0xff]  ;;  %v1460_v56 = vld [vmem:[%s13695_s5 + $0x1a0] sm:$0xff]  ;;  %v1459_v57 = vld [vmem:[%s13695_s5 + $0x198] sm:$0xff] }
  0x35   : > { %1573 = vmatpush1.msra.mxu0 %v1432_v61  ;;  %1830 = vmatpush1.msra.mxu1 %v1434_v62  ;;  %v1461_v58 = vld [vmem:[%s13695_s5 + $0x1a8] sm:$0xff]  ;;  %v1014_v60 = vld [vmem:[%s9646_s23 + $0xf0] sm:$0xff]  ;;  %v1456_v61 = vld [vmem:[%s13695_s5 + $0x180] sm:$0xff] }
  0x36   : > { %8682 = vmatprep.mubr.msk.f32.mxu0 %vm662_vm0, %v644_v63  ;;  %8739 = vmatprep.mubr.msk.f32.mxu1 %vm1022_vm1, %v998_v0  ;;  %v1457_v59 = vld [vmem:[%s13695_s5 + $0x188] sm:$0xff]  ;;  %v1015_v63 = vld [vmem:[%s9646_s23 + $0xf8] sm:$0xff]  ;;  %v1344_v0 = vld [vmem:[%s9937_s26] sm:$0xff] }
  0x37   : > { %8683 = vmatmul.mubr.msk.f32.gmra.mxu0 %vm662_vm0, %v645_v1  ;;  %8740 = vmatmul.mubr.msk.f32.gmra.mxu1 %vm1022_vm1, %v999_v2  ;;  %v1345_v62 = vld [vmem:[%s9937_s26 + $0x8] sm:$0xff]  ;;  %v1347_v1 = vld [vmem:[%s9937_s26 + $0x18] sm:$0xff]  ;;  %v1458_v2 = vld [vmem:[%s13695_s5 + $0x190] sm:$0xff] }
  0x38   : > { %1574 = vmatprep.subr.mxu0 %v1430_v3  ;;  %1831 = vmatprep.subr.mxu1 %v13708_v20  ;;  %v2083_v3 = vld [vmem:[%s13698_s8 + $0x58] sm:$0xff] }
  0x39   : > { %1575 = vmatpush1.msra.mxu0 %v1429_v4  ;;  %1832 = vmatpush1.msra.mxu1 %v1431_v5  ;;  %v1346_v4 = vld [vmem:[%s9937_s26 + $0x10] sm:$0xff]  ;;  %v1349_v5 = vld [vmem:[%s9937_s26 + $0x28] sm:$0xff] }
  0x3a   : > { %8685 = vmatprep.mubr.msk.f32.mxu0 %vm662_vm0, %v646_v6  ;;  %8742 = vmatprep.mubr.msk.f32.mxu1 %vm1022_vm1, %v1000_v7  ;;  %v2517_v6 = vld [vmem:[%s13699_s9 + $0x78] sm:$0xff]  ;;  %v2082_v7 = vld [vmem:[%s13698_s8 + $0x50] sm:$0xff] }
  0x3b   : > { %8686 = vmatmul.mubr.msk.f32.gmra.mxu0 %vm662_vm0, %v647_v8  ;;  %8743 = vmatmul.mubr.msk.f32.gmra.mxu1 %vm1022_vm1, %v1001_v9  ;;  %v1348_v8 = vld [vmem:[%s9937_s26 + $0x20] sm:$0xff]  ;;  %v1351_v9 = vld [vmem:[%s9937_s26 + $0x38] sm:$0xff] }
  0x3c   : > { %1576 = vmatprep.subr.mxu0 %v1427_v10  ;;  %1833 = vmatprep.subr.mxu1 %v13708_v20  ;;  %v2516_v10 = vld [vmem:[%s13699_s9 + $0x70] sm:$0xff] }
  0x3d   : > { %1577 = vmatpush1.msra.mxu0 %v1426_v11  ;;  %1834 = vmatpush1.msra.mxu1 %v1428_v12  ;;  %v2081_v11 = vld [vmem:[%s13698_s8 + $0x48] sm:$0xff]  ;;  %v1350_v12 = vld [vmem:[%s9937_s26 + $0x30] sm:$0xff] }
  0x3e   : > { %8688 = vmatprep.mubr.msk.f32.mxu0 %vm662_vm0, %v648_v13  ;;  %8745 = vmatprep.mubr.msk.f32.mxu1 %vm1022_vm1, %v1002_v14  ;;  %v1353_v13 = vld [vmem:[%s9937_s26 + $0x48] sm:$0xff] }
  0x3f   : > { %8689 = vmatmul.mubr.msk.f32.gmra.mxu0 %vm662_vm0, %v649_v15  ;;  %8746 = vmatmul.mubr.msk.f32.gmra.mxu1 %vm1022_vm1, %v1003_v16  ;;  %v2515_v14 = vld [vmem:[%s13699_s9 + $0x68] sm:$0xff]  ;;  %v2080_v15 = vld [vmem:[%s13698_s8 + $0x40] sm:$0xff] }
  0x40   : > { %1578 = vmatprep.subr.mxu0 %v1424_v17  ;;  %1835 = vmatprep.subr.mxu1 %v13708_v20  ;;  %v1352_v16 = vld [vmem:[%s9937_s26 + $0x40] sm:$0xff]  ;;  %v1355_v17 = vld [vmem:[%s9937_s26 + $0x58] sm:$0xff] }
  0x41   : > { %1579 = vmatpush1.msra.mxu0 %v1423_v18  ;;  %1836 = vmatpush1.msra.mxu1 %v1425_v19  ;;  %v2514_v18 = vld [vmem:[%s13699_s9 + $0x60] sm:$0xff]  ;;  %v2079_v19 = vld [vmem:[%s13698_s8 + $0x38] sm:$0xff] }
  0x42   : > { %8691 = vmatprep.mubr.msk.f32.mxu0 %vm662_vm0, %v650_v21  ;;  %8748 = vmatprep.mubr.msk.f32.mxu1 %vm1022_vm1, %v1004_v22  ;;  %v1354_v21 = vld [vmem:[%s9937_s26 + $0x50] sm:$0xff]  ;;  %v1357_v22 = vld [vmem:[%s9937_s26 + $0x68] sm:$0xff] }
  0x43   : > { %8692 = vmatmul.mubr.msk.f32.gmra.mxu0 %vm662_vm0, %v651_v23  ;;  %8749 = vmatmul.mubr.msk.f32.gmra.mxu1 %vm1022_vm1, %v1005_v24  ;;  %v2513_v23 = vld [vmem:[%s13699_s9 + $0x58] sm:$0xff]  ;;  %v2078_v24 = vld [vmem:[%s13698_s8 + $0x30] sm:$0xff] }
  0x44   : > { %1580 = vmatprep.subr.mxu0 %v1421_v25  ;;  %1837 = vmatprep.subr.mxu1 %v13708_v20  ;;  %v1356_v25 = vld [vmem:[%s9937_s26 + $0x60] sm:$0xff] }
  0x45   : > { %1581 = vmatpush1.msra.mxu0 %v1420_v26  ;;  %1838 = vmatpush1.msra.mxu1 %v1422_v27  ;;  %v1359_v26 = vld [vmem:[%s9937_s26 + $0x78] sm:$0xff]  ;;  %v2512_v27 = vld [vmem:[%s13699_s9 + $0x50] sm:$0xff] }
  0x46   : > { %8694 = vmatprep.mubr.msk.f32.mxu0 %vm662_vm0, %v652_v28  ;;  %8751 = vmatprep.mubr.msk.f32.mxu1 %vm1022_vm1, %v1006_v29  ;;  %v2077_v28 = vld [vmem:[%s13698_s8 + $0x28] sm:$0xff]  ;;  %v1358_v29 = vld [vmem:[%s9937_s26 + $0x70] sm:$0xff] }
  0x47   : > { %1582 = vmatprep.subr.mxu0 %v1418_v30  ;;  %1839 = vmatprep.subr.mxu1 %v13708_v20  ;;  %v1361_v30 = vld [vmem:[%s9937_s26 + $0x88] sm:$0xff] }
  0x48   : > { %8695 = vmatmul.mubr.msk.f32.gmra.mxu0 %vm662_vm0, %v653_v31  ;;  %8752 = vmatmul.mubr.msk.f32.gmra.mxu1 %vm1022_vm1, %v1007_v32  ;;  %v2511_v31 = vld [vmem:[%s13699_s9 + $0x48] sm:$0xff]  ;;  %v2076_v32 = vld [vmem:[%s13698_s8 + $0x20] sm:$0xff] }
  0x49   : > { %1583 = vmatpush1.msra.mxu0 %v1417_v33  ;;  %1840 = vmatpush1.msra.mxu1 %v1419_v34  ;;  %v1360_v33 = vld [vmem:[%s9937_s26 + $0x80] sm:$0xff]  ;;  %v1363_v34 = vld [vmem:[%s9937_s26 + $0x98] sm:$0xff] }
  0x4a   : > { %8697 = vmatprep.mubr.msk.f32.mxu0 %vm662_vm0, %v654_v35  ;;  %8754 = vmatprep.mubr.msk.f32.mxu1 %vm1022_vm1, %v1008_v36  ;;  %v2510_v35 = vld [vmem:[%s13699_s9 + $0x40] sm:$0xff]  ;;  %v2075_v36 = vld [vmem:[%s13698_s8 + $0x18] sm:$0xff] }
  0x4b   : > { %1584 = vmatprep.subr.mxu0 %v1415_v37  ;;  %1841 = vmatprep.subr.mxu1 %v13708_v20  ;;  %v1362_v37 = vld [vmem:[%s9937_s26 + $0x90] sm:$0xff] }
  0x4c   : > { %8698 = vmatmul.mubr.msk.f32.gmra.mxu0 %vm662_vm0, %v655_v38  ;;  %8755 = vmatmul.mubr.msk.f32.gmra.mxu1 %vm1022_vm1, %v1009_v39  ;;  %v1365_v38 = vld [vmem:[%s9937_s26 + $0xa8] sm:$0xff]  ;;  %v2509_v39 = vld [vmem:[%s13699_s9 + $0x38] sm:$0xff] }
  0x4d   : > { %1585 = vmatpush1.msra.mxu0 %v1414_v40  ;;  %1842 = vmatpush1.msra.mxu1 %v1416_v41  ;;  %v2074_v40 = vld [vmem:[%s13698_s8 + $0x10] sm:$0xff]  ;;  %v1364_v41 = vld [vmem:[%s9937_s26 + $0xa0] sm:$0xff] }
  0x4e   : > { %1586 = vmatprep.subr.mxu0 %v1412_v42  ;;  %1843 = vmatprep.subr.mxu1 %v13708_v20  ;;  %v1367_v42 = vld [vmem:[%s9937_s26 + $0xb8] sm:$0xff] }
  0x4f   : > { %8700 = vmatprep.mubr.msk.f32.mxu0 %vm662_vm0, %v656_v43  ;;  %8757 = vmatprep.mubr.msk.f32.mxu1 %vm1022_vm1, %v1010_v44  ;;  %v2508_v43 = vld [vmem:[%s13699_s9 + $0x30] sm:$0xff]  ;;  %v2073_v44 = vld [vmem:[%s13698_s8 + $0x8] sm:$0xff] }
  0x50   : > { %1587 = vmatpush1.msra.mxu0 %v1411_v45  ;;  %1844 = vmatpush1.msra.mxu1 %v1413_v46  ;;  %v1366_v45 = vld [vmem:[%s9937_s26 + $0xb0] sm:$0xff]  ;;  %v1369_v46 = vld [vmem:[%s9937_s26 + $0xc8] sm:$0xff] }
  0x51   : > { %8701 = vmatmul.mubr.msk.f32.gmra.mxu0 %vm662_vm0, %v657_v47  ;;  %8758 = vmatmul.mubr.msk.f32.gmra.mxu1 %vm1022_vm1, %v1011_v48  ;;  %v2507_v47 = vld [vmem:[%s13699_s9 + $0x28] sm:$0xff]  ;;  %v2072_v48 = vld [vmem:[%s13698_s8] sm:$0xff] }
  0x52   : > { %1588 = vmatprep.subr.mxu0 %v1409_v49  ;;  %1845 = vmatprep.subr.mxu1 %v13708_v20  ;;  %v1368_v49 = vld [vmem:[%s9937_s26 + $0xc0] sm:$0xff] }
  0x53   : > { %8703 = vmatprep.mubr.msk.f32.mxu0 %vm662_vm0, %v658_v50  ;;  %8760 = vmatprep.mubr.msk.f32.mxu1 %vm1022_vm1, %v1012_v51  ;;  %v1371_v50 = vld [vmem:[%s9937_s26 + $0xd8] sm:$0xff]  ;;  %v2506_v51 = vld [vmem:[%s13699_s9 + $0x20] sm:$0xff] }
  0x54   : > { %1589 = vmatpush1.msra.mxu0 %v1408_v52  ;;  %1846 = vmatpush1.msra.mxu1 %v1410_v53  ;;  %v1370_v52 = vld [vmem:[%s9937_s26 + $0xd0] sm:$0xff]  ;;  %v1373_v53 = vld [vmem:[%s9937_s26 + $0xe8] sm:$0xff] }
  0x55   : > { %8704 = vmatmul.mubr.msk.f32.gmra.mxu0 %vm662_vm0, %v659_v54  ;;  %8761 = vmatmul.mubr.msk.f32.gmra.mxu1 %vm1022_vm1, %v1013_v55  ;;  %v2505_v54 = vld [vmem:[%s13699_s9 + $0x18] sm:$0xff]  ;;  %v1372_v55 = vld [vmem:[%s9937_s26 + $0xe0] sm:$0xff] }
  0x56   : > { %1618 = vmatprep.subr.mxu0 %v1460_v56  ;;  %1875 = vmatprep.subr.mxu1 %v13708_v20  ;;  %v1375_v56 = vld [vmem:[%s9937_s26 + $0xf8] sm:$0xff] }
  0x57   : > { %1619 = vmatpush2.msra.mxu0 %v1459_v57  ;;  %1876 = vmatpush2.msra.mxu1 %v1461_v58  ;;  %v2504_v57 = vld [vmem:[%s13699_s9 + $0x10] sm:$0xff] }
  0x58   : > { %1620 = vmatprep.subr.mxu0 %v1457_v59  ;;  %8763 = vmatprep.mubr.msk.f32.mxu1 %vm1022_vm1, %v1014_v60  ;;  %v1374_v58 = vld [vmem:[%s9937_s26 + $0xf0] sm:$0xff]  ;;  %v1377_v59 = vld [vmem:[%s9937_s26 + $0x108] sm:$0xff] }
  0x59   : > { %1621 = vmatpush2.msra.mxu0 %v1456_v61  ;;  %7714 = vmatprep.mubr.msk.f32.mxu0 %vm662_vm0, %v1345_v62  ;;  %v2503_v60 = vld [vmem:[%s13699_s9 + $0x8] sm:$0xff]  ;;  %v1376_v61 = vld [vmem:[%s9937_s26 + $0x100] sm:$0xff] }
  0x5a   : > { %8764 = vmatmul.mubr.msk.f32.gmra.mxu1 %vm1022_vm1, %v1015_v63  ;;  %1623 = vmatmul.mubr.f32.vlgmr.msra.gmra.mxu0 %v1344_v0  ;;  %v2502_v63 = vld [vmem:[%s13699_s9] sm:$0xff] }
  0x5b   : > { %1877 = vmatprep.subr.mxu1 %v13708_v20  ;;  %7715 = vmatprep.mubr.msk.f32.mxu0 %vm662_vm0, %v1347_v1 }
  0x5c   : > { %1878 = vmatpush2.msra.mxu1 %v1458_v2  ;;  %7746 = vmatprep.mubr.msk.f32.mxu1 %vm662_vm0, %v1345_v62  ;;  %v1379_v62 = vld [vmem:[%s9937_s26 + $0x118] sm:$0xff] }
  0x5d   : > { %8766 = vmatprep.subr.mxu0 %v2083_v3  ;;  %2635 = vmatprep.subr.mxu1 %v13708_v20  ;;  %v10137_v2 = vld [vmem:[%s13699_s9 + $0x118] sm:$0xff] }
  0x5e   : > { %1629 = vmatmul.mubr.f32.gmra.mxu0 %v1346_v4  ;;  %1880 = vmatmul.mubr.f32.vlgmr.msra.gmra.mxu1 %v1344_v0  ;;  %v1378_v0 = vld [vmem:[%s9937_s26 + $0x110] sm:$0xff] }
  0x5f   : > { %7716 = vmatprep.mubr.msk.f32.mxu0 %vm662_vm0, %v1349_v5  ;;  %7747 = vmatprep.mubr.msk.f32.mxu1 %vm662_vm0, %v1347_v1  ;;  %v1381_v1 = vld [vmem:[%s9937_s26 + $0x128] sm:$0xff] }
  0x60   : > { %8767 = vmatpush3.msra.mxu0 %v2083_v3  ;;  %2636 = vmatpush1.msra.mxu1 %v2517_v6  ;;  %v2533_v3 = vld [vmem:[%s13699_s9 + $0xf8] sm:$0xff]  ;;  %v2532_v6 = vld [vmem:[%s13699_s9 + $0xf0] sm:$0xff] }
  0x61   : > { %2637 = vmatprep.subr.mxu1 %v13708_v20  ;;  %8768 = vmatprep.subr.mxu0 %v2082_v7 }
  0x62   : > { %1635 = vmatmul.mubr.f32.gmra.mxu0 %v1348_v8  ;;  %1885 = vmatmul.mubr.f32.gmra.mxu1 %v1346_v4  ;;  %v1380_v4 = vld [vmem:[%s9937_s26 + $0x120] sm:$0xff] }
  0x63   : > { %7717 = vmatprep.mubr.msk.f32.mxu0 %vm662_vm0, %v1351_v9  ;;  %7748 = vmatprep.mubr.msk.f32.mxu1 %vm662_vm0, %v1349_v5  ;;  %v1383_v5 = vld [vmem:[%s9937_s26 + $0x138] sm:$0xff] }
  0x64   : > { %2638 = vmatpush1.msra.mxu1 %v2516_v10  ;;  %8769 = vmatpush3.msra.mxu0 %v2082_v7  ;;  %v1382_v7 = vld [vmem:[%s9937_s26 + $0x130] sm:$0xff]  ;;  %v1384_v10 = vld [vmem:[%s9937_s26 + $0x140] sm:$0xff] }
  0x65   : > { %2639 = vmatprep.subr.mxu1 %v13708_v20  ;;  %8770 = vmatprep.subr.mxu0 %v2081_v11 }
  0x66   : > { %1641 = vmatmul.mubr.f32.gmra.mxu0 %v1350_v12  ;;  %1890 = vmatmul.mubr.f32.gmra.mxu1 %v1348_v8  ;;  %v1385_v8 = vld [vmem:[%s9937_s26 + $0x148] sm:$0xff] }
  0x67   : > { %7718 = vmatprep.mubr.msk.f32.mxu0 %vm662_vm0, %v1353_v13  ;;  %7749 = vmatprep.mubr.msk.f32.mxu1 %vm662_vm0, %v1351_v9  ;;  %v2531_v9 = vld [vmem:[%s13699_s9 + $0xe8] sm:$0xff] }
  0x68   : > { %2640 = vmatpush1.msra.mxu1 %v2515_v14  ;;  %8771 = vmatpush3.msra.mxu0 %v2081_v11  ;;  %v1387_v11 = vld [vmem:[%s9937_s26 + $0x158] sm:$0xff]  ;;  %v1389_v14 = vld [vmem:[%s9937_s26 + $0x168] sm:$0xff] }
  0x69   : > { %2641 = vmatprep.subr.mxu1 %v13708_v20  ;;  %8772 = vmatprep.subr.mxu0 %v2080_v15 }
  0x6a   : > { %1647 = vmatmul.mubr.f32.gmra.mxu0 %v1352_v16  ;;  %1895 = vmatmul.mubr.f32.gmra.mxu1 %v1350_v12  ;;  %v2530_v12 = vld [vmem:[%s13699_s9 + $0xe0] sm:$0xff] }
  0x6b   : > { %7719 = vmatprep.mubr.msk.f32.mxu0 %vm662_vm0, %v1355_v17  ;;  %7750 = vmatprep.mubr.msk.f32.mxu1 %vm662_vm0, %v1353_v13  ;;  %v1386_v13 = vld [vmem:[%s9937_s26 + $0x150] sm:$0xff] }
  0x6c   : > { %2642 = vmatpush1.msra.mxu1 %v2514_v18  ;;  %8773 = vmatpush3.msra.mxu0 %v2080_v15  ;;  %v2529_v15 = vld [vmem:[%s13699_s9 + $0xd8] sm:$0xff]  ;;  %v2528_v18 = vld [vmem:[%s13699_s9 + $0xd0] sm:$0xff] }
  0x6d   : > { %2643 = vmatprep.subr.mxu1 %v13708_v20  ;;  %8774 = vmatprep.subr.mxu0 %v2079_v19 }
  0x6e   : > { %1653 = vmatmul.mubr.f32.gmra.mxu0 %v1354_v21  ;;  %1900 = vmatmul.mubr.f32.gmra.mxu1 %v1352_v16  ;;  %v1388_v16 = vld [vmem:[%s9937_s26 + $0x160] sm:$0xff] }
  0x6f   : > { %7720 = vmatprep.mubr.msk.f32.mxu0 %vm662_vm0, %v1357_v22  ;;  %7751 = vmatprep.mubr.msk.f32.mxu1 %vm662_vm0, %v1355_v17  ;;  %v1391_v17 = vld [vmem:[%s9937_s26 + $0x178] sm:$0xff] }
  0x70   : > { %2644 = vmatpush1.msra.mxu1 %v2513_v23  ;;  %8775 = vmatpush3.msra.mxu0 %v2079_v19  ;;  %v1390_v19 = vld [vmem:[%s9937_s26 + $0x170] sm:$0xff]  ;;  %v1392_v23 = vld [vmem:[%s9937_s26 + $0x180] sm:$0xff] }
  0x71   : > { %2645 = vmatprep.subr.mxu1 %v13708_v20  ;;  %8776 = vmatprep.subr.mxu0 %v2078_v24 }
  0x72   : > { %1659 = vmatmul.mubr.f32.gmra.mxu0 %v1356_v25  ;;  %1905 = vmatmul.mubr.f32.gmra.mxu1 %v1354_v21  ;;  %v1393_v21 = vld [vmem:[%s9937_s26 + $0x188] sm:$0xff] }
  0x73   : > { %7721 = vmatprep.mubr.msk.f32.mxu0 %vm662_vm0, %v1359_v26  ;;  %7752 = vmatprep.mubr.msk.f32.mxu1 %vm662_vm0, %v1357_v22  ;;  %v2527_v22 = vld [vmem:[%s13699_s9 + $0xc8] sm:$0xff] }
  0x74   : > { %2646 = vmatpush1.msra.mxu1 %v2512_v27  ;;  %8777 = vmatpush3.msra.mxu0 %v2078_v24  ;;  %v1395_v24 = vld [vmem:[%s9937_s26 + $0x198] sm:$0xff]  ;;  %v1397_v27 = vld [vmem:[%s9937_s26 + $0x1a8] sm:$0xff] }
  0x75   : > { %2647 = vmatprep.subr.mxu1 %v13708_v20  ;;  %8778 = vmatprep.subr.mxu0 %v2077_v28 }
  0x76   : > { %1665 = vmatmul.mubr.f32.gmra.mxu0 %v1358_v29  ;;  %1910 = vmatmul.mubr.f32.gmra.mxu1 %v1356_v25  ;;  %v2526_v25 = vld [vmem:[%s13699_s9 + $0xc0] sm:$0xff] }
  0x77   : > { %7722 = vmatprep.mubr.msk.f32.mxu0 %vm662_vm0, %v1361_v30  ;;  %7753 = vmatprep.mubr.msk.f32.mxu1 %vm662_vm0, %v1359_v26  ;;  %v1394_v26 = vld [vmem:[%s9937_s26 + $0x190] sm:$0xff] }
  0x78   : > { %2648 = vmatpush1.msra.mxu1 %v2511_v31  ;;  %8779 = vmatpush3.msra.mxu0 %v2077_v28  ;;  %v2525_v28 = vld [vmem:[%s13699_s9 + $0xb8] sm:$0xff]  ;;  %v2524_v31 = vld [vmem:[%s13699_s9 + $0xb0] sm:$0xff] }
  0x79   : > { %2649 = vmatprep.subr.mxu1 %v13708_v20  ;;  %8780 = vmatprep.subr.mxu0 %v2076_v32 }
  0x7a   : > { %1671 = vmatmul.mubr.f32.gmra.mxu0 %v1360_v33  ;;  %1915 = vmatmul.mubr.f32.gmra.mxu1 %v1358_v29  ;;  %v1396_v29 = vld [vmem:[%s9937_s26 + $0x1a0] sm:$0xff] }
  0x7b   : > { %7723 = vmatprep.mubr.msk.f32.mxu0 %vm662_vm0, %v1363_v34  ;;  %7754 = vmatprep.mubr.msk.f32.mxu1 %vm662_vm0, %v1361_v30  ;;  %v1399_v30 = vld [vmem:[%s9937_s26 + $0x1b8] sm:$0xff] }
  0x7c   : > { %2650 = vmatpush1.msra.mxu1 %v2510_v35  ;;  %8781 = vmatpush3.msra.mxu0 %v2076_v32  ;;  %v1398_v32 = vld [vmem:[%s9937_s26 + $0x1b0] sm:$0xff]  ;;  %v1400_v35 = vld [vmem:[%s9937_s26 + $0x1c0] sm:$0xff] }
  0x7d   : > { %2651 = vmatprep.subr.mxu1 %v13708_v20  ;;  %8782 = vmatprep.subr.mxu0 %v2075_v36 }
  0x7e   : > { %1677 = vmatmul.mubr.f32.gmra.mxu0 %v1362_v37  ;;  %1920 = vmatmul.mubr.f32.gmra.mxu1 %v1360_v33  ;;  %v1401_v33 = vld [vmem:[%s9937_s26 + $0x1c8] sm:$0xff] }
  0x7f   : > { %7724 = vmatprep.mubr.msk.f32.mxu0 %vm662_vm0, %v1365_v38  ;;  %7755 = vmatprep.mubr.msk.f32.mxu1 %vm662_vm0, %v1363_v34  ;;  %v2523_v34 = vld [vmem:[%s13699_s9 + $0xa8] sm:$0xff] }
  0x80   : > { %2652 = vmatpush1.msra.mxu1 %v2509_v39  ;;  %8783 = vmatpush3.msra.mxu0 %v2075_v36  ;;  %v1403_v36 = vld [vmem:[%s9937_s26 + $0x1d8] sm:$0xff]  ;;  %v1405_v39 = vld [vmem:[%s9937_s26 + $0x1e8] sm:$0xff] }
  0x81   : > { %2653 = vmatprep.subr.mxu1 %v13708_v20  ;;  %8784 = vmatprep.subr.mxu0 %v2074_v40 }
  0x82   : > { %1683 = vmatmul.mubr.f32.gmra.mxu0 %v1364_v41  ;;  %1925 = vmatmul.mubr.f32.gmra.mxu1 %v1362_v37  ;;  %v2522_v37 = vld [vmem:[%s13699_s9 + $0xa0] sm:$0xff] }
  0x83   : > { %7725 = vmatprep.mubr.msk.f32.mxu0 %vm662_vm0, %v1367_v42  ;;  %7756 = vmatprep.mubr.msk.f32.mxu1 %vm662_vm0, %v1365_v38  ;;  %v1402_v38 = vld [vmem:[%s9937_s26 + $0x1d0] sm:$0xff] }
  0x84   : > { %2654 = vmatpush1.msra.mxu1 %v2508_v43  ;;  %8785 = vmatpush3.msra.mxu0 %v2074_v40  ;;  %v2521_v40 = vld [vmem:[%s13699_s9 + $0x98] sm:$0xff]  ;;  %v2520_v43 = vld [vmem:[%s13699_s9 + $0x90] sm:$0xff] }
  0x85   : > { %2655 = vmatprep.subr.mxu1 %v13708_v20  ;;  %8786 = vmatprep.subr.mxu0 %v2073_v44 }
  0x86   : > { %1689 = vmatmul.mubr.f32.gmra.mxu0 %v1366_v45  ;;  %1930 = vmatmul.mubr.f32.gmra.mxu1 %v1364_v41  ;;  %v1404_v41 = vld [vmem:[%s9937_s26 + $0x1e0] sm:$0xff] }
  0x87   : > { %7726 = vmatprep.mubr.msk.f32.mxu0 %vm662_vm0, %v1369_v46  ;;  %7757 = vmatprep.mubr.msk.f32.mxu1 %vm662_vm0, %v1367_v42  ;;  %v1407_v42 = vld [vmem:[%s9937_s26 + $0x1f8] sm:$0xff] }
  0x88   : > { %2656 = vmatpush1.msra.mxu1 %v2507_v47  ;;  %8787 = vmatpush3.msra.mxu0 %v2073_v44  ;;  %v1406_v44 = vld [vmem:[%s9937_s26 + $0x1f0] sm:$0xff]  ;;  %v2518_v47 = vld [vmem:[%s13699_s9 + $0x80] sm:$0xff]  ;;  %s9507_s26 = smov 96  }
  0x89   : > { %2657 = vmatprep.subr.mxu1 %v13708_v20  ;;  %8788 = vmatprep.subr.mxu0 %v2072_v48 }
  0x8a   : > { %1695 = vmatmul.mubr.f32.gmra.mxu0 %v1368_v49  ;;  %1935 = vmatmul.mubr.f32.gmra.mxu1 %v1366_v45  ;;  %v2519_v45 = vld [vmem:[%s13699_s9 + $0x88] sm:$0xff] }
  0x8b   : > { %7727 = vmatprep.mubr.msk.f32.mxu0 %vm662_vm0, %v1371_v50  ;;  %7758 = vmatprep.mubr.msk.f32.mxu1 %vm662_vm0, %v1369_v46 }
  0x8c   : > { %2658 = vmatpush1.msra.mxu1 %v2506_v51  ;;  %8789 = vmatpush3.msra.mxu0 %v2072_v48 }
  0x8d   : > { %2659 = vmatprep.subr.mxu1 %v13708_v20  ;;  %8838 = vmatprep.subr.mxu0 %v10137_v2 }
  0x8e   : > { %1701 = vmatmul.mubr.f32.gmra.mxu0 %v1370_v52  ;;  %1940 = vmatmul.mubr.f32.gmra.mxu1 %v1368_v49 }
  0x8f   : > { %7728 = vmatprep.mubr.msk.f32.mxu0 %vm662_vm0, %v1373_v53  ;;  %7759 = vmatprep.mubr.msk.f32.mxu1 %vm662_vm0, %v1371_v50 }
  0x90   : > { %2660 = vmatpush1.msra.mxu1 %v2505_v54 }
  0x91   : > { %2661 = vmatprep.subr.mxu1 %v13708_v20 }
  0x92   : > { %1707 = vmatmul.mubr.f32.gmra.mxu0 %v1372_v55  ;;  %1945 = vmatmul.mubr.f32.gmra.mxu1 %v1370_v52 }
  0x93   : > { %7729 = vmatprep.mubr.msk.f32.mxu0 %vm662_vm0, %v1375_v56  ;;  %7760 = vmatprep.mubr.msk.f32.mxu1 %vm662_vm0, %v1373_v53 }
  0x94   : > { %2662 = vmatpush1.msra.mxu1 %v2504_v57  ;;  %v2536_v57 = vld [vmem:[%s13699_s9 + $0x110] sm:$0xff] }
  0x95   : > { %2663 = vmatprep.subr.mxu1 %v13708_v20 }
  0x96   : > { %1713 = vmatmul.mubr.f32.gmra.mxu0 %v1374_v58  ;;  %1950 = vmatmul.mubr.f32.gmra.mxu1 %v1372_v55 }
  0x97   : > { %7730 = vmatprep.mubr.msk.f32.mxu0 %vm662_vm0, %v1377_v59  ;;  %7761 = vmatprep.mubr.msk.f32.mxu1 %vm662_vm0, %v1375_v56 }
  0x98   : > { %2664 = vmatpush1.msra.mxu1 %v2503_v60 }
  0x99   : > { %2665 = vmatprep.subr.mxu1 %v13708_v20 }
  0x9a   : > { %1719 = vmatmul.mubr.f32.gmra.mxu0 %v1376_v61  ;;  %1955 = vmatmul.mubr.f32.gmra.mxu1 %v1374_v58 }
  0x9b   : > { %7731 = vmatprep.mubr.msk.f32.mxu0 %vm662_vm0, %v1379_v62  ;;  %7762 = vmatprep.mubr.msk.f32.mxu1 %vm662_vm0, %v1377_v59 }
  0x9c   : > { %2666 = vmatpush1.msra.mxu1 %v2502_v63 }
  0x9d   : > { %2667 = vmatprep.subr.mxu1 %v13708_v20 }
  0x9e   : > { %1725 = vmatmul.mubr.f32.gmra.mxu0 %v1378_v0  ;;  %1960 = vmatmul.mubr.f32.gmra.mxu1 %v1376_v61  ;;  %v2535_v61 = vld [vmem:[%s13699_s9 + $0x108] sm:$0xff] }
  0x9f   : > { %7732 = vmatprep.mubr.msk.f32.mxu0 %vm662_vm0, %v1381_v1  ;;  %7763 = vmatprep.mubr.msk.f32.mxu1 %vm662_vm0, %v1379_v62 }
  0xa0   : > { %2668 = vmatpush2.msra.mxu1 %v2533_v3 }
  0xa1   : > { %2669 = vmatprep.subr.mxu1 %v13708_v20 }
  0xa2   : > { %1731 = vmatmul.mubr.f32.gmra.mxu0 %v1380_v4  ;;  %1965 = vmatmul.mubr.f32.gmra.mxu1 %v1378_v0 }
  0xa3   : > { %7733 = vmatprep.mubr.msk.f32.mxu0 %vm662_vm0, %v1383_v5  ;;  %7764 = vmatprep.mubr.msk.f32.mxu1 %vm662_vm0, %v1381_v1  ;;  %v2534_v1 = vld [vmem:[%s13699_s9 + $0x100] sm:$0xff] }
  0xa4   : > { %2670 = vmatpush2.msra.mxu1 %v2532_v6 }
  0xa5   : > { %2671 = vmatprep.subr.mxu1 %v13708_v20 }
  0xa6   : > { %1737 = vmatmul.mubr.f32.gmra.mxu0 %v1382_v7  ;;  %1970 = vmatmul.mubr.f32.gmra.mxu1 %v1380_v4 }
  0xa7   : > { %7734 = vmatprep.mubr.msk.f32.mxu0 %vm662_vm0, %v1385_v8  ;;  %7765 = vmatprep.mubr.msk.f32.mxu1 %vm662_vm0, %v1383_v5 }
  0xa8   : > { %2672 = vmatpush2.msra.mxu1 %v2531_v9 }
  0xa9   : > { %2673 = vmatprep.subr.mxu1 %v13708_v20 }
  0xaa   : > { %1743 = vmatmul.mubr.f32.gmra.mxu0 %v1384_v10  ;;  %1975 = vmatmul.mubr.f32.gmra.mxu1 %v1382_v7 }
  0xab   : > { %7735 = vmatprep.mubr.msk.f32.mxu0 %vm662_vm0, %v1387_v11  ;;  %7766 = vmatprep.mubr.msk.f32.mxu1 %vm662_vm0, %v1385_v8 }
  0xac   : > { %2674 = vmatpush2.msra.mxu1 %v2530_v12 }
  0xad   : > { %2675 = vmatprep.subr.mxu1 %v13708_v20 }
  0xae   : > { %1749 = vmatmul.mubr.f32.gmra.mxu0 %v1386_v13  ;;  %1980 = vmatmul.mubr.f32.gmra.mxu1 %v1384_v10 }
  0xaf   : > { %7736 = vmatprep.mubr.msk.f32.mxu0 %vm662_vm0, %v1389_v14  ;;  %7767 = vmatprep.mubr.msk.f32.mxu1 %vm662_vm0, %v1387_v11 }
  0xb0   : > { %2676 = vmatpush2.msra.mxu1 %v2529_v15 }
  0xb1   : > { %2677 = vmatprep.subr.mxu1 %v13708_v20 }
  0xb2   : > { %1755 = vmatmul.mubr.f32.gmra.mxu0 %v1388_v16  ;;  %1985 = vmatmul.mubr.f32.gmra.mxu1 %v1386_v13 }
  0xb3   : > { %7737 = vmatprep.mubr.msk.f32.mxu0 %vm662_vm0, %v1391_v17  ;;  %7768 = vmatprep.mubr.msk.f32.mxu1 %vm662_vm0, %v1389_v14 }
  0xb4   : > { %2678 = vmatpush2.msra.mxu1 %v2528_v18 }
  0xb5   : > { %2679 = vmatprep.subr.mxu1 %v13708_v20 }
  0xb6   : > { %1761 = vmatmul.mubr.f32.gmra.mxu0 %v1390_v19  ;;  %1990 = vmatmul.mubr.f32.gmra.mxu1 %v1388_v16 }
  0xb7   : > { %7738 = vmatprep.mubr.msk.f32.mxu0 %vm662_vm0, %v1393_v21  ;;  %7769 = vmatprep.mubr.msk.f32.mxu1 %vm662_vm0, %v1391_v17 }
  0xb8   : > { %2680 = vmatpush2.msra.mxu1 %v2527_v22 }
  0xb9   : > { %2681 = vmatprep.subr.mxu1 %v13708_v20 }
  0xba   : > { %1767 = vmatmul.mubr.f32.gmra.mxu0 %v1392_v23  ;;  %1995 = vmatmul.mubr.f32.gmra.mxu1 %v1390_v19 }
  0xbb   : > { %7739 = vmatprep.mubr.msk.f32.mxu0 %vm662_vm0, %v1395_v24  ;;  %7770 = vmatprep.mubr.msk.f32.mxu1 %vm662_vm0, %v1393_v21 }
  0xbc   : > { %2682 = vmatpush2.msra.mxu1 %v2526_v25 }
  0xbd   : > { %2683 = vmatprep.subr.mxu1 %v13708_v20 }
  0xbe   : > { %1773 = vmatmul.mubr.f32.gmra.mxu0 %v1394_v26  ;;  %2000 = vmatmul.mubr.f32.gmra.mxu1 %v1392_v23 }
  0xbf   : > { %7740 = vmatprep.mubr.msk.f32.mxu0 %vm662_vm0, %v1397_v27  ;;  %7771 = vmatprep.mubr.msk.f32.mxu1 %vm662_vm0, %v1395_v24 }
  0xc0   : > { %2684 = vmatpush2.msra.mxu1 %v2525_v28 }
  0xc1   : > { %2685 = vmatprep.subr.mxu1 %v13708_v20 }
  0xc2   : > { %1779 = vmatmul.mubr.f32.gmra.mxu0 %v1396_v29  ;;  %2005 = vmatmul.mubr.f32.gmra.mxu1 %v1394_v26 }
  0xc3   : > { %7741 = vmatprep.mubr.msk.f32.mxu0 %vm662_vm0, %v1399_v30  ;;  %7772 = vmatprep.mubr.msk.f32.mxu1 %vm662_vm0, %v1397_v27 }
  0xc4   : > { %2686 = vmatpush2.msra.mxu1 %v2524_v31 }
  0xc5   : > { %2687 = vmatprep.subr.mxu1 %v13708_v20 }
  0xc6   : > { %1785 = vmatmul.mubr.f32.gmra.mxu0 %v1398_v32  ;;  %2010 = vmatmul.mubr.f32.gmra.mxu1 %v1396_v29 }
  0xc7   : > { %7742 = vmatprep.mubr.msk.f32.mxu0 %vm662_vm0, %v1401_v33  ;;  %7773 = vmatprep.mubr.msk.f32.mxu1 %vm662_vm0, %v1399_v30 }
  0xc8   : > { %2688 = vmatpush2.msra.mxu1 %v2523_v34 }
  0xc9   : > { %2689 = vmatprep.subr.mxu1 %v13708_v20 }
  0xca   : > { %1791 = vmatmul.mubr.f32.gmra.mxu0 %v1400_v35  ;;  %2015 = vmatmul.mubr.f32.gmra.mxu1 %v1398_v32 }
  0xcb   : > { %7743 = vmatprep.mubr.msk.f32.mxu0 %vm662_vm0, %v1403_v36  ;;  %7774 = vmatprep.mubr.msk.f32.mxu1 %vm662_vm0, %v1401_v33 }
  0xcc   : > { %2690 = vmatpush2.msra.mxu1 %v2522_v37 }
  0xcd   : > { %2691 = vmatprep.subr.mxu1 %v13708_v20 }
  0xce   : > { %1797 = vmatmul.mubr.f32.gmra.mxu0 %v1402_v38  ;;  %2020 = vmatmul.mubr.f32.gmra.mxu1 %v1400_v35 }
  0xcf   : > { %7744 = vmatprep.mubr.msk.f32.mxu0 %vm662_vm0, %v1405_v39  ;;  %7775 = vmatprep.mubr.msk.f32.mxu1 %vm662_vm0, %v1403_v36 }
  0xd0   : > { %2692 = vmatpush2.msra.mxu1 %v2521_v40 }
  0xd1   : > { %2693 = vmatprep.subr.mxu1 %v13708_v20 }
  0xd2   : > { %1803 = vmatmul.mubr.f32.gmra.mxu0 %v1404_v41  ;;  %2025 = vmatmul.mubr.f32.gmra.mxu1 %v1402_v38 }
  0xd3   : > { %7745 = vmatprep.mubr.msk.f32.mxu0 %vm662_vm0, %v1407_v42  ;;  %7776 = vmatprep.mubr.msk.f32.mxu1 %vm662_vm0, %v1405_v39 }
  0xd4   : > { %2694 = vmatpush2.msra.mxu1 %v2520_v43 }
  0xd5   : > { %2695 = vmatprep.subr.mxu1 %v13708_v20 }
  0xd6   : > { %1809 = vmatmul.mubr.f32.gmra.mxu0 %v1406_v44  ;;  %2030 = vmatmul.mubr.f32.gmra.mxu1 %v1404_v41  ;;  %v10255_v46 = vpop.f32.mrf.mxu0 }
  0xd7   : > { %7777 = vmatprep.mubr.msk.f32.mxu1 %vm662_vm0, %v1407_v42  ;;  %2696 = vmatpush2.msra.mxu1 %v2519_v45 }
  0xd8   : > { %v10261_v48 = vpop.f32.mrf.mxu0  ;;  %2697 = vmatprep.subr.mxu1 %v13708_v20 }
  0xd9   : > { %2698 = vmatpush2.msra.mxu1 %v2518_v47 }
  0xda   : > { %2035 = vmatmul.mubr.f32.gmra.mxu1 %v1406_v44  ;;  %v10264_v49 = vpop.f32.mrf.mxu0  ;;  %v10266_v50 = vpop.f32.mrf.mxu1 }
  0xdb   : > { %v2041_v54 = vmul.f32 %v10266_v50, %v10266_v50 }
  0xdc   : > { %v10268_v51 = vpop.f32.mrf.mxu0  ;;  %v10270_v52 = vpop.f32.mrf.mxu1 }
  0xdd   : > { %v2040_v53 = vmul.f32 %v10270_v52, %v10270_v52 }
  0xde   : > { %v10276_v55 = vpop.f32.mrf.mxu0  ;;  %v10278_v56 = vpop.f32.mrf.mxu1 }
  0xdf   : > { %8790 = vmatprep.mubr.msk.f32.mxu0 %vm2084_vm2, %v2040_v53  ;;  %v2043_v62 = vmul.f32 %v10278_v56, %v10278_v56 }
  0xe0   : > { %v10284_v58 = vpop.f32.mrf.mxu0  ;;  %v10286_v59 = vpop.f32.mrf.mxu1  ;;  %8791 = vmatmul.mubr.msk.f32.vlgmr.msra.gmra.mxu0 %vm2084_vm2, %v2041_v54 }
  0xe1   : > { %v2042_v60 = vmul.f32 %v10286_v59, %v10286_v59  ;;  %8839 = vmatpush3.msra.mxu0 %v10137_v2 }
  0xe2   : > { %v10297_v63 = vpop.f32.mrf.mxu0  ;;  %v10299_v0 = vpop.f32.mrf.mxu1  ;;  %8840 = vmatprep.subr.mxu0 %v2536_v57 }
  0xe3   : > { %8793 = vmatprep.mubr.msk.f32.mxu0 %vm2084_vm2, %v2042_v60  ;;  %8841 = vmatpush3.msra.mxu0 %v2536_v57  ;;  %v2045_v5 = vmul.f32 %v10299_v0, %v10299_v0 }
  0xe4   : > { %v10305_v2 = vpop.f32.mrf.mxu0  ;;  %v10307_v3 = vpop.f32.mrf.mxu1  ;;  %8794 = vmatmul.mubr.msk.f32.gmra.mxu0 %vm2084_vm2, %v2043_v62  ;;  %8842 = vmatprep.subr.mxu0 %v2535_v61 }
  0xe5   : > { %v2044_v4 = vmul.f32 %v10307_v3, %v10307_v3  ;;  %8843 = vmatpush3.msra.mxu0 %v2535_v61 }
  0xe6   : > { %v10314_v6 = vpop.f32.mrf.mxu0  ;;  %v10316_v7 = vpop.f32.mrf.mxu1  ;;  %8844 = vmatprep.subr.mxu0 %v2534_v1 }
  0xe7   : > { %8796 = vmatprep.mubr.msk.f32.mxu0 %vm2084_vm2, %v2044_v4  ;;  %8845 = vmatpush3.msra.mxu0 %v2534_v1  ;;  %v2047_v11 = vmul.f32 %v10316_v7, %v10316_v7 }
  0xe8   : > { %v10319_v8 = vpop.f32.mrf.mxu0  ;;  %v10321_v9 = vpop.f32.mrf.mxu1  ;;  %8797 = vmatmul.mubr.msk.f32.gmra.mxu0 %vm2084_vm2, %v2045_v5 }
  0xe9   : > { %v2046_v10 = vmul.f32 %v10321_v9, %v10321_v9 }
  0xea   : > { %v10328_v12 = vpop.f32.mrf.mxu0  ;;  %v10330_v13 = vpop.f32.mrf.mxu1 }
  0xeb   : > { %8799 = vmatprep.mubr.msk.f32.mxu0 %vm2084_vm2, %v2046_v10  ;;  %v2049_v17 = vmul.f32 %v10330_v13, %v10330_v13 }
  0xec   : > { %v10333_v14 = vpop.f32.mrf.mxu0  ;;  %v10335_v15 = vpop.f32.mrf.mxu1  ;;  %8800 = vmatmul.mubr.msk.f32.gmra.mxu0 %vm2084_vm2, %v2047_v11 }
  0xed   : > { %v2048_v16 = vmul.f32 %v10335_v15, %v10335_v15 }
  0xef   : > { %v10342_v18 = vpop.f32.mrf.mxu0  ;;  %v10344_v19 = vpop.f32.mrf.mxu1  ;;  %8802 = vmatprep.mubr.msk.f32.mxu0 %vm2084_vm2, %v2048_v16 }
  0xf0   : > { %8803 = vmatmul.mubr.msk.f32.gmra.mxu0 %vm2084_vm2, %v2049_v17  ;;  %v2051_v24 = vmul.f32 %v10344_v19, %v10344_v19 }
  0xf1   : > { %v10348_v21 = vpop.f32.mrf.mxu0  ;;  %v10350_v22 = vpop.f32.mrf.mxu1 }
  0xf2   : > { %v2050_v23 = vmul.f32 %v10350_v22, %v10350_v22 }
  0xf3   : > { %v10356_v25 = vpop.f32.mrf.mxu0  ;;  %v10358_v26 = vpop.f32.mrf.mxu1 }
  0xf4   : > { %8805 = vmatprep.mubr.msk.f32.mxu0 %vm2084_vm2, %v2050_v23  ;;  %v2053_v30 = vmul.f32 %v10358_v26, %v10358_v26 }
  0xf5   : > { %v10361_v27 = vpop.f32.mrf.mxu0  ;;  %v10363_v28 = vpop.f32.mrf.mxu1  ;;  %8806 = vmatmul.mubr.msk.f32.gmra.mxu0 %vm2084_vm2, %v2051_v24 }
  0xf6   : > { %v2052_v29 = vmul.f32 %v10363_v28, %v10363_v28 }
  0xf7   : > { %v10370_v31 = vpop.f32.mrf.mxu0  ;;  %v10372_v32 = vpop.f32.mrf.mxu1 }
  0xf8   : > { %13838 = vst [vmem:[#allocation2_spill] sm:$0xff] %v10372_v32  ;;  %8808 = vmatprep.mubr.msk.f32.mxu0 %vm2084_vm2, %v2052_v29  ;;  %v2055_v36 = vmul.f32 %v10372_v32, %v10372_v32 }
  0xf9   : > { %v10375_v33 = vpop.f32.mrf.mxu0  ;;  %v10377_v34 = vpop.f32.mrf.mxu1  ;;  %8809 = vmatmul.mubr.msk.f32.gmra.mxu0 %vm2084_vm2, %v2053_v30 }
  0xfa   : > { %v2054_v35 = vmul.f32 %v10377_v34, %v10377_v34 }
  0xfb   : > { %v10384_v37 = vpop.f32.mrf.mxu0  ;;  %v10386_v38 = vpop.f32.mrf.mxu1 }
  0xfc   : > { %13839 = vst [vmem:[#allocation3_spill] sm:$0xff] %v10386_v38  ;;  %8811 = vmatprep.mubr.msk.f32.mxu0 %vm2084_vm2, %v2054_v35  ;;  %v2057_v42 = vmul.f32 %v10386_v38, %v10386_v38 }
  0xfd   : > { %v10389_v39 = vpop.f32.mrf.mxu0  ;;  %v10391_v40 = vpop.f32.mrf.mxu1  ;;  %8812 = vmatmul.mubr.msk.f32.gmra.mxu0 %vm2084_vm2, %v2055_v36 }
  0xfe   : > { %13840 = vst [vmem:[#allocation4_spill] sm:$0xff] %v10391_v40  ;;  %v2056_v41 = vmul.f32 %v10391_v40, %v10391_v40 }
  0xff   : > { %v10398_v43 = vpop.f32.mrf.mxu0  ;;  %v10400_v44 = vpop.f32.mrf.mxu1 }
 0x100   : > { %13841 = vst [vmem:[#allocation5_spill] sm:$0xff] %v10400_v44  ;;  %8814 = vmatprep.mubr.msk.f32.mxu0 %vm2084_vm2, %v2056_v41  ;;  %v2059_v54 = vmul.f32 %v10400_v44, %v10400_v44 }
 0x101   : > { %v10403_v45 = vpop.f32.mrf.mxu0  ;;  %v10405_v47 = vpop.f32.mrf.mxu1  ;;  %8815 = vmatmul.mubr.msk.f32.gmra.mxu0 %vm2084_vm2, %v2057_v42 }
 0x102   : > { %13842 = vst [vmem:[#allocation6_spill] sm:$0xff] %v10405_v47  ;;  %v2058_v53 = vmul.f32 %v10405_v47, %v10405_v47 }
 0x103   : > { %v10412_v57 = vpop.f32.mrf.mxu0  ;;  %v10414_v60 = vpop.f32.mrf.mxu1 }
 0x104   : > { %13843 = vst [vmem:[#allocation7_spill] sm:$0xff] %v10414_v60  ;;  %8817 = vmatprep.mubr.msk.f32.mxu0 %vm2084_vm2, %v2058_v53  ;;  %v2061_v4 = vmul.f32 %v10414_v60, %v10414_v60  ;;  %v7845_v60 = vld [vmem:[%s13696_s6 + $0x38] sm:$0xff] }
 0x105   : > { %v10417_v61 = vpop.f32.mrf.mxu0  ;;  %v10419_v62 = vpop.f32.mrf.mxu1  ;;  %8818 = vmatmul.mubr.msk.f32.gmra.mxu0 %vm2084_vm2, %v2059_v54  ;;  %8894 = vmatprep.subr.mxu0 %v7845_v60 }
 0x106   : > { %13844 = vst [vmem:[#allocation8_spill] sm:$0xff] %v10419_v62  ;;  %v2060_v1 = vmul.f32 %v10419_v62, %v10419_v62 }
 0x108   : > { %v10426_v5 = vpop.f32.mrf.mxu0  ;;  %v10428_v10 = vpop.f32.mrf.mxu1  ;;  %8820 = vmatprep.mubr.msk.f32.mxu0 %vm2084_vm2, %v2060_v1 }
 0x109   : > { %13845 = vst [vmem:[#allocation9_spill] sm:$0xff] %v10428_v10  ;;  %8821 = vmatmul.mubr.msk.f32.gmra.mxu0 %vm2084_vm2, %v2061_v4  ;;  %v2063_v23 = vmul.f32 %v10428_v10, %v10428_v10 }
 0x10a   : > { %v10432_v11 = vpop.f32.mrf.mxu0  ;;  %v10434_v16 = vpop.f32.mrf.mxu1 }
 0x10b   : > { %13846 = vst [vmem:[#allocation10_spill] sm:$0xff] %v10434_v16  ;;  %v2062_v17 = vmul.f32 %v10434_v16, %v10434_v16 }
 0x10c   : > { %v10440_v24 = vpop.f32.mrf.mxu0  ;;  %v10442_v29 = vpop.f32.mrf.mxu1 }
 0x10d   : > { %13847 = vst [vmem:[#allocation11_spill] sm:$0xff] %v10442_v29  ;;  %8823 = vmatprep.mubr.msk.f32.mxu0 %vm2084_vm2, %v2062_v17  ;;  %v2065_v41 = vmul.f32 %v10442_v29, %v10442_v29 }
 0x10e   : > { %v10445_v30 = vpop.f32.mrf.mxu0  ;;  %v10447_v35 = vpop.f32.mrf.mxu1  ;;  %8824 = vmatmul.mubr.msk.f32.gmra.mxu0 %vm2084_vm2, %v2063_v23 }
 0x10f   : > { %13848 = vst [vmem:[#allocation12_spill] sm:$0xff] %v10447_v35  ;;  %v2064_v36 = vmul.f32 %v10447_v35, %v10447_v35 }
 0x111   : > { %v10454_v42 = vpop.f32.mrf.mxu0  ;;  %v10456_v53 = vpop.f32.mrf.mxu1  ;;  %8826 = vmatprep.mubr.msk.f32.mxu0 %vm2084_vm2, %v2064_v36 }
 0x112   : > { %13849 = vst [vmem:[#allocation13_spill] sm:$0xff] %v10456_v53  ;;  %8827 = vmatmul.mubr.msk.f32.gmra.mxu0 %vm2084_vm2, %v2065_v41  ;;  %v2067_v17 = vmul.f32 %v10456_v53, %v10456_v53  ;;  %v3088_v41 = vld [vmem:[%s13696_s6 + $0x18] sm:$0xff] }
 0x113   : > { %v10460_v54 = vpop.f32.mrf.mxu0  ;;  %v10462_v1 = vpop.f32.mrf.mxu1  ;;  %8950 = vmatprep.subr.mxu1 %v3088_v41 }
 0x114   : > { %13850 = vst [vmem:[#allocation14_spill] sm:$0xff] %v10462_v1  ;;  %v2066_v4 = vmul.f32 %v10462_v1, %v10462_v1 }
 0x115   : > { %v10468_v23 = vpop.f32.mrf.mxu0  ;;  %v10470_v20 = vpop.f32.mrf.mxu1 }
 0x116   : > { %13851 = vst [vmem:[#allocation15_spill] sm:$0xff] %v10470_v20  ;;  %8829 = vmatprep.mubr.msk.f32.mxu0 %vm2084_vm2, %v2066_v4  ;;  %v2069_v53 = vmul.f32 %v10470_v20, %v10470_v20 }
 0x117   : > { %v10473_v29 = vpop.f32.mrf.mxu0  ;;  %v10475_v36 = vpop.f32.mrf.mxu1  ;;  %8830 = vmatmul.mubr.msk.f32.gmra.mxu0 %vm2084_vm2, %v2067_v17 }
 0x118   : > { %13852 = vst [vmem:[#allocation16_spill] sm:$0xff] %v10475_v36  ;;  %v2068_v1 = vmul.f32 %v10475_v36, %v10475_v36 }
 0x11a   : > { %v10485_v35 = vpop.f32.mrf.mxu1  ;;  %v10487_v4 = vpop.f32.mrf.mxu0  ;;  %8832 = vmatprep.mubr.msk.f32.mxu0 %vm2084_vm2, %v2068_v1 }
 0x11b   : > { %13853 = vst [vmem:[#allocation17_spill] sm:$0xff] %v10485_v35  ;;  %13854 = vst [vmem:[#allocation18_spill] sm:$0xff] %v10487_v4  ;;  %8833 = vmatmul.mubr.msk.f32.gmra.mxu0 %vm2084_vm2, %v2069_v53  ;;  %v2406_v17 = vmul.f32 %v10487_v4, %v10487_v4  ;;  %v2071_v53 = vmul.f32 %v10485_v35, %v10485_v35 }
 0x11c   : > { %v10493_v10 = vpop.f32.mrf.mxu1  ;;  %v10495_v16 = vpop.f32.mrf.mxu0 }
 0x11d   : > { %13855 = vst [vmem:[#allocation19_spill] sm:$0xff] %v10493_v10  ;;  %13856 = vst [vmem:[#allocation20_spill] sm:$0xff] %v10495_v16  ;;  %v2070_v36 = vmul.f32 %v10493_v10, %v10493_v10  ;;  %v2407_v20 = vmul.f32 %v10495_v16, %v10495_v16  ;;  %v3087_v16 = vld [vmem:[%s13696_s6 + $0x10] sm:$0xff] }
 0x11e   : > { %v10506_v1 = vpop.f32.mrf.mxu0  ;;  %v10508_v4 = vpop.f32.mrf.mxu1 }
 0x11f   : > { %13857 = vst [vmem:[#allocation21_spill] sm:$0xff] %v10506_v1  ;;  %13858 = vst [vmem:[#allocation22_spill] sm:$0xff] %v10508_v4  ;;  %v2408_v62 = vmul.f32 %v10508_v4, %v10508_v4  ;;  %8835 = vmatprep.mubr.msk.f32.mxu0 %vm2084_vm2, %v2070_v36  ;;  %2699 = vmatprep.mubr.f32.mxu1 %v2407_v20  ;;  %v2409_v10 = vmul.f32 %v10506_v1, %v10506_v1  ;;  %v3086_v20 = vld [vmem:[%s13696_s6 + $0x8] sm:$0xff] }
 0x120   : > { %v10518_v35 = vpop.f32.mrf.mxu0  ;;  %v1883_v44 = vpop.f32.mrf.mxu1  ;;  %8836 = vmatmul.mubr.msk.f32.gmra.mxu0 %vm2084_vm2, %v2071_v53  ;;  %2700 = vmatmul.mubr.f32.vlgmr.msra.gmra.mxu1 %v2406_v17  ;;  %v3085_v17 = vld [vmem:[%s13696_s6] sm:$0xff] }
 0x121   : > { %13859 = vst [vmem:[#allocation23_spill] sm:$0xff] %v10518_v35  ;;  %v2410_v47 = vmul.f32 %v10518_v35, %v10518_v35  ;;  %8846 = vmatprep.mubr.msk.f32.mxu0 %vm2538_vm3, %v2408_v62  ;;  %8951 = vmatpush3.msra.mxu1 %v3088_v41 }
 0x122   : > { %v10527_v36 = vpop.f32.mrf.mxu0  ;;  %v10529_v4 = vpop.f32.mrf.mxu1  ;;  %8952 = vmatprep.subr.mxu1 %v3087_v16 }
 0x123   : > { %13860 = vst [vmem:[#allocation24_spill] sm:$0xff] %v10527_v36  ;;  %13861 = vst [vmem:[#allocation25_spill] sm:$0xff] %v10529_v4  ;;  %v2411_v44 = vmul.f32 %v10529_v4, %v10529_v4  ;;  %2704 = vmatprep.mubr.f32.mxu1 %v2410_v47  ;;  %8953 = vmatpush3.msra.mxu1 %v3087_v16  ;;  %v2412_v62 = vmul.f32 %v10527_v36, %v10527_v36  ;;  %v7844_v47 = vld [vmem:[%s13696_s6 + $0x30] sm:$0xff] }
 0x124   : > { %v10538_v41 = vpop.f32.mrf.mxu0  ;;  %v1888_v53 = vpop.f32.mrf.mxu1  ;;  %2705 = vmatmul.mubr.f32.gmra.mxu1 %v2409_v10  ;;  %8954 = vmatprep.subr.mxu1 %v3086_v20 }
 0x125   : > { %13862 = vst [vmem:[#allocation26_spill] sm:$0xff] %v10538_v41  ;;  %v2413_v1 = vmul.f32 %v10538_v41, %v10538_v41  ;;  %8847 = vmatmul.mubr.msk.f32.vlgmr.msra.gmra.mxu0 %vm2538_vm3, %v2411_v44  ;;  %8955 = vmatpush3.msra.mxu1 %v3086_v20  ;;  %v7843_v44 = vld [vmem:[%s13696_s6 + $0x28] sm:$0xff] }
 0x126   : > { %v10546_v16 = vpop.f32.mrf.mxu0  ;;  %v10548_v4 = vpop.f32.mrf.mxu1  ;;  %8956 = vmatprep.subr.mxu1 %v3085_v17  ;;  %8895 = vmatpush3.msra.mxu0 %v7845_v60 }
 0x127   : > { %13863 = vst [vmem:[#allocation27_spill] sm:$0xff] %v10546_v16  ;;  %13864 = vst [vmem:[#allocation28_spill] sm:$0xff] %v10548_v4  ;;  %v2414_v10 = vmul.f32 %v10548_v4, %v10548_v4  ;;  %2709 = vmatprep.mubr.f32.mxu1 %v2413_v1  ;;  %8957 = vmatpush3.msra.mxu1 %v3085_v17  ;;  %v2415_v20 = vmul.f32 %v10546_v16, %v10546_v16  ;;  %v7842_v1 = vld [vmem:[%s13696_s6 + $0x20] sm:$0xff] }
 0x128   : > { %v10557_v53 = vpop.f32.mrf.mxu0  ;;  %v1893_v36 = vpop.f32.mrf.mxu1  ;;  %2710 = vmatmul.mubr.f32.gmra.mxu1 %v2412_v62  ;;  %8896 = vmatprep.subr.mxu0 %v7844_v47 }
 0x129   : > { %13865 = vst [vmem:[#allocation29_spill] sm:$0xff] %v10557_v53  ;;  %v2416_v60 = vmul.f32 %v10557_v53, %v10557_v53  ;;  %8849 = vmatprep.mubr.msk.f32.mxu0 %vm2538_vm3, %v2414_v10  ;;  %8897 = vmatpush3.msra.mxu0 %v7844_v47 }
 0x12a   : > { %v10565_v17 = vpop.f32.mrf.mxu0  ;;  %v10567_v4 = vpop.f32.mrf.mxu1  ;;  %8898 = vmatprep.subr.mxu0 %v7843_v44 }
 0x12b   : > { %13866 = vst [vmem:[#allocation30_spill] sm:$0xff] %v10565_v17  ;;  %13867 = vst [vmem:[#allocation31_spill] sm:$0xff] %v10567_v4  ;;  %v2417_v36 = vmul.f32 %v10567_v4, %v10567_v4  ;;  %2714 = vmatprep.mubr.f32.mxu1 %v2416_v60  ;;  %8899 = vmatpush3.msra.mxu0 %v7843_v44  ;;  %v2418_v62 = vmul.f32 %v10565_v17, %v10565_v17 }
 0x12c   : > { %v10573_v16 = vpop.f32.mrf.mxu0  ;;  %v1898_v47 = vpop.f32.mrf.mxu1  ;;  %2715 = vmatmul.mubr.f32.gmra.mxu1 %v2415_v20  ;;  %8900 = vmatprep.subr.mxu0 %v7842_v1 }
 0x12d   : > { %13868 = vst [vmem:[#allocation32_spill] sm:$0xff] %v10573_v16  ;;  %v2419_v10 = vmul.f32 %v10573_v16, %v10573_v16  ;;  %8850 = vmatmul.mubr.msk.f32.gmra.mxu0 %vm2538_vm3, %v2417_v36 }
 0x12e   : > { %v10578_v53 = vpop.f32.mrf.mxu0  ;;  %v10580_v41 = vpop.f32.mrf.mxu1  ;;  %8901 = vmatpush3.msra.mxu0 %v7842_v1 }
 0x12f   : > { %13869 = vst [vmem:[#allocation33_spill] sm:$0xff] %v10578_v53  ;;  %13870 = vst [vmem:[#allocation34_spill] sm:$0xff] %v10580_v41  ;;  %v2420_v44 = vmul.f32 %v10580_v41, %v10580_v41  ;;  %2719 = vmatprep.mubr.f32.mxu1 %v2419_v10  ;;  %v2421_v60 = vmul.f32 %v10578_v53, %v10578_v53 }
 0x130   : > { %v10586_v47 = vpop.f32.mrf.mxu0  ;;  %v1903_v20 = vpop.f32.mrf.mxu1  ;;  %2720 = vmatmul.mubr.f32.gmra.mxu1 %v2418_v62 }
 0x131   : > { %13871 = vst [vmem:[#allocation35_spill] sm:$0xff] %v10586_v47  ;;  %v2422_v4 = vmul.f32 %v10586_v47, %v10586_v47  ;;  %8852 = vmatprep.mubr.msk.f32.mxu0 %vm2538_vm3, %v2420_v44 }
 0x132   : > { %v10591_v36 = vpop.f32.mrf.mxu0  ;;  %v10593_v17 = vpop.f32.mrf.mxu1 }
 0x133   : > { %13872 = vst [vmem:[#allocation36_spill] sm:$0xff] %v10591_v36  ;;  %13873 = vst [vmem:[#allocation37_spill] sm:$0xff] %v10593_v17  ;;  %v2423_v1 = vmul.f32 %v10593_v17, %v10593_v17  ;;  %2724 = vmatprep.mubr.f32.mxu1 %v2422_v4  ;;  %v2424_v10 = vmul.f32 %v10591_v36, %v10591_v36 }
 0x134   : > { %v10599_v41 = vpop.f32.mrf.mxu0  ;;  %v1908_v20 = vpop.f32.mrf.mxu1  ;;  %2725 = vmatmul.mubr.f32.gmra.mxu1 %v2421_v60 }
 0x135   : > { %13874 = vst [vmem:[#allocation38_spill] sm:$0xff] %v10599_v41  ;;  %v2425_v62 = vmul.f32 %v10599_v41, %v10599_v41  ;;  %8853 = vmatmul.mubr.msk.f32.gmra.mxu0 %vm2538_vm3, %v2423_v1 }
 0x136   : > { %v10604_v44 = vpop.f32.mrf.mxu0  ;;  %v10606_v53 = vpop.f32.mrf.mxu1 }
 0x137   : > { %13875 = vst [vmem:[#allocation39_spill] sm:$0xff] %v10604_v44  ;;  %13876 = vst [vmem:[#allocation40_spill] sm:$0xff] %v10606_v53  ;;  %v2426_v17 = vmul.f32 %v10606_v53, %v10606_v53  ;;  %2729 = vmatprep.mubr.f32.mxu1 %v2425_v62  ;;  %v2427_v4 = vmul.f32 %v10604_v44, %v10604_v44 }
 0x138   : > { %v10612_v36 = vpop.f32.mrf.mxu0  ;;  %v1913_v20 = vpop.f32.mrf.mxu1  ;;  %2730 = vmatmul.mubr.f32.gmra.mxu1 %v2424_v10 }
 0x139   : > { %13877 = vst [vmem:[#allocation41_spill] sm:$0xff] %v10612_v36  ;;  %v2428_v60 = vmul.f32 %v10612_v36, %v10612_v36  ;;  %8855 = vmatprep.mubr.msk.f32.mxu0 %vm2538_vm3, %v2426_v17 }
 0x13a   : > { %v10617_v1 = vpop.f32.mrf.mxu0  ;;  %v10619_v41 = vpop.f32.mrf.mxu1 }
 0x13b   : > { %13878 = vst [vmem:[#allocation42_spill] sm:$0xff] %v10617_v1  ;;  %13879 = vst [vmem:[#allocation43_spill] sm:$0xff] %v10619_v41  ;;  %v2429_v53 = vmul.f32 %v10619_v41, %v10619_v41  ;;  %2734 = vmatprep.mubr.f32.mxu1 %v2428_v60  ;;  %v2430_v62 = vmul.f32 %v10617_v1, %v10617_v1 }
 0x13c   : > { %v10625_v44 = vpop.f32.mrf.mxu0  ;;  %v1918_v20 = vpop.f32.mrf.mxu1  ;;  %2735 = vmatmul.mubr.f32.gmra.mxu1 %v2427_v4 }
 0x13d   : > { %13880 = vst [vmem:[#allocation44_spill] sm:$0xff] %v10625_v44  ;;  %v2431_v10 = vmul.f32 %v10625_v44, %v10625_v44  ;;  %8856 = vmatmul.mubr.msk.f32.gmra.mxu0 %vm2538_vm3, %v2429_v53 }
 0x13e   : > { %v10630_v17 = vpop.f32.mrf.mxu0  ;;  %v10632_v36 = vpop.f32.mrf.mxu1 }
 0x13f   : > { %13881 = vst [vmem:[#allocation45_spill] sm:$0xff] %v10630_v17  ;;  %13882 = vst [vmem:[#allocation46_spill] sm:$0xff] %v10632_v36  ;;  %v2432_v41 = vmul.f32 %v10632_v36, %v10632_v36  ;;  %2739 = vmatprep.mubr.f32.mxu1 %v2431_v10  ;;  %v2433_v60 = vmul.f32 %v10630_v17, %v10630_v17 }
 0x140   : > { %v10638_v1 = vpop.f32.mrf.mxu0  ;;  %v1923_v20 = vpop.f32.mrf.mxu1  ;;  %2740 = vmatmul.mubr.f32.gmra.mxu1 %v2430_v62 }
 0x141   : > { %13883 = vst [vmem:[#allocation47_spill] sm:$0xff] %v10638_v1  ;;  %v2434_v4 = vmul.f32 %v10638_v1, %v10638_v1  ;;  %8858 = vmatprep.mubr.msk.f32.mxu0 %vm2538_vm3, %v2432_v41 }
 0x142   : > { %v10643_v53 = vpop.f32.mrf.mxu0  ;;  %v10645_v44 = vpop.f32.mrf.mxu1 }
 0x143   : > { %13884 = vst [vmem:[#allocation48_spill] sm:$0xff] %v10643_v53  ;;  %13885 = vst [vmem:[#allocation49_spill] sm:$0xff] %v10645_v44  ;;  %v2435_v36 = vmul.f32 %v10645_v44, %v10645_v44  ;;  %2744 = vmatprep.mubr.f32.mxu1 %v2434_v4  ;;  %v2436_v10 = vmul.f32 %v10643_v53, %v10643_v53 }
 0x144   : > { %v10651_v17 = vpop.f32.mrf.mxu0  ;;  %v1928_v20 = vpop.f32.mrf.mxu1  ;;  %2745 = vmatmul.mubr.f32.gmra.mxu1 %v2433_v60 }
 0x145   : > { %13886 = vst [vmem:[#allocation50_spill] sm:$0xff] %v10651_v17  ;;  %v2437_v62 = vmul.f32 %v10651_v17, %v10651_v17  ;;  %8859 = vmatmul.mubr.msk.f32.gmra.mxu0 %vm2538_vm3, %v2435_v36 }
 0x146   : > { %v10656_v41 = vpop.f32.mrf.mxu0  ;;  %v10658_v1 = vpop.f32.mrf.mxu1 }
 0x147   : > { %13887 = vst [vmem:[#allocation51_spill] sm:$0xff] %v10656_v41  ;;  %13888 = vst [vmem:[#allocation52_spill] sm:$0xff] %v10658_v1  ;;  %v2438_v44 = vmul.f32 %v10658_v1, %v10658_v1  ;;  %2749 = vmatprep.mubr.f32.mxu1 %v2437_v62  ;;  %v2439_v4 = vmul.f32 %v10656_v41, %v10656_v41 }
 0x148   : > { %v10664_v53 = vpop.f32.mrf.mxu0  ;;  %v1933_v20 = vpop.f32.mrf.mxu1  ;;  %2750 = vmatmul.mubr.f32.gmra.mxu1 %v2436_v10 }
 0x149   : > { %13889 = vst [vmem:[#allocation53_spill] sm:$0xff] %v10664_v53  ;;  %v2440_v60 = vmul.f32 %v10664_v53, %v10664_v53  ;;  %8861 = vmatprep.mubr.msk.f32.mxu0 %vm2538_vm3, %v2438_v44 }
 0x14a   : > { %v10669_v36 = vpop.f32.mrf.mxu0  ;;  %v10671_v17 = vpop.f32.mrf.mxu1 }
 0x14b   : > { %13890 = vst [vmem:[#allocation54_spill] sm:$0xff] %v10669_v36  ;;  %13891 = vst [vmem:[#allocation55_spill] sm:$0xff] %v10671_v17  ;;  %v2441_v1 = vmul.f32 %v10671_v17, %v10671_v17  ;;  %2754 = vmatprep.mubr.f32.mxu1 %v2440_v60  ;;  %v2442_v62 = vmul.f32 %v10669_v36, %v10669_v36 }
 0x14c   : > { %v10677_v41 = vpop.f32.mrf.mxu0  ;;  %v1938_v20 = vpop.f32.mrf.mxu1  ;;  %2755 = vmatmul.mubr.f32.gmra.mxu1 %v2439_v4 }
 0x14d   : > { %13892 = vst [vmem:[#allocation56_spill] sm:$0xff] %v10677_v41  ;;  %v2443_v10 = vmul.f32 %v10677_v41, %v10677_v41  ;;  %8862 = vmatmul.mubr.msk.f32.gmra.mxu0 %vm2538_vm3, %v2441_v1 }
 0x14e   : > { %v10682_v44 = vpop.f32.mrf.mxu0  ;;  %v10684_v53 = vpop.f32.mrf.mxu1 }
 0x14f   : > { %13893 = vst [vmem:[#allocation57_spill] sm:$0xff] %v10682_v44  ;;  %13894 = vst [vmem:[#allocation58_spill] sm:$0xff] %v10684_v53  ;;  %v2444_v17 = vmul.f32 %v10684_v53, %v10684_v53  ;;  %2759 = vmatprep.mubr.f32.mxu1 %v2443_v10  ;;  %v2445_v60 = vmul.f32 %v10682_v44, %v10682_v44 }
 0x150   : > { %v10690_v36 = vpop.f32.mrf.mxu0  ;;  %v1943_v20 = vpop.f32.mrf.mxu1  ;;  %2760 = vmatmul.mubr.f32.gmra.mxu1 %v2442_v62 }
 0x151   : > { %13895 = vst [vmem:[#allocation59_spill] sm:$0xff] %v10690_v36  ;;  %v2446_v4 = vmul.f32 %v10690_v36, %v10690_v36  ;;  %8864 = vmatprep.mubr.msk.f32.mxu0 %vm2538_vm3, %v2444_v17 }
 0x152   : > { %v10695_v1 = vpop.f32.mrf.mxu0  ;;  %v10697_v41 = vpop.f32.mrf.mxu1 }
 0x153   : > { %13896 = vst [vmem:[#allocation60_spill] sm:$0xff] %v10695_v1  ;;  %13897 = vst [vmem:[#allocation61_spill] sm:$0xff] %v10697_v41  ;;  %v2447_v53 = vmul.f32 %v10697_v41, %v10697_v41  ;;  %2764 = vmatprep.mubr.f32.mxu1 %v2446_v4  ;;  %v2448_v10 = vmul.f32 %v10695_v1, %v10695_v1 }
 0x154   : > { %v10703_v44 = vpop.f32.mrf.mxu0  ;;  %v1948_v20 = vpop.f32.mrf.mxu1  ;;  %2765 = vmatmul.mubr.f32.gmra.mxu1 %v2445_v60 }
 0x155   : > { %13898 = vst [vmem:[#allocation62_spill] sm:$0xff] %v10703_v44  ;;  %v2449_v62 = vmul.f32 %v10703_v44, %v10703_v44  ;;  %8865 = vmatmul.mubr.msk.f32.gmra.mxu0 %vm2538_vm3, %v2447_v53 }
 0x156   : > { %v10708_v17 = vpop.f32.mrf.mxu0  ;;  %v10710_v36 = vpop.f32.mrf.mxu1 }
 0x157   : > { %13899 = vst [vmem:[#allocation63_spill] sm:$0xff] %v10708_v17  ;;  %13900 = vst [vmem:[#allocation64_spill] sm:$0xff] %v10710_v36  ;;  %v2450_v41 = vmul.f32 %v10710_v36, %v10710_v36  ;;  %2769 = vmatprep.mubr.f32.mxu1 %v2449_v62  ;;  %v2451_v4 = vmul.f32 %v10708_v17, %v10708_v17 }
 0x158   : > { %v10716_v1 = vpop.f32.mrf.mxu0  ;;  %v1953_v20 = vpop.f32.mrf.mxu1  ;;  %2770 = vmatmul.mubr.f32.gmra.mxu1 %v2448_v10 }
 0x159   : > { %13901 = vst [vmem:[#allocation65_spill] sm:$0xff] %v10716_v1  ;;  %v2452_v60 = vmul.f32 %v10716_v1, %v10716_v1  ;;  %8867 = vmatprep.mubr.msk.f32.mxu0 %vm2538_vm3, %v2450_v41 }
 0x15a   : > { %v10721_v53 = vpop.f32.mrf.mxu0  ;;  %v10723_v44 = vpop.f32.mrf.mxu1 }
 0x15b   : > { %13902 = vst [vmem:[#allocation66_spill] sm:$0xff] %v10721_v53  ;;  %13903 = vst [vmem:[#allocation67_spill] sm:$0xff] %v10723_v44  ;;  %v2453_v36 = vmul.f32 %v10723_v44, %v10723_v44  ;;  %2774 = vmatprep.mubr.f32.mxu1 %v2452_v60  ;;  %v2454_v62 = vmul.f32 %v10721_v53, %v10721_v53 }
 0x15c   : > { %v10729_v17 = vpop.f32.mrf.mxu0  ;;  %v1958_v20 = vpop.f32.mrf.mxu1  ;;  %2775 = vmatmul.mubr.f32.gmra.mxu1 %v2451_v4 }
 0x15d   : > { %13904 = vst [vmem:[#allocation68_spill] sm:$0xff] %v10729_v17  ;;  %v2455_v10 = vmul.f32 %v10729_v17, %v10729_v17  ;;  %8868 = vmatmul.mubr.msk.f32.gmra.mxu0 %vm2538_vm3, %v2453_v36 }
 0x15e   : > { %v10734_v41 = vpop.f32.mrf.mxu0  ;;  %v10736_v1 = vpop.f32.mrf.mxu1 }
 0x15f   : > { %13905 = vst [vmem:[#allocation69_spill] sm:$0xff] %v10734_v41  ;;  %13906 = vst [vmem:[#allocation70_spill] sm:$0xff] %v10736_v1  ;;  %v2456_v44 = vmul.f32 %v10736_v1, %v10736_v1  ;;  %2779 = vmatprep.mubr.f32.mxu1 %v2455_v10  ;;  %v2457_v60 = vmul.f32 %v10734_v41, %v10734_v41  ;;  %v10754_v10 = vld [vmem:[%s13696_s6 + $0x58] sm:$0xff] }
 0x160   : > { %v10742_v53 = vpop.f32.mrf.mxu0  ;;  %v1963_v20 = vpop.f32.mrf.mxu1  ;;  %2780 = vmatmul.mubr.f32.gmra.mxu1 %v2454_v62  ;;  %9006 = vmatprep.subr.mxu0 %v10754_v10 }
 0x161   : > { %13907 = vst [vmem:[#allocation71_spill] sm:$0xff] %v10742_v53  ;;  %v2458_v4 = vmul.f32 %v10742_v53, %v10742_v53  ;;  %8870 = vmatprep.mubr.msk.f32.mxu0 %vm2538_vm3, %v2456_v44 }
 0x162   : > { %v10747_v36 = vpop.f32.mrf.mxu0  ;;  %v10749_v17 = vpop.f32.mrf.mxu1 }
 0x163   : > { %13908 = vst [vmem:[#allocation72_spill] sm:$0xff] %v10747_v36  ;;  %13909 = vst [vmem:[#allocation73_spill] sm:$0xff] %v10749_v17  ;;  %v2459_v1 = vmul.f32 %v10749_v17, %v10749_v17  ;;  %2784 = vmatprep.mubr.f32.mxu1 %v2458_v4  ;;  %v2460_v62 = vmul.f32 %v10747_v36, %v10747_v36 }
 0x164   : > { %v10761_v20 = vpop.f32.mrf.mxu0  ;;  %v1968_v44 = vpop.f32.mrf.mxu1  ;;  %2785 = vmatmul.mubr.f32.gmra.mxu1 %v2457_v60 }
 0x165   : > { %13910 = vst [vmem:[#allocation74_spill] sm:$0xff] %v10761_v20  ;;  %v2461_v41 = vmul.f32 %v10761_v20, %v10761_v20  ;;  %8871 = vmatmul.mubr.msk.f32.gmra.mxu0 %vm2538_vm3, %v2459_v1 }
 0x166   : > { %v10766_v53 = vpop.f32.mrf.mxu0  ;;  %v10768_v47 = vpop.f32.mrf.mxu1 }
 0x167   : > { %13911 = vst [vmem:[#allocation75_spill] sm:$0xff] %v10766_v53  ;;  %13912 = vst [vmem:[#allocation76_spill] sm:$0xff] %v10768_v47  ;;  %v2462_v4 = vmul.f32 %v10768_v47, %v10768_v47  ;;  %2789 = vmatprep.mubr.f32.mxu1 %v2461_v41  ;;  %v2463_v17 = vmul.f32 %v10766_v53, %v10766_v53 }
 0x168   : > { %v10774_v36 = vpop.f32.mrf.mxu0  ;;  %v1973_v44 = vpop.f32.mrf.mxu1  ;;  %2790 = vmatmul.mubr.f32.gmra.mxu1 %v2460_v62 }
 0x169   : > { %13913 = vst [vmem:[#allocation77_spill] sm:$0xff] %v10774_v36  ;;  %v2464_v60 = vmul.f32 %v10774_v36, %v10774_v36  ;;  %8873 = vmatprep.mubr.msk.f32.mxu0 %vm2538_vm3, %v2462_v4 }
 0x16a   : > { %v10779_v1 = vpop.f32.mrf.mxu0  ;;  %v10781_v20 = vpop.f32.mrf.mxu1 }
 0x16b   : > { %13914 = vst [vmem:[#allocation78_spill] sm:$0xff] %v10779_v1  ;;  %13915 = vst [vmem:[#allocation79_spill] sm:$0xff] %v10781_v20  ;;  %v2465_v47 = vmul.f32 %v10781_v20, %v10781_v20  ;;  %2794 = vmatprep.mubr.f32.mxu1 %v2464_v60  ;;  %v2466_v41 = vmul.f32 %v10779_v1, %v10779_v1 }
 0x16c   : > { %v10787_v53 = vpop.f32.mrf.mxu0  ;;  %v1978_v44 = vpop.f32.mrf.mxu1  ;;  %2795 = vmatmul.mubr.f32.gmra.mxu1 %v2463_v17 }
 0x16d   : > { %13916 = vst [vmem:[#allocation80_spill] sm:$0xff] %v10787_v53  ;;  %v2467_v62 = vmul.f32 %v10787_v53, %v10787_v53  ;;  %8874 = vmatmul.mubr.msk.f32.gmra.mxu0 %vm2538_vm3, %v2465_v47 }
 0x16e   : > { %v10792_v4 = vpop.f32.mrf.mxu0  ;;  %v10794_v36 = vpop.f32.mrf.mxu1 }
 0x16f   : > { %13917 = vst [vmem:[#allocation81_spill] sm:$0xff] %v10792_v4  ;;  %13918 = vst [vmem:[#allocation82_spill] sm:$0xff] %v10794_v36  ;;  %v2468_v20 = vmul.f32 %v10794_v36, %v10794_v36  ;;  %2799 = vmatprep.mubr.f32.mxu1 %v2467_v62  ;;  %v2469_v60 = vmul.f32 %v10792_v4, %v10792_v4 }
 0x170   : > { %v10800_v1 = vpop.f32.mrf.mxu0  ;;  %v1983_v44 = vpop.f32.mrf.mxu1  ;;  %2800 = vmatmul.mubr.f32.gmra.mxu1 %v2466_v41 }
 0x171   : > { %13919 = vst [vmem:[#allocation83_spill] sm:$0xff] %v10800_v1  ;;  %v2470_v17 = vmul.f32 %v10800_v1, %v10800_v1  ;;  %8876 = vmatprep.mubr.msk.f32.mxu0 %vm2538_vm3, %v2468_v20 }
 0x172   : > { %v10805_v47 = vpop.f32.mrf.mxu0  ;;  %v10807_v53 = vpop.f32.mrf.mxu1 }
 0x173   : > { %13920 = vst [vmem:[#allocation84_spill] sm:$0xff] %v10805_v47  ;;  %13921 = vst [vmem:[#allocation85_spill] sm:$0xff] %v10807_v53  ;;  %v2471_v36 = vmul.f32 %v10807_v53, %v10807_v53  ;;  %2804 = vmatprep.mubr.f32.mxu1 %v2470_v17  ;;  %v2472_v62 = vmul.f32 %v10805_v47, %v10805_v47 }
 0x174   : > { %v10813_v4 = vpop.f32.mrf.mxu0  ;;  %v1988_v44 = vpop.f32.mrf.mxu1  ;;  %2805 = vmatmul.mubr.f32.gmra.mxu1 %v2469_v60 }
 0x175   : > { %13922 = vst [vmem:[#allocation86_spill] sm:$0xff] %v10813_v4  ;;  %v2473_v41 = vmul.f32 %v10813_v4, %v10813_v4  ;;  %8877 = vmatmul.mubr.msk.f32.gmra.mxu0 %vm2538_vm3, %v2471_v36 }
 0x176   : > { %v10818_v20 = vpop.f32.mrf.mxu0  ;;  %v10820_v1 = vpop.f32.mrf.mxu1 }
 0x177   : > { %13923 = vst [vmem:[#allocation87_spill] sm:$0xff] %v10818_v20  ;;  %13924 = vst [vmem:[#allocation88_spill] sm:$0xff] %v10820_v1  ;;  %v2474_v53 = vmul.f32 %v10820_v1, %v10820_v1  ;;  %2809 = vmatprep.mubr.f32.mxu1 %v2473_v41  ;;  %v2475_v17 = vmul.f32 %v10818_v20, %v10818_v20 }
 0x178   : > { %v10826_v47 = vpop.f32.mrf.mxu0  ;;  %v1993_v44 = vpop.f32.mrf.mxu1  ;;  %2810 = vmatmul.mubr.f32.gmra.mxu1 %v2472_v62 }
 0x179   : > { %13925 = vst [vmem:[#allocation89_spill] sm:$0xff] %v10826_v47  ;;  %v2476_v60 = vmul.f32 %v10826_v47, %v10826_v47  ;;  %8879 = vmatprep.mubr.msk.f32.mxu0 %vm2538_vm3, %v2474_v53 }
 0x17a   : > { %v10831_v36 = vpop.f32.mrf.mxu0  ;;  %v10833_v4 = vpop.f32.mrf.mxu1 }
 0x17b   : > { %13926 = vst [vmem:[#allocation90_spill] sm:$0xff] %v10831_v36  ;;  %13927 = vst [vmem:[#allocation91_spill] sm:$0xff] %v10833_v4  ;;  %v2477_v1 = vmul.f32 %v10833_v4, %v10833_v4  ;;  %2814 = vmatprep.mubr.f32.mxu1 %v2476_v60  ;;  %v2478_v41 = vmul.f32 %v10831_v36, %v10831_v36 }
 0x17c   : > { %v10839_v20 = vpop.f32.mrf.mxu0  ;;  %v1998_v44 = vpop.f32.mrf.mxu1  ;;  %2815 = vmatmul.mubr.f32.gmra.mxu1 %v2475_v17 }
 0x17d   : > { %13928 = vst [vmem:[#allocation92_spill] sm:$0xff] %v10839_v20  ;;  %v2479_v62 = vmul.f32 %v10839_v20, %v10839_v20  ;;  %8880 = vmatmul.mubr.msk.f32.gmra.mxu0 %vm2538_vm3, %v2477_v1 }
 0x17e   : > { %v10844_v53 = vpop.f32.mrf.mxu0  ;;  %v10846_v47 = vpop.f32.mrf.mxu1 }
 0x17f   : > { %13929 = vst [vmem:[#allocation93_spill] sm:$0xff] %v10844_v53  ;;  %13930 = vst [vmem:[#allocation94_spill] sm:$0xff] %v10846_v47  ;;  %v2480_v4 = vmul.f32 %v10846_v47, %v10846_v47  ;;  %2819 = vmatprep.mubr.f32.mxu1 %v2479_v62  ;;  %v2481_v60 = vmul.f32 %v10844_v53, %v10844_v53 }
 0x180   : > { %v10852_v36 = vpop.f32.mrf.mxu0  ;;  %v2003_v44 = vpop.f32.mrf.mxu1  ;;  %2820 = vmatmul.mubr.f32.gmra.mxu1 %v2478_v41 }
 0x181   : > { %13931 = vst [vmem:[#allocation95_spill] sm:$0xff] %v10852_v36  ;;  %v2482_v17 = vmul.f32 %v10852_v36, %v10852_v36  ;;  %8882 = vmatprep.mubr.msk.f32.mxu0 %vm2538_vm3, %v2480_v4 }
 0x182   : > { %v10857_v1 = vpop.f32.mrf.mxu0  ;;  %v10859_v20 = vpop.f32.mrf.mxu1 }
 0x183   : > { %13932 = vst [vmem:[#allocation96_spill] sm:$0xff] %v10857_v1  ;;  %13933 = vst [vmem:[#allocation97_spill] sm:$0xff] %v10859_v20  ;;  %v2483_v47 = vmul.f32 %v10859_v20, %v10859_v20  ;;  %2824 = vmatprep.mubr.f32.mxu1 %v2482_v17  ;;  %v2484_v62 = vmul.f32 %v10857_v1, %v10857_v1 }
 0x184   : > { %v10865_v53 = vpop.f32.mrf.mxu0  ;;  %v2008_v44 = vpop.f32.mrf.mxu1  ;;  %2825 = vmatmul.mubr.f32.gmra.mxu1 %v2481_v60 }
 0x185   : > { %13934 = vst [vmem:[#allocation98_spill] sm:$0xff] %v10865_v53  ;;  %v2485_v41 = vmul.f32 %v10865_v53, %v10865_v53  ;;  %8883 = vmatmul.mubr.msk.f32.gmra.mxu0 %vm2538_vm3, %v2483_v47 }
 0x186   : > { %v10870_v4 = vpop.f32.mrf.mxu0  ;;  %v10872_v36 = vpop.f32.mrf.mxu1 }
 0x187   : > { %13935 = vst [vmem:[#allocation99_spill] sm:$0xff] %v10870_v4  ;;  %13936 = vst [vmem:[#allocation100_spill] sm:$0xff] %v10872_v36  ;;  %v2486_v20 = vmul.f32 %v10872_v36, %v10872_v36  ;;  %2829 = vmatprep.mubr.f32.mxu1 %v2485_v41  ;;  %v2487_v17 = vmul.f32 %v10870_v4, %v10870_v4 }
 0x188   : > { %v10878_v1 = vpop.f32.mrf.mxu0  ;;  %v2013_v44 = vpop.f32.mrf.mxu1  ;;  %2830 = vmatmul.mubr.f32.gmra.mxu1 %v2484_v62 }
 0x189   : > { %13937 = vst [vmem:[#allocation101_spill] sm:$0xff] %v10878_v1  ;;  %v2488_v60 = vmul.f32 %v10878_v1, %v10878_v1  ;;  %8885 = vmatprep.mubr.msk.f32.mxu0 %vm2538_vm3, %v2486_v20 }
 0x18a   : > { %v10883_v47 = vpop.f32.mrf.mxu0  ;;  %v10885_v53 = vpop.f32.mrf.mxu1 }
 0x18b   : > { %13938 = vst [vmem:[#allocation102_spill] sm:$0xff] %v10883_v47  ;;  %13939 = vst [vmem:[#allocation103_spill] sm:$0xff] %v10885_v53  ;;  %v2489_v36 = vmul.f32 %v10885_v53, %v10885_v53  ;;  %2834 = vmatprep.mubr.f32.mxu1 %v2488_v60  ;;  %v2490_v41 = vmul.f32 %v10883_v47, %v10883_v47 }
 0x18c   : > { %v10891_v4 = vpop.f32.mrf.mxu0  ;;  %v2018_v44 = vpop.f32.mrf.mxu1  ;;  %2835 = vmatmul.mubr.f32.gmra.mxu1 %v2487_v17 }
 0x18d   : > { %13940 = vst [vmem:[#allocation104_spill] sm:$0xff] %v10891_v4  ;;  %v2491_v62 = vmul.f32 %v10891_v4, %v10891_v4  ;;  %8886 = vmatmul.mubr.msk.f32.gmra.mxu0 %vm2538_vm3, %v2489_v36 }
 0x18e   : > { %v10896_v20 = vpop.f32.mrf.mxu0  ;;  %v10898_v1 = vpop.f32.mrf.mxu1 }
 0x18f   : > { %13941 = vst [vmem:[#allocation105_spill] sm:$0xff] %v10896_v20  ;;  %13942 = vst [vmem:[#allocation106_spill] sm:$0xff] %v10898_v1  ;;  %v2492_v53 = vmul.f32 %v10898_v1, %v10898_v1  ;;  %2839 = vmatprep.mubr.f32.mxu1 %v2491_v62  ;;  %v2493_v60 = vmul.f32 %v10896_v20, %v10896_v20 }
 0x190   : > { %v10904_v47 = vpop.f32.mrf.mxu0  ;;  %v2023_v44 = vpop.f32.mrf.mxu1  ;;  %2840 = vmatmul.mubr.f32.gmra.mxu1 %v2490_v41 }
 0x191   : > { %13943 = vst [vmem:[#allocation107_spill] sm:$0xff] %v10904_v47  ;;  %v2494_v17 = vmul.f32 %v10904_v47, %v10904_v47  ;;  %8888 = vmatprep.mubr.msk.f32.mxu0 %vm2538_vm3, %v2492_v53 }
 0x192   : > { %v10909_v36 = vpop.f32.mrf.mxu0  ;;  %v10911_v4 = vpop.f32.mrf.mxu1 }
 0x193   : > { %13944 = vst [vmem:[#allocation108_spill] sm:$0xff] %v10909_v36  ;;  %13945 = vst [vmem:[#allocation109_spill] sm:$0xff] %v10911_v4  ;;  %v2495_v1 = vmul.f32 %v10911_v4, %v10911_v4  ;;  %2844 = vmatprep.mubr.f32.mxu1 %v2494_v17  ;;  %v2496_v62 = vmul.f32 %v10909_v36, %v10909_v36 }
 0x194   : > { %v10917_v20 = vpop.f32.mrf.mxu0  ;;  %v2028_v44 = vpop.f32.mrf.mxu1  ;;  %2845 = vmatmul.mubr.f32.gmra.mxu1 %v2493_v60 }
 0x195   : > { %13946 = vst [vmem:[#allocation110_spill] sm:$0xff] %v10917_v20  ;;  %v2497_v41 = vmul.f32 %v10917_v20, %v10917_v20  ;;  %8889 = vmatmul.mubr.msk.f32.gmra.mxu0 %vm2538_vm3, %v2495_v1 }
 0x196   : > { %v10922_v53 = vpop.f32.mrf.mxu0  ;;  %v10924_v47 = vpop.f32.mrf.mxu1 }
 0x197   : > { %13947 = vst [vmem:[#allocation111_spill] sm:$0xff] %v10922_v53  ;;  %13948 = vst [vmem:[#allocation112_spill] sm:$0xff] %v10924_v47  ;;  %v2498_v4 = vmul.f32 %v10924_v47, %v10924_v47  ;;  %2849 = vmatprep.mubr.f32.mxu1 %v2497_v41  ;;  %v2499_v17 = vmul.f32 %v10922_v53, %v10922_v53 }
 0x198   : > { %v10930_v36 = vpop.f32.mrf.mxu0  ;;  %v2033_v44 = vpop.f32.mrf.mxu1  ;;  %2850 = vmatmul.mubr.f32.gmra.mxu1 %v2496_v62 }
 0x199   : > { %13949 = vst [vmem:[#allocation113_spill] sm:$0xff] %v10930_v36  ;;  %v2500_v60 = vmul.f32 %v10930_v36, %v10930_v36  ;;  %8891 = vmatprep.mubr.msk.f32.mxu0 %vm2538_vm3, %v2498_v4 }
 0x19a   : > { %v10935_v1 = vpop.f32.mrf.mxu1 }
 0x19b   : > { %13950 = vst [vmem:[#allocation114_spill] sm:$0xff] %v10935_v1  ;;  %v2501_v20 = vmul.f32 %v10935_v1, %v10935_v1  ;;  %2854 = vmatprep.mubr.f32.mxu1 %v2500_v60 }
 0x19c   : > { %v2038_v47 = vpop.f32.mrf.mxu1  ;;  %2855 = vmatmul.mubr.f32.gmra.mxu1 %v2499_v17 }
 0x19d   : > { %8892 = vmatmul.mubr.msk.f32.gmra.mxu0 %vm2538_vm3, %v2501_v20  ;;  %8958 = vmatprep.mubr.msk.f32.mxu1 %vm2538_vm3, %v10261_v48  ;;  %v7912_v47 = vld [vmem:[%s13696_s6 + $0x50] sm:$0xff]  ;;  %v7911_v48 = vld [vmem:[%s13696_s6 + $0x48] sm:$0xff] }
 0x1a0   : > { %8959 = vmatmul.mubr.msk.f32.vlgmr.msra.gmra.mxu1 %vm2538_vm3, %v10255_v46  ;;  %v8792_v62 = vpop.f32.mrf.mxu0 }
 0x1a1   : > { %8961 = vmatprep.mubr.msk.f32.mxu1 %vm2538_vm3, %v10268_v51  ;;  %v7910_v51 = vld [vmem:[%s13696_s6 + $0x40] sm:$0xff] }
 0x1a2   : > { %v2247_v4 = vpop.f32.mrf.mxu0 }
 0x1a3   : > { %8902 = vmatprep.mubr.msk.f32.mxu0 %vm2538_vm3, %v2247_v4 }
 0x1a4   : > { %8962 = vmatmul.mubr.msk.f32.gmra.mxu1 %vm2538_vm3, %v10264_v49  ;;  %v8795_v20 = vpop.f32.mrf.mxu0  ;;  %8903 = vmatmul.mubr.msk.f32.vlgmr.msra.gmra.mxu0 %vm2538_vm3, %v8792_v62 }
 0x1a5   : > { %8964 = vmatprep.mubr.msk.f32.mxu1 %vm2538_vm3, %v10284_v58  ;;  %9007 = vmatpush3.msra.mxu0 %v10754_v10 }
 0x1a6   : > { %v2257_v46 = vpop.f32.mrf.mxu0  ;;  %9008 = vmatprep.subr.mxu0 %v7912_v47 }
 0x1a7   : > { %8905 = vmatprep.mubr.msk.f32.mxu0 %vm2538_vm3, %v2257_v46  ;;  %9009 = vmatpush3.msra.mxu0 %v7912_v47 }
 0x1a8   : > { %8965 = vmatmul.mubr.msk.f32.gmra.mxu1 %vm2538_vm3, %v10276_v55  ;;  %v8798_v49 = vpop.f32.mrf.mxu0  ;;  %8906 = vmatmul.mubr.msk.f32.gmra.mxu0 %vm2538_vm3, %v8795_v20 }
 0x1a9   : > { %8967 = vmatprep.mubr.msk.f32.mxu1 %vm2538_vm3, %v10305_v2  ;;  %9010 = vmatprep.subr.mxu0 %v7911_v48 }
 0x1aa   : > { %v2267_v58 = vpop.f32.mrf.mxu0  ;;  %9011 = vmatpush3.msra.mxu0 %v7911_v48 }
 0x1ab   : > { %8908 = vmatprep.mubr.msk.f32.mxu0 %vm2538_vm3, %v2267_v58  ;;  %9012 = vmatprep.subr.mxu0 %v7910_v51 }
 0x1ac   : > { %8968 = vmatmul.mubr.msk.f32.gmra.mxu1 %vm2538_vm3, %v10297_v63  ;;  %v8801_v55 = vpop.f32.mrf.mxu0  ;;  %8909 = vmatmul.mubr.msk.f32.gmra.mxu0 %vm2538_vm3, %v8798_v49 }
 0x1ad   : > { %8970 = vmatprep.mubr.msk.f32.mxu1 %vm2538_vm3, %v10319_v8  ;;  %9013 = vmatpush3.msra.mxu0 %v7910_v51 }
 0x1ae   : > { %v2277_v10 = vpop.f32.mrf.mxu0 }
 0x1af   : > { %8911 = vmatprep.mubr.msk.f32.mxu0 %vm2538_vm3, %v2277_v10 }
 0x1b0   : > { %8971 = vmatmul.mubr.msk.f32.gmra.mxu1 %vm2538_vm3, %v10314_v6  ;;  %v8804_v2 = vpop.f32.mrf.mxu0  ;;  %8912 = vmatmul.mubr.msk.f32.gmra.mxu0 %vm2538_vm3, %v8801_v55 }
 0x1b1   : > { %8973 = vmatprep.mubr.msk.f32.mxu1 %vm2538_vm3, %v10333_v14 }
 0x1b2   : > { %v2287_v63 = vpop.f32.mrf.mxu0 }
 0x1b3   : > { %8914 = vmatprep.mubr.msk.f32.mxu0 %vm2538_vm3, %v2287_v63 }
 0x1b4   : > { %8974 = vmatmul.mubr.msk.f32.gmra.mxu1 %vm2538_vm3, %v10328_v12  ;;  %8915 = vmatmul.mubr.msk.f32.gmra.mxu0 %vm2538_vm3, %v8804_v2 }
 0x1b5   : > { %8976 = vmatprep.mubr.msk.f32.mxu1 %vm2538_vm3, %v10348_v21  ;;  %v8807_v8 = vpop.f32.mrf.mxu0 }
 0x1b7   : > { %v2297_v41 = vpop.f32.mrf.mxu0 }
 0x1b8   : > { %8977 = vmatmul.mubr.msk.f32.gmra.mxu1 %vm2538_vm3, %v10342_v18  ;;  %8917 = vmatprep.mubr.msk.f32.mxu0 %vm2538_vm3, %v2297_v41 }
 0x1b9   : > { %8979 = vmatprep.mubr.msk.f32.mxu1 %vm2538_vm3, %v10361_v27  ;;  %v8810_v6 = vpop.f32.mrf.mxu0  ;;  %8918 = vmatmul.mubr.msk.f32.gmra.mxu0 %vm2538_vm3, %v8807_v8 }
 0x1bb   : > { %v2307_v14 = vpop.f32.mrf.mxu0 }
 0x1bc   : > { %8980 = vmatmul.mubr.msk.f32.gmra.mxu1 %vm2538_vm3, %v10356_v25  ;;  %8920 = vmatprep.mubr.msk.f32.mxu0 %vm2538_vm3, %v2307_v14 }
 0x1bd   : > { %8982 = vmatprep.mubr.msk.f32.mxu1 %vm2538_vm3, %v10375_v33  ;;  %v8813_v12 = vpop.f32.mrf.mxu0  ;;  %8921 = vmatmul.mubr.msk.f32.gmra.mxu0 %vm2538_vm3, %v8810_v6 }
 0x1bf   : > { %v2317_v18 = vpop.f32.mrf.mxu0 }
 0x1c0   : > { %8983 = vmatmul.mubr.msk.f32.gmra.mxu1 %vm2538_vm3, %v10370_v31  ;;  %8923 = vmatprep.mubr.msk.f32.mxu0 %vm2538_vm3, %v2317_v18 }
 0x1c1   : > { %8985 = vmatprep.mubr.msk.f32.mxu1 %vm2538_vm3, %v10389_v39  ;;  %v8816_v21 = vpop.f32.mrf.mxu0  ;;  %8924 = vmatmul.mubr.msk.f32.gmra.mxu0 %vm2538_vm3, %v8813_v12 }
 0x1c3   : > { %v2327_v25 = vpop.f32.mrf.mxu0 }
 0x1c4   : > { %8986 = vmatmul.mubr.msk.f32.gmra.mxu1 %vm2538_vm3, %v10384_v37  ;;  %8926 = vmatprep.mubr.msk.f32.mxu0 %vm2538_vm3, %v2327_v25 }
 0x1c5   : > { %8988 = vmatprep.mubr.msk.f32.mxu1 %vm2538_vm3, %v10403_v45  ;;  %v8819_v27 = vpop.f32.mrf.mxu0  ;;  %8927 = vmatmul.mubr.msk.f32.gmra.mxu0 %vm2538_vm3, %v8816_v21 }
 0x1c7   : > { %v2337_v31 = vpop.f32.mrf.mxu0 }
 0x1c8   : > { %8989 = vmatmul.mubr.msk.f32.gmra.mxu1 %vm2538_vm3, %v10398_v43  ;;  %8929 = vmatprep.mubr.msk.f32.mxu0 %vm2538_vm3, %v2337_v31 }
 0x1c9   : > { %8991 = vmatprep.mubr.msk.f32.mxu1 %vm2538_vm3, %v10417_v61  ;;  %v8822_v33 = vpop.f32.mrf.mxu0  ;;  %8930 = vmatmul.mubr.msk.f32.gmra.mxu0 %vm2538_vm3, %v8819_v27 }
 0x1cb   : > { %v2347_v37 = vpop.f32.mrf.mxu0 }
 0x1cc   : > { %8992 = vmatmul.mubr.msk.f32.gmra.mxu1 %vm2538_vm3, %v10412_v57  ;;  %8932 = vmatprep.mubr.msk.f32.mxu0 %vm2538_vm3, %v2347_v37 }
 0x1cd   : > { %8994 = vmatprep.mubr.msk.f32.mxu1 %vm2538_vm3, %v10432_v11  ;;  %8933 = vmatmul.mubr.msk.f32.gmra.mxu0 %vm2538_vm3, %v8822_v33 }
 0x1ce   : > { %v8825_v39 = vpop.f32.mrf.mxu0 }
 0x1d0   : > { %8995 = vmatmul.mubr.msk.f32.gmra.mxu1 %vm2538_vm3, %v10426_v5  ;;  %v2357_v43 = vpop.f32.mrf.mxu0 }
 0x1d1   : > { %8997 = vmatprep.mubr.msk.f32.mxu1 %vm2538_vm3, %v10445_v30  ;;  %8935 = vmatprep.mubr.msk.f32.mxu0 %vm2538_vm3, %v2357_v43 }
 0x1d2   : > { %v8828_v45 = vpop.f32.mrf.mxu0  ;;  %8936 = vmatmul.mubr.msk.f32.gmra.mxu0 %vm2538_vm3, %v8825_v39 }
 0x1d4   : > { %8998 = vmatmul.mubr.msk.f32.gmra.mxu1 %vm2538_vm3, %v10440_v24  ;;  %v2367_v57 = vpop.f32.mrf.mxu0 }
 0x1d5   : > { %9000 = vmatprep.mubr.msk.f32.mxu1 %vm2538_vm3, %v10460_v54  ;;  %8938 = vmatprep.mubr.msk.f32.mxu0 %vm2538_vm3, %v2367_v57 }
 0x1d6   : > { %8939 = vmatmul.mubr.msk.f32.gmra.mxu0 %vm2538_vm3, %v8828_v45 }
 0x1d7   : > { %v8831_v61 = vpop.f32.mrf.mxu0 }
 0x1d8   : > { %9001 = vmatmul.mubr.msk.f32.gmra.mxu1 %vm2538_vm3, %v10454_v42 }
 0x1d9   : > { %9003 = vmatprep.mubr.msk.f32.mxu1 %vm2538_vm3, %v10473_v29  ;;  %v2377_v5 = vpop.f32.mrf.mxu0 }
 0x1da   : > { %8941 = vmatprep.mubr.msk.f32.mxu0 %vm2538_vm3, %v2377_v5 }
 0x1db   : > { %v8834_v11 = vpop.f32.mrf.mxu0  ;;  %8942 = vmatmul.mubr.msk.f32.gmra.mxu0 %vm2538_vm3, %v8831_v61 }
 0x1dc   : > { %9004 = vmatmul.mubr.msk.f32.gmra.mxu1 %vm2538_vm3, %v10468_v23 }
 0x1dd   : > { %v2387_v24 = vpop.f32.mrf.mxu0 }
 0x1de   : > { %8944 = vmatprep.mubr.msk.f32.mxu0 %vm2538_vm3, %v2387_v24 }
 0x1df   : > { %8945 = vmatmul.mubr.msk.f32.gmra.mxu0 %vm2538_vm3, %v8834_v11 }
 0x1e0   : > { %v8837_v30 = vpop.f32.mrf.mxu0  ;;  %v2701_v54 = vpop.f32.mrf.mxu1 }
 0x1e2   : > { %v2397_v42 = vpop.f32.mrf.mxu0  ;;  %v2703_v17 = vpop.f32.mrf.mxu1 }
 0x1e3   : > { %8947 = vmatprep.mubr.msk.f32.mxu0 %vm2538_vm3, %v2397_v42 }
 0x1e4   : > { %v2706_v29 = vpop.f32.mrf.mxu1  ;;  %8948 = vmatmul.mubr.msk.f32.gmra.mxu0 %vm2538_vm3, %v8837_v30 }
 0x1e5   : > { %v8848_v44 = vpop.f32.mrf.mxu0 }
 0x1e6   : > { %v2708_v60 = vpop.f32.mrf.mxu1  ;;  %v2932_v23 = vadd.f32 %v8848_v44, %v2706_v29 }
 0x1e7   : > { %v2926_v62 = vpop.f32.mrf.mxu0 }
 0x1e8   : > { %v2927_v4 = vadd.f32 %v2926_v62, %v2701_v54  ;;  %v2711_v47 = vpop.f32.mrf.mxu1 }
 0x1ea   : > { %v2713_v20 = vpop.f32.mrf.mxu1  ;;  %9014 = vmatprep.mubr.msk.f32.mxu0 %vm2538_vm3, %v2927_v4 }
 0x1eb   : > { %9015 = vmatmul.mubr.msk.f32.vlgmr.msra.gmra.mxu0 %vm2538_vm3, %v2932_v23 }
 0x1ec   : > { %v2716_v46 = vpop.f32.mrf.mxu1 }
 0x1ed   : > { %v8851_v48 = vpop.f32.mrf.mxu0 }
 0x1ee   : > { %v2718_v49 = vpop.f32.mrf.mxu1  ;;  %v2942_v10 = vadd.f32 %v8851_v48, %v2716_v46 }
 0x1ef   : > { %v2936_v51 = vpop.f32.mrf.mxu0 }
 0x1f0   : > { %v2937_v58 = vadd.f32 %v2936_v51, %v2711_v47  ;;  %v2721_v55 = vpop.f32.mrf.mxu1 }
 0x1f2   : > { %v2723_v2 = vpop.f32.mrf.mxu1  ;;  %9017 = vmatprep.mubr.msk.f32.mxu0 %vm2538_vm3, %v2937_v58 }
 0x1f3   : > { %9018 = vmatmul.mubr.msk.f32.gmra.mxu0 %vm2538_vm3, %v2942_v10 }
 0x1f4   : > { %v2726_v63 = vpop.f32.mrf.mxu1 }
 0x1f5   : > { %v8854_v8 = vpop.f32.mrf.mxu0 }
 0x1f6   : > { %v2728_v41 = vpop.f32.mrf.mxu1  ;;  %v2952_v18 = vadd.f32 %v8854_v8, %v2726_v63 }
 0x1f7   : > { %v2946_v6 = vpop.f32.mrf.mxu0 }
 0x1f8   : > { %v2947_v14 = vadd.f32 %v2946_v6, %v2721_v55  ;;  %v2731_v12 = vpop.f32.mrf.mxu1 }
 0x1fa   : > { %v2733_v21 = vpop.f32.mrf.mxu1  ;;  %9020 = vmatprep.mubr.msk.f32.mxu0 %vm2538_vm3, %v2947_v14 }
 0x1fb   : > { %9021 = vmatmul.mubr.msk.f32.gmra.mxu0 %vm2538_vm3, %v2952_v18 }
 0x1fc   : > { %v2736_v25 = vpop.f32.mrf.mxu1 }
 0x1fd   : > { %v8857_v27 = vpop.f32.mrf.mxu0 }
 0x1fe   : > { %v2738_v31 = vpop.f32.mrf.mxu1  ;;  %v2962_v43 = vadd.f32 %v8857_v27, %v2736_v25 }
 0x1ff   : > { %v2956_v33 = vpop.f32.mrf.mxu0 }
 0x200   : > { %v2957_v37 = vadd.f32 %v2956_v33, %v2731_v12  ;;  %v2741_v39 = vpop.f32.mrf.mxu1 }
 0x202   : > { %v2743_v45 = vpop.f32.mrf.mxu1  ;;  %9023 = vmatprep.mubr.msk.f32.mxu0 %vm2538_vm3, %v2957_v37 }
 0x203   : > { %9024 = vmatmul.mubr.msk.f32.gmra.mxu0 %vm2538_vm3, %v2962_v43 }
 0x204   : > { %v2746_v57 = vpop.f32.mrf.mxu1 }
 0x205   : > { %v8860_v61 = vpop.f32.mrf.mxu0 }
 0x206   : > { %v2748_v5 = vpop.f32.mrf.mxu1  ;;  %v2972_v54 = vadd.f32 %v8860_v61, %v2746_v57 }
 0x207   : > { %v2966_v11 = vpop.f32.mrf.mxu0 }
 0x208   : > { %v2967_v24 = vadd.f32 %v2966_v11, %v2741_v39  ;;  %v2751_v30 = vpop.f32.mrf.mxu1 }
 0x20a   : > { %v2753_v42 = vpop.f32.mrf.mxu1  ;;  %9026 = vmatprep.mubr.msk.f32.mxu0 %vm2538_vm3, %v2967_v24 }
 0x20b   : > { %9027 = vmatmul.mubr.msk.f32.gmra.mxu0 %vm2538_vm3, %v2972_v54 }
 0x20c   : > { %v2756_v17 = vpop.f32.mrf.mxu1 }
 0x20d   : > { %v8863_v29 = vpop.f32.mrf.mxu0 }
 0x20e   : > { %v2758_v44 = vpop.f32.mrf.mxu1  ;;  %v2982_v47 = vadd.f32 %v8863_v29, %v2756_v17 }
 0x20f   : > { %v2976_v60 = vpop.f32.mrf.mxu0 }
 0x210   : > { %v2977_v62 = vadd.f32 %v2976_v60, %v2751_v30  ;;  %v2761_v4 = vpop.f32.mrf.mxu1 }
 0x212   : > { %v2763_v23 = vpop.f32.mrf.mxu1  ;;  %9029 = vmatprep.mubr.msk.f32.mxu0 %vm2538_vm3, %v2977_v62 }
 0x213   : > { %9030 = vmatmul.mubr.msk.f32.gmra.mxu0 %vm2538_vm3, %v2982_v47 }
 0x214   : > { %v2766_v20 = vpop.f32.mrf.mxu1 }
 0x215   : > { %v8866_v46 = vpop.f32.mrf.mxu0 }
 0x216   : > { %v2768_v48 = vpop.f32.mrf.mxu1  ;;  %v2992_v55 = vadd.f32 %v8866_v46, %v2766_v20 }
 0x217   : > { %v2986_v49 = vpop.f32.mrf.mxu0 }
 0x218   : > { %v2987_v51 = vadd.f32 %v2986_v49, %v2761_v4  ;;  %v2771_v58 = vpop.f32.mrf.mxu1 }
 0x21a   : > { %v2773_v10 = vpop.f32.mrf.mxu1  ;;  %9032 = vmatprep.mubr.msk.f32.mxu0 %vm2538_vm3, %v2987_v51 }
 0x21b   : > { %9033 = vmatmul.mubr.msk.f32.gmra.mxu0 %vm2538_vm3, %v2992_v55 }
 0x21c   : > { %v2776_v2 = vpop.f32.mrf.mxu1 }
 0x21d   : > { %v8869_v63 = vpop.f32.mrf.mxu0 }
 0x21e   : > { %v2778_v8 = vpop.f32.mrf.mxu1  ;;  %v3002_v12 = vadd.f32 %v8869_v63, %v2776_v2 }
 0x21f   : > { %v2996_v41 = vpop.f32.mrf.mxu0 }
 0x220   : > { %v2997_v6 = vadd.f32 %v2996_v41, %v2771_v58  ;;  %v2781_v14 = vpop.f32.mrf.mxu1 }
 0x222   : > { %v2783_v18 = vpop.f32.mrf.mxu1  ;;  %9035 = vmatprep.mubr.msk.f32.mxu0 %vm2538_vm3, %v2997_v6 }
 0x223   : > { %9036 = vmatmul.mubr.msk.f32.gmra.mxu0 %vm2538_vm3, %v3002_v12 }
 0x224   : > { %v2786_v21 = vpop.f32.mrf.mxu1 }
 0x225   : > { %v8872_v25 = vpop.f32.mrf.mxu0 }
 0x226   : > { %v2788_v27 = vpop.f32.mrf.mxu1  ;;  %v3012_v39 = vadd.f32 %v8872_v25, %v2786_v21  ;;  %v4360_v25 = vld [vmem:[%s13702_s12 + $0x18] sm:$0xff] }
 0x227   : > { %v3006_v31 = vpop.f32.mrf.mxu0  ;;  %9062 = vmatprep.subr.mxu1 %v4360_v25 }
 0x228   : > { %v3007_v33 = vadd.f32 %v3006_v31, %v2781_v14  ;;  %v2791_v37 = vpop.f32.mrf.mxu1  ;;  %9063 = vmatpush3.msra.mxu1 %v4360_v25 }
 0x22a   : > { %v2793_v43 = vpop.f32.mrf.mxu1  ;;  %9038 = vmatprep.mubr.msk.f32.mxu0 %vm2538_vm3, %v3007_v33  ;;  %v4359_v33 = vld [vmem:[%s13702_s12 + $0x10] sm:$0xff] }
 0x22b   : > { %9039 = vmatmul.mubr.msk.f32.gmra.mxu0 %vm2538_vm3, %v3012_v39  ;;  %9064 = vmatprep.subr.mxu1 %v4359_v33 }
 0x22c   : > { %v2796_v45 = vpop.f32.mrf.mxu1  ;;  %9065 = vmatpush3.msra.mxu1 %v4359_v33 }
 0x22d   : > { %v8875_v57 = vpop.f32.mrf.mxu0 }
 0x22e   : > { %v2798_v61 = vpop.f32.mrf.mxu1  ;;  %v3022_v30 = vadd.f32 %v8875_v57, %v2796_v45  ;;  %v4358_v45 = vld [vmem:[%s13702_s12 + $0x8] sm:$0xff] }
 0x22f   : > { %v3016_v5 = vpop.f32.mrf.mxu0  ;;  %9066 = vmatprep.subr.mxu1 %v4358_v45  ;;  %v4357_v61 = vld [vmem:[%s13702_s12] sm:$0xff] }
 0x230   : > { %v3017_v11 = vadd.f32 %v3016_v5, %v2791_v37  ;;  %v2801_v24 = vpop.f32.mrf.mxu1  ;;  %9067 = vmatpush3.msra.mxu1 %v4358_v45 }
 0x231   : > { %9068 = vmatprep.subr.mxu1 %v4357_v61 }
 0x232   : > { %v2803_v54 = vpop.f32.mrf.mxu1  ;;  %9041 = vmatprep.mubr.msk.f32.mxu0 %vm2538_vm3, %v3017_v11  ;;  %9069 = vmatpush3.msra.mxu1 %v4357_v61 }
 0x233   : > { %9042 = vmatmul.mubr.msk.f32.gmra.mxu0 %vm2538_vm3, %v3022_v30 }
 0x234   : > { %v2806_v42 = vpop.f32.mrf.mxu1 }
 0x235   : > { %v8878_v17 = vpop.f32.mrf.mxu0 }
 0x236   : > { %v2808_v29 = vpop.f32.mrf.mxu1  ;;  %v3032_v4 = vadd.f32 %v8878_v17, %v2806_v42 }
 0x237   : > { %v3026_v44 = vpop.f32.mrf.mxu0 }
 0x238   : > { %v3027_v60 = vadd.f32 %v3026_v44, %v2801_v24  ;;  %v2811_v62 = vpop.f32.mrf.mxu1 }
 0x23a   : > { %v2813_v47 = vpop.f32.mrf.mxu1  ;;  %9044 = vmatprep.mubr.msk.f32.mxu0 %vm2538_vm3, %v3027_v60 }
 0x23b   : > { %9045 = vmatmul.mubr.msk.f32.gmra.mxu0 %vm2538_vm3, %v3032_v4 }
 0x23c   : > { %v2816_v23 = vpop.f32.mrf.mxu1 }
 0x23d   : > { %v8881_v20 = vpop.f32.mrf.mxu0 }
 0x23e   : > { %v2818_v46 = vpop.f32.mrf.mxu1  ;;  %v3042_v58 = vadd.f32 %v8881_v20, %v2816_v23 }
 0x23f   : > { %v3036_v48 = vpop.f32.mrf.mxu0 }
 0x240   : > { %v3037_v49 = vadd.f32 %v3036_v48, %v2811_v62  ;;  %v2821_v51 = vpop.f32.mrf.mxu1 }
 0x242   : > { %v2823_v55 = vpop.f32.mrf.mxu1  ;;  %9047 = vmatprep.mubr.msk.f32.mxu0 %vm2538_vm3, %v3037_v49 }
 0x243   : > { %9048 = vmatmul.mubr.msk.f32.gmra.mxu0 %vm2538_vm3, %v3042_v58 }
 0x244   : > { %v2826_v10 = vpop.f32.mrf.mxu1 }
 0x245   : > { %v8884_v2 = vpop.f32.mrf.mxu0 }
 0x246   : > { %v2828_v63 = vpop.f32.mrf.mxu1  ;;  %v3052_v14 = vadd.f32 %v8884_v2, %v2826_v10 }
 0x247   : > { %v3046_v8 = vpop.f32.mrf.mxu0 }
 0x248   : > { %v3047_v41 = vadd.f32 %v3046_v8, %v2821_v51  ;;  %v2831_v6 = vpop.f32.mrf.mxu1 }
 0x24a   : > { %v2833_v12 = vpop.f32.mrf.mxu1  ;;  %9050 = vmatprep.mubr.msk.f32.mxu0 %vm2538_vm3, %v3047_v41 }
 0x24b   : > { %9051 = vmatmul.mubr.msk.f32.gmra.mxu0 %vm2538_vm3, %v3052_v14 }
 0x24c   : > { %v2836_v18 = vpop.f32.mrf.mxu1 }
 0x24d   : > { %v8887_v21 = vpop.f32.mrf.mxu0 }
 0x24e   : > { %v2838_v27 = vpop.f32.mrf.mxu1  ;;  %v3062_v43 = vadd.f32 %v8887_v21, %v2836_v18 }
 0x24f   : > { %v3056_v31 = vpop.f32.mrf.mxu0 }
 0x250   : > { %v3057_v37 = vadd.f32 %v3056_v31, %v2831_v6  ;;  %v2841_v39 = vpop.f32.mrf.mxu1 }
 0x252   : > { %v2843_v57 = vpop.f32.mrf.mxu1  ;;  %9053 = vmatprep.mubr.msk.f32.mxu0 %vm2538_vm3, %v3057_v37 }
 0x253   : > { %9054 = vmatmul.mubr.msk.f32.gmra.mxu0 %vm2538_vm3, %v3062_v43 }
 0x254   : > { %v2846_v5 = vpop.f32.mrf.mxu1 }
 0x255   : > { %v8890_v11 = vpop.f32.mrf.mxu0 }
 0x256   : > { %v2848_v24 = vpop.f32.mrf.mxu1  ;;  %v3072_v17 = vadd.f32 %v8890_v11, %v2846_v5 }
 0x257   : > { %v3066_v30 = vpop.f32.mrf.mxu0 }
 0x258   : > { %v3067_v54 = vadd.f32 %v3066_v30, %v2841_v39  ;;  %v2851_v42 = vpop.f32.mrf.mxu1 }
 0x25a   : > { %v2853_v29 = vpop.f32.mrf.mxu1  ;;  %9056 = vmatprep.mubr.msk.f32.mxu0 %vm2538_vm3, %v3067_v54 }
 0x25b   : > { %9057 = vmatmul.mubr.msk.f32.gmra.mxu0 %vm2538_vm3, %v3072_v17 }
 0x25c   : > { %v2856_v44 = vpop.f32.mrf.mxu1 }
 0x25d   : > { %v8893_v60 = vpop.f32.mrf.mxu0 }
 0x25e   : > { %v2858_v62 = vpop.f32.mrf.mxu1  ;;  %v3082_v23 = vadd.f32 %v8893_v60, %v2856_v44  ;;  %v11145_v60 = vld [vmem:[%s13697_s7] ss:$0 sm:$0xff] }
 0x25f   : > { %v3076_v4 = vpop.f32.mrf.mxu0 }
 0x260   : > { %v3077_v47 = vadd.f32 %v3076_v4, %v2851_v42  ;;  %v8960_v54 = vpop.f32.mrf.mxu1 }
 0x262   : > { %9059 = vmatprep.mubr.msk.f32.mxu0 %vm2538_vm3, %v3077_v47  ;;  %v3577_v29 = vpop.f32.mrf.mxu1 }
 0x263   : > { %9060 = vmatmul.mubr.msk.f32.gmra.mxu0 %vm2538_vm3, %v3082_v23 }
 0x264   : > { %v8904_v20 = vpop.f32.mrf.mxu0  ;;  %v8963_v53 = vpop.f32.mrf.mxu1 }
 0x265   : > { %v3583_v17 = vadd.f32 %v8960_v54, %v8904_v20 }
 0x266   : > { %v3256_v46 = vpop.f32.mrf.mxu0  ;;  %v3587_v35 = vpop.f32.mrf.mxu1 }
 0x267   : > { %v3578_v62 = vadd.f32 %v3577_v29, %v3256_v46 }
 0x268   : > { %v8907_v48 = vpop.f32.mrf.mxu0 }
 0x269   : > { %v3593_v20 = vadd.f32 %v8963_v53, %v8907_v48 }
 0x26a   : > { %v3266_v49 = vpop.f32.mrf.mxu0 }
 0x26b   : > { %v3588_v40 = vadd.f32 %v3587_v35, %v3266_v49 }
 0x26c   : > { %v8910_v51 = vpop.f32.mrf.mxu0 }
 0x26e   : > { %v3276_v58 = vpop.f32.mrf.mxu0 }
 0x270   : > { %v11090_v55 = vpop.f32.mrf.mxu0 }
 0x272   : > { %v11092_v10 = vpop.f32.mrf.mxu0 }
 0x274   : > { %v11094_v2 = vpop.f32.mrf.mxu0 }
 0x276   : > { %v11096_v63 = vpop.f32.mrf.mxu0 }
 0x279   : > { %v11098_v8 = vpop.f32.mrf.mxu0 }
 0x27b   : > { %v11100_v41 = vpop.f32.mrf.mxu0 }
 0x27d   : > { %v11102_v6 = vpop.f32.mrf.mxu0 }
 0x27f   : > { %v11104_v14 = vpop.f32.mrf.mxu0 }
 0x281   : > { %v11106_v12 = vpop.f32.mrf.mxu0 }
 0x283   : > { %v11108_v18 = vpop.f32.mrf.mxu0 }
 0x285   : > { %v11110_v21 = vpop.f32.mrf.mxu0 }
 0x287   : > { %v11112_v25 = vpop.f32.mrf.mxu0 }
 0x289   : > { %v11114_v27 = vpop.f32.mrf.mxu0 }
 0x28b   : > { %v11116_v31 = vpop.f32.mrf.mxu0 }
 0x28d   : > { %v11118_v33 = vpop.f32.mrf.mxu0 }
 0x28f   : > { %v11120_v37 = vpop.f32.mrf.mxu0 }
 0x292   : > { %v11122_v39 = vpop.f32.mrf.mxu0 }
 0x294   : > { %v11124_v43 = vpop.f32.mrf.mxu0 }
 0x296   : > { %v11126_v45 = vpop.f32.mrf.mxu0 }
 0x298   : > { %v11128_v57 = vpop.f32.mrf.mxu0 }
 0x29b   : > { %v11130_v61 = vpop.f32.mrf.mxu0 }
 0x29d   : > { %v11132_v5 = vpop.f32.mrf.mxu0 }
 0x29f   : > { %v11134_v11 = vpop.f32.mrf.mxu0 }
 0x2a1   : > { %v11136_v24 = vpop.f32.mrf.mxu0 }
 0x2a4   : > { %v11138_v30 = vpop.f32.mrf.mxu0 }
 0x2a6   : > { %v11140_v42 = vpop.f32.mrf.mxu0 }
 0x2ab   : > { %v9016_v44 = vpop.f32.mrf.mxu0 }
 0x2ac   : > { %v4063_v4 = vadd.f32 %v9016_v44, %v3583_v17 }
 0x2ad   : > { %v3903_v47 = vpop.f32.mrf.mxu0 }
 0x2ae   : > { %v11148_v23 = vadd.f32 %v11145_v60, %v4063_v4  ;;  %v4062_v1 = vadd.f32 %v3903_v47, %v3578_v62  ;;  %v8966_v62 = vpop.f32.mrf.mxu1 }
 0x2af   : > { %v3603_v53 = vadd.f32 %v8966_v62, %v8910_v51 }
 0x2b0   : > { %v7948_v36 = vmul.f32 -1.442695, %v11148_v23  ;;  %v11152_v16 = vadd.f32 %v11145_v60, %v4062_v1  ;;  %v3597_v48 = vpop.f32.mrf.mxu1 }
 0x2b1   : > { %v3598_v35 = vadd.f32 %v3597_v48, %v3276_v58  ;;  %v4717_v58 = vld [vmem:[%s13700_s10 + $0x18] sm:$0xff] }
 0x2b2   : > { %9370 = vpow2.f32 %v7948_v36  ;;  %v7947_v54 = vmul.f32 -1.442695, %v11152_v16  ;;  %9118 = vmatprep.subr.mxu0 %v4717_v58 }
 0x2b3   : > { %v9019_v38 = vpop.f32.mrf.mxu0  ;;  %9119 = vmatpush3.msra.mxu0 %v4717_v58 }
 0x2b4   : > { %9372 = vpow2.f32 %v7947_v54  ;;  %v4065_v46 = vadd.f32 %v9019_v38, %v3593_v20 }
 0x2b5   : > { %v3913_v17 = vpop.f32.mrf.mxu0 }
 0x2b6   : > { %v11156_v29 = vadd.f32 %v11145_v60, %v4065_v46  ;;  %v4064_v44 = vadd.f32 %v3913_v17, %v3588_v40  ;;  %v8969_v46 = vpop.f32.mrf.mxu1 }
 0x2b8   : > { %v7950_v4 = vmul.f32 -1.442695, %v11156_v29  ;;  %v11160_v1 = vadd.f32 %v11145_v60, %v4064_v44  ;;  %v3607_v48 = vpop.f32.mrf.mxu1 }
 0x2ba   : > { %9374 = vpow2.f32 %v7950_v4  ;;  %v7949_v36 = vmul.f32 -1.442695, %v11160_v1  ;;  %v3613_v4 = vadd.f32 %v8969_v46, %v11090_v55 }
 0x2bb   : > { %v9022_v47 = vpop.f32.mrf.mxu0 }
 0x2bc   : > { %9376 = vpow2.f32 %v7949_v36  ;;  %v4067_v38 = vadd.f32 %v9022_v47, %v3603_v53 }
 0x2bd   : > { %v3923_v49 = vpop.f32.mrf.mxu0 }
 0x2be   : > { %v11164_v20 = vadd.f32 %v11145_v60, %v4067_v38  ;;  %v4066_v40 = vadd.f32 %v3923_v49, %v3598_v35  ;;  %v4716_v35 = vld [vmem:[%s13700_s10 + $0x10] sm:$0xff]  ;;  %v3608_v38 = vadd.f32 %v3607_v48, %v11092_v10  ;;  %v4714_v10 = vld [vmem:[%s13700_s10] sm:$0xff] }
 0x2bf   : > { %v9371_v54 = vpop.eup %9370  ;;  %9120 = vmatprep.subr.mxu0 %v4716_v35 }
 0x2c0   : > { %v4230_v17 = vadd.f32 1.0, %v9371_v54  ;;  %v7952_v44 = vmul.f32 -1.442695, %v11164_v20  ;;  %v11168_v51 = vadd.f32 %v11145_v60, %v4066_v40  ;;  %9121 = vmatpush3.msra.mxu0 %v4716_v35  ;;  %v4715_v40 = vld [vmem:[%s13700_s10 + $0x8] sm:$0xff] }
 0x2c1   : > { %v9373_v62 = vpop.eup %9372  ;;  %9122 = vmatprep.subr.mxu0 %v4715_v40 }
 0x2c2   : > { %9378 = vrcp.f32 %v4230_v17  ;;  %v4229_v53 = vadd.f32 1.0, %v9373_v62  ;;  %v7951_v36 = vmul.f32 -1.442695, %v11168_v51  ;;  %9123 = vmatpush3.msra.mxu0 %v4715_v40 }
 0x2c3   : > { %9380 = vpow2.f32 %v7952_v44  ;;  %v9025_v47 = vpop.f32.mrf.mxu0  ;;  %v8972_v44 = vpop.f32.mrf.mxu1  ;;  %9124 = vmatprep.subr.mxu0 %v4714_v10 }
 0x2c4   : > { %9382 = vrcp.f32 %v4229_v53  ;;  %v4069_v49 = vadd.f32 %v9025_v47, %v3613_v4  ;;  %9125 = vmatpush3.msra.mxu0 %v4714_v10 }
 0x2c5   : > { %9384 = vpow2.f32 %v7951_v36  ;;  %v3933_v55 = vpop.f32.mrf.mxu0  ;;  %v3623_v36 = vadd.f32 %v8972_v44, %v11094_v2  ;;  %v3617_v35 = vpop.f32.mrf.mxu1 }
 0x2c6   : > { %v11183_v54 = vadd.f32 %v11145_v60, %v4069_v49  ;;  %v4068_v46 = vadd.f32 %v3933_v55, %v3608_v38  ;;  %v3618_v49 = vadd.f32 %v3617_v35, %v11096_v63 }
 0x2c7   : > { %v9375_v17 = vpop.eup %9374  ;;  %v8975_v2 = vpop.f32.mrf.mxu1 }
 0x2c8   : > { %v4232_v62 = vadd.f32 1.0, %v9375_v17  ;;  %v7954_v58 = vmul.f32 -1.442695, %v11183_v54  ;;  %v11190_v4 = vadd.f32 %v11145_v60, %v4068_v46 }
 0x2c9   : > { %v9377_v53 = vpop.eup %9376 }
 0x2ca   : > { %9386 = vrcp.f32 %v4232_v62  ;;  %v4231_v48 = vadd.f32 1.0, %v9377_v53  ;;  %v7953_v47 = vmul.f32 -1.442695, %v11190_v4 }
 0x2cb   : > { %9388 = vpow2.f32 %v7954_v58  ;;  %v9028_v38 = vpop.f32.mrf.mxu0 }
 0x2cc   : > { %9390 = vrcp.f32 %v4231_v48  ;;  %v4071_v55 = vadd.f32 %v9028_v38, %v3623_v36  ;;  %v3633_v36 = vadd.f32 %v8975_v2, %v11098_v8  ;;  %v3627_v38 = vpop.f32.mrf.mxu1 }
 0x2cd   : > { %9392 = vpow2.f32 %v7953_v47  ;;  %v3943_v40 = vpop.f32.mrf.mxu0 }
 0x2ce   : > { %v11196_v46 = vadd.f32 %v11145_v60, %v4071_v55  ;;  %v4070_v17 = vadd.f32 %v3943_v40, %v3618_v49 }
 0x2cf   : > { %v11198_v10 = vpop.eup %9378 }
 0x2d0   : > { %v9381_v44 = vpop.eup %9380  ;;  %v7956_v62 = vmul.f32 -1.442695, %v11196_v46  ;;  %v11202_v53 = vadd.f32 %v11145_v60, %v4070_v17  ;;  %v4326_v49 = vmul.f32 %v11198_v10, %v11148_v23  ;;  %v3628_v17 = vadd.f32 %v3627_v38, %v11100_v41 }
 0x2d1   : > { %v11204_v58 = vpop.eup %9382  ;;  %v4234_v63 = vadd.f32 1.0, %v9381_v44 }
 0x2d2   : > { %v9385_v48 = vpop.eup %9384  ;;  %v4325_v47 = vmul.f32 %v11204_v58, %v11152_v16  ;;  %9394 = vpow2.f32 %v7956_v62  ;;  %v7955_v35 = vmul.f32 -1.442695, %v11202_v53  ;;  %4750 = vrot.lane.b32.xlu0 %v11204_v58, %s9507_s26  ;;  %v8978_v62 = vpop.f32.mrf.mxu1 }
 0x2d3   : > { %9396 = vrcp.f32 %v4234_v63  ;;  %v4233_v55 = vadd.f32 1.0, %v9385_v48  ;;  %v9031_v40 = vpop.f32.mrf.mxu0  ;;  %v3643_v38 = vadd.f32 %v8978_v62, %v11102_v6 }
 0x2d4   : > { %9398 = vpow2.f32 %v7955_v35  ;;  %v4073_v8 = vadd.f32 %v9031_v40, %v3633_v36  ;;  %9070 = vmatprep.mubr.msk.f32.mxu1 %vm2538_vm3, %v4325_v47  ;;  %v3637_v40 = vpop.f32.mrf.mxu1 }
 0x2d5   : > { %9400 = vrcp.f32 %v4233_v55  ;;  %v3953_v16 = vpop.f32.mrf.mxu0  ;;  %9071 = vmatmul.mubr.msk.f32.vlgmr.msra.gmra.mxu1 %vm2538_vm3, %v4326_v49 }
 0x2d6   : > { %v11218_v2 = vadd.f32 %v11145_v60, %v4073_v8  ;;  %v4072_v44 = vadd.f32 %v3953_v16, %v3628_v17  ;;  %4752 = vrot.lane.b32.xlu0 %v11198_v10, %s9507_s26 }
 0x2d7   : > { %v11222_v23 = vpop.eup %9386 }
 0x2d8   : > { %v9389_v63 = vpop.eup %9388  ;;  %v7958_v41 = vmul.f32 -1.442695, %v11218_v2  ;;  %v11226_v48 = vadd.f32 %v11145_v60, %v4072_v44  ;;  %v4328_v17 = vmul.f32 %v11222_v23, %v11156_v29  ;;  %v3638_v44 = vadd.f32 %v3637_v40, %v11104_v14 }
 0x2d9   : > { %v11228_v36 = vpop.eup %9390  ;;  %v4236_v47 = vadd.f32 1.0, %v9389_v63 }
 0x2da   : > { %v9393_v35 = vpop.eup %9392  ;;  %v4327_v49 = vmul.f32 %v11228_v36, %v11160_v1  ;;  %9402 = vpow2.f32 %v7958_v41  ;;  %v7957_v55 = vmul.f32 -1.442695, %v11226_v48  ;;  %4754 = vrot.lane.b32.xlu1 %v11228_v36, %s9507_s26  ;;  %v8981_v41 = vpop.f32.mrf.mxu1 }
 0x2db   : > { %9404 = vrcp.f32 %v4236_v47  ;;  %v4235_v8 = vadd.f32 1.0, %v9393_v35  ;;  %v9034_v16 = vpop.f32.mrf.mxu0  ;;  %v3653_v40 = vadd.f32 %v8981_v41, %v11106_v12 }
 0x2dc   : > { %9406 = vpow2.f32 %v7957_v55  ;;  %v4075_v6 = vadd.f32 %v9034_v16, %v3643_v38  ;;  %9073 = vmatprep.mubr.msk.f32.mxu1 %vm2538_vm3, %v4327_v49  ;;  %v3647_v16 = vpop.f32.mrf.mxu1 }
 0x2dd   : > { %9408 = vrcp.f32 %v4235_v8  ;;  %v3963_v1 = vpop.f32.mrf.mxu0  ;;  %9074 = vmatmul.mubr.msk.f32.gmra.mxu1 %vm2538_vm3, %v4328_v17 }
 0x2de   : > { %v11242_v62 = vadd.f32 %v11145_v60, %v4075_v6  ;;  %v4074_v63 = vadd.f32 %v3963_v1, %v3638_v44  ;;  %4756 = vrot.lane.b32.xlu1 %v11222_v23, %s9507_s26  ;;  %v3648_v1 = vadd.f32 %v3647_v16, %v11108_v18 }
 0x2df   : > { %v9395_v29 = vpop.eup %9394 }
 0x2e0   : > { %v11246_v47 = vpop.eup %9396  ;;  %v4238_v14 = vadd.f32 1.0, %v9395_v29  ;;  %v7960_v35 = vmul.f32 -1.442695, %v11242_v62  ;;  %v11250_v38 = vadd.f32 %v11145_v60, %v4074_v63 }
 0x2e1   : > { %v9399_v49 = vpop.eup %9398  ;;  %v4330_v12 = vmul.f32 %v11246_v47, %v11164_v20 }
 0x2e2   : > { %v11252_v55 = vpop.eup %9400  ;;  %9410 = vrcp.f32 %v4238_v14  ;;  %v4237_v17 = vadd.f32 1.0, %v9399_v49  ;;  %v7959_v8 = vmul.f32 -1.442695, %v11250_v38  ;;  %4760 = vrot.lane.b32.xlu1 %v11246_v47, %s9507_s26 }
 0x2e3   : > { %v4329_v44 = vmul.f32 %v11252_v55, %v11168_v51  ;;  %9412 = vpow2.f32 %v7960_v35  ;;  %4758 = vrot.lane.b32.xlu0 %v11252_v55, %s9507_s26  ;;  %v9037_v6 = vpop.f32.mrf.mxu0  ;;  %v8984_v35 = vpop.f32.mrf.mxu1 }
 0x2e4   : > { %9414 = vrcp.f32 %v4237_v17  ;;  %v4077_v63 = vadd.f32 %v9037_v6, %v3653_v40 }
 0x2e5   : > { %9416 = vpow2.f32 %v7959_v8  ;;  %9076 = vmatprep.mubr.msk.f32.mxu1 %vm2538_vm3, %v4329_v44  ;;  %v3973_v29 = vpop.f32.mrf.mxu0  ;;  %v3663_v8 = vadd.f32 %v8984_v35, %v11110_v21 }
 0x2e6   : > { %v11267_v41 = vadd.f32 %v11145_v60, %v4077_v63  ;;  %v4076_v51 = vadd.f32 %v3973_v29, %v3648_v1  ;;  %9077 = vmatmul.mubr.msk.f32.gmra.mxu1 %vm2538_vm3, %v4330_v12  ;;  %v3657_v1 = vpop.f32.mrf.mxu1 }
 0x2e7   : > { %v9403_v14 = vpop.eup %9402  ;;  %v3658_v29 = vadd.f32 %v3657_v1, %v11112_v25 }
 0x2e8   : > { %v11270_v49 = vpop.eup %9404  ;;  %v4240_v18 = vadd.f32 1.0, %v9403_v14  ;;  %v7962_v16 = vmul.f32 -1.442695, %v11267_v41  ;;  %v11274_v20 = vadd.f32 %v11145_v60, %v4076_v51 }
 0x2e9   : > { %v9407_v40 = vpop.eup %9406  ;;  %4764 = vrot.lane.b32.xlu1 %v11270_v49, %s9507_s26  ;;  %v4332_v51 = vmul.f32 %v11270_v49, %v11183_v54 }
 0x2ea   : > { %v11278_v17 = vpop.eup %9408  ;;  %9418 = vrcp.f32 %v4240_v18  ;;  %v4239_v44 = vadd.f32 1.0, %v9407_v40  ;;  %v7961_v6 = vmul.f32 -1.442695, %v11274_v20 }
 0x2eb   : > { %v4331_v12 = vmul.f32 %v11278_v17, %v11190_v4  ;;  %9420 = vpow2.f32 %v7962_v16  ;;  %4762 = vrot.lane.b32.xlu0 %v11278_v17, %s9507_s26  ;;  %v9040_v63 = vpop.f32.mrf.mxu0  ;;  %v8987_v16 = vpop.f32.mrf.mxu1 }
 0x2ec   : > { %9422 = vrcp.f32 %v4239_v44  ;;  %v4079_v21 = vadd.f32 %v9040_v63, %v3663_v8  ;;  %v3673_v1 = vadd.f32 %v8987_v16, %v11114_v27 }
 0x2ed   : > { %9424 = vpow2.f32 %v7961_v6  ;;  %9079 = vmatprep.mubr.msk.f32.mxu1 %vm2538_vm3, %v4331_v12  ;;  %v3983_v14 = vpop.f32.mrf.mxu0 }
 0x2ee   : > { %v11291_v35 = vadd.f32 %v11145_v60, %v4079_v21  ;;  %v4078_v4 = vadd.f32 %v3983_v14, %v3658_v29  ;;  %9080 = vmatmul.mubr.msk.f32.gmra.mxu1 %vm2538_vm3, %v4332_v51  ;;  %v3667_v29 = vpop.f32.mrf.mxu1 }
 0x2ef   : > { %v11294_v18 = vpop.eup %9410 }
 0x2f0   : > { %v9413_v40 = vpop.eup %9412  ;;  %v7964_v25 = vmul.f32 -1.442695, %v11291_v35  ;;  %v11298_v54 = vadd.f32 %v11145_v60, %v4078_v4  ;;  %4768 = vrot.lane.b32.xlu1 %v11294_v18, %s9507_s26  ;;  %v4334_v51 = vmul.f32 %v11294_v18, %v11196_v46  ;;  %v3668_v4 = vadd.f32 %v3667_v29, %v11116_v31  ;;  %v8990_v46 = vpop.f32.mrf.mxu1 }
 0x2f1   : > { %v11302_v8 = vpop.eup %9414  ;;  %v4242_v44 = vadd.f32 1.0, %v9413_v40  ;;  %v3683_v29 = vadd.f32 %v8990_v46, %v11118_v33 }
 0x2f2   : > { %v9417_v6 = vpop.eup %9416  ;;  %v4333_v12 = vmul.f32 %v11302_v8, %v11202_v53  ;;  %9426 = vpow2.f32 %v7964_v25  ;;  %v7963_v63 = vmul.f32 -1.442695, %v11298_v54  ;;  %4766 = vrot.lane.b32.xlu0 %v11302_v8, %s9507_s26 }
 0x2f3   : > { %9428 = vrcp.f32 %v4242_v44  ;;  %v4241_v21 = vadd.f32 1.0, %v9417_v6  ;;  %v9043_v14 = vpop.f32.mrf.mxu0 }
 0x2f4   : > { %9430 = vpow2.f32 %v7963_v63  ;;  %v4081_v27 = vadd.f32 %v9043_v14, %v3673_v1  ;;  %9082 = vmatprep.mubr.msk.f32.mxu1 %vm2538_vm3, %v4333_v12  ;;  %v3677_v14 = vpop.f32.mrf.mxu1 }
 0x2f5   : > { %9432 = vrcp.f32 %v4241_v21  ;;  %v3993_v53 = vpop.f32.mrf.mxu0  ;;  %9083 = vmatmul.mubr.msk.f32.gmra.mxu1 %vm2538_vm3, %v4334_v51 }
 0x2f6   : > { %v11316_v16 = vadd.f32 %v11145_v60, %v4081_v27  ;;  %v4080_v40 = vadd.f32 %v3993_v53, %v3668_v4  ;;  %v8993_v32 = vpop.f32.mrf.mxu1 }
 0x2f7   : > { %v11318_v25 = vpop.eup %9418 }
 0x2f8   : > { %v9421_v44 = vpop.eup %9420  ;;  %v7966_v6 = vmul.f32 -1.442695, %v11316_v16  ;;  %v11322_v31 = vadd.f32 %v11145_v60, %v4080_v40  ;;  %4772 = vrot.lane.b32.xlu1 %v11318_v25, %s9507_s26  ;;  %v4336_v4 = vmul.f32 %v11318_v25, %v11218_v2  ;;  %v3678_v40 = vadd.f32 %v3677_v14, %v11120_v37 }
 0x2f9   : > { %v11326_v1 = vpop.eup %9422  ;;  %v4244_v12 = vadd.f32 1.0, %v9421_v44 }
 0x2fa   : > { %v9425_v63 = vpop.eup %9424  ;;  %v4335_v51 = vmul.f32 %v11326_v1, %v11226_v48  ;;  %9434 = vpow2.f32 %v7966_v6  ;;  %v7965_v21 = vmul.f32 -1.442695, %v11322_v31  ;;  %4770 = vrot.lane.b32.xlu0 %v11326_v1, %s9507_s26 }
 0x2fb   : > { %9436 = vrcp.f32 %v4244_v12  ;;  %v4243_v27 = vadd.f32 1.0, %v9425_v63  ;;  %v9046_v53 = vpop.f32.mrf.mxu0 }
 0x2fc   : > { %9438 = vpow2.f32 %v7965_v21  ;;  %v4083_v33 = vadd.f32 %v9046_v53, %v3683_v29  ;;  %9085 = vmatprep.mubr.msk.f32.mxu1 %vm2538_vm3, %v4335_v51  ;;  %v3693_v21 = vadd.f32 %v8993_v32, %v11122_v39 }
 0x2fd   : > { %9440 = vrcp.f32 %v4243_v27  ;;  %v4003_v48 = vpop.f32.mrf.mxu0  ;;  %9086 = vmatmul.mubr.msk.f32.gmra.mxu1 %vm2538_vm3, %v4336_v4  ;;  %v3687_v27 = vpop.f32.mrf.mxu1 }
 0x2fe   : > { %v11340_v46 = vadd.f32 %v11145_v60, %v4083_v33  ;;  %v4082_v44 = vadd.f32 %v4003_v48, %v3678_v40  ;;  %v3688_v33 = vadd.f32 %v3687_v27, %v11124_v43 }
 0x2ff   : > { %v9427_v6 = vpop.eup %9426 }
 0x300   : > { %v11342_v2 = vpop.eup %9428  ;;  %v4246_v12 = vadd.f32 1.0, %v9427_v6  ;;  %v7968_v63 = vmul.f32 -1.442695, %v11340_v46  ;;  %v11346_v37 = vadd.f32 %v11145_v60, %v4082_v44 }
 0x301   : > { %v9431_v29 = vpop.eup %9430  ;;  %4776 = vrot.lane.b32.xlu1 %v11342_v2, %s9507_s26  ;;  %v4338_v48 = vmul.f32 %v11342_v2, %v11242_v62 }
 0x302   : > { %v11350_v51 = vpop.eup %9432  ;;  %9442 = vrcp.f32 %v4246_v12  ;;  %v4245_v14 = vadd.f32 1.0, %v9431_v29  ;;  %v7967_v4 = vmul.f32 -1.442695, %v11346_v37  ;;  %v8996_v12 = vpop.f32.mrf.mxu1 }
 0x303   : > { %v4337_v53 = vmul.f32 %v11350_v51, %v11250_v38  ;;  %9444 = vpow2.f32 %v7968_v63  ;;  %4774 = vrot.lane.b32.xlu0 %v11350_v51, %s9507_s26  ;;  %v9049_v40 = vpop.f32.mrf.mxu0 }
 0x304   : > { %9446 = vrcp.f32 %v4245_v14  ;;  %v4085_v32 = vadd.f32 %v9049_v40, %v3693_v21  ;;  %v3697_v40 = vpop.f32.mrf.mxu1 }
 0x305   : > { %9448 = vpow2.f32 %v7967_v4  ;;  %9088 = vmatprep.mubr.msk.f32.mxu1 %vm2538_vm3, %v4337_v53  ;;  %v4013_v39 = vpop.f32.mrf.mxu0  ;;  %v3703_v4 = vadd.f32 %v8996_v12, %v11126_v45 }
 0x306   : > { %v11363_v44 = vadd.f32 %v11145_v60, %v4085_v32  ;;  %v4084_v38 = vadd.f32 %v4013_v39, %v3688_v33  ;;  %9089 = vmatmul.mubr.msk.f32.gmra.mxu1 %vm2538_vm3, %v4338_v48  ;;  %v3698_v32 = vadd.f32 %v3697_v40, %v11128_v57 }
 0x307   : > { %v9435_v6 = vpop.eup %9434 }
 0x308   : > { %v11366_v63 = vpop.eup %9436  ;;  %v4248_v43 = vadd.f32 1.0, %v9435_v6  ;;  %v7970_v29 = vmul.f32 -1.442695, %v11363_v44  ;;  %v11370_v62 = vadd.f32 %v11145_v60, %v4084_v38 }
 0x309   : > { %v9439_v21 = vpop.eup %9438  ;;  %4780 = vrot.lane.b32.xlu1 %v11366_v63, %s9507_s26  ;;  %v4340_v39 = vmul.f32 %v11366_v63, %v11267_v41 }
 0x30a   : > { %v11374_v14 = vpop.eup %9440  ;;  %9450 = vrcp.f32 %v4248_v43  ;;  %v4247_v27 = vadd.f32 1.0, %v9439_v21  ;;  %v7969_v53 = vmul.f32 -1.442695, %v11370_v62  ;;  %v8999_v43 = vpop.f32.mrf.mxu1 }
 0x30b   : > { %v4339_v33 = vmul.f32 %v11374_v14, %v11274_v20  ;;  %9452 = vpow2.f32 %v7970_v29  ;;  %4778 = vrot.lane.b32.xlu0 %v11374_v14, %s9507_s26  ;;  %v9052_v48 = vpop.f32.mrf.mxu0 }
 0x30c   : > { %9454 = vrcp.f32 %v4247_v27  ;;  %v4087_v45 = vadd.f32 %v9052_v48, %v3703_v4  ;;  %v3707_v48 = vpop.f32.mrf.mxu1 }
 0x30d   : > { %9456 = vpow2.f32 %v7969_v53  ;;  %9091 = vmatprep.mubr.msk.f32.mxu1 %vm2538_vm3, %v4339_v33  ;;  %v4023_v38 = vpop.f32.mrf.mxu0  ;;  %v3713_v53 = vadd.f32 %v8999_v43, %v11130_v61 }
 0x30e   : > { %v11387_v6 = vadd.f32 %v11145_v60, %v4087_v45  ;;  %v4086_v20 = vadd.f32 %v4023_v38, %v3698_v32  ;;  %9092 = vmatmul.mubr.msk.f32.gmra.mxu1 %vm2538_vm3, %v4340_v39  ;;  %v3708_v38 = vadd.f32 %v3707_v48, %v11132_v5 }
 0x30f   : > { %v11390_v12 = vpop.eup %9442 }
 0x310   : > { %v9445_v29 = vpop.eup %9444  ;;  %v7972_v57 = vmul.f32 -1.442695, %v11387_v6  ;;  %v11394_v41 = vadd.f32 %v11145_v60, %v4086_v20  ;;  %4784 = vrot.lane.b32.xlu1 %v11390_v12, %s9507_s26  ;;  %v4342_v32 = vmul.f32 %v11390_v12, %v11291_v35  ;;  %v9002_v35 = vpop.f32.mrf.mxu1 }
 0x311   : > { %v11398_v21 = vpop.eup %9446  ;;  %v4250_v4 = vadd.f32 1.0, %v9445_v29 }
 0x312   : > { %v9449_v27 = vpop.eup %9448  ;;  %v4341_v40 = vmul.f32 %v11398_v21, %v11298_v54  ;;  %9458 = vpow2.f32 %v7972_v57  ;;  %v7971_v33 = vmul.f32 -1.442695, %v11394_v41  ;;  %4782 = vrot.lane.b32.xlu0 %v11398_v21, %s9507_s26 }
 0x313   : > { %9460 = vrcp.f32 %v4250_v4  ;;  %v4249_v39 = vadd.f32 1.0, %v9449_v27  ;;  %v9055_v45 = vpop.f32.mrf.mxu0 }
 0x314   : > { %9462 = vpow2.f32 %v7971_v33  ;;  %v4089_v61 = vadd.f32 %v9055_v45, %v3713_v53  ;;  %9094 = vmatprep.mubr.msk.f32.mxu1 %vm2538_vm3, %v4341_v40  ;;  %v3723_v33 = vadd.f32 %v9002_v35, %v11134_v11 }
 0x315   : > { %9464 = vrcp.f32 %v4249_v39  ;;  %v4033_v54 = vpop.f32.mrf.mxu0  ;;  %9095 = vmatmul.mubr.msk.f32.gmra.mxu1 %vm2538_vm3, %v4342_v32  ;;  %v3717_v39 = vpop.f32.mrf.mxu1 }
 0x316   : > { %v11412_v20 = vadd.f32 %v11145_v60, %v4089_v61  ;;  %v4088_v43 = vadd.f32 %v4033_v54, %v3708_v38  ;;  %v3718_v54 = vadd.f32 %v3717_v39, %v11136_v24 }
 0x317   : > { %v11414_v29 = vpop.eup %9450 }
 0x318   : > { %v9453_v57 = vpop.eup %9452  ;;  %v7974_v4 = vmul.f32 -1.442695, %v11412_v20  ;;  %v11418_v5 = vadd.f32 %v11145_v60, %v4088_v43  ;;  %4788 = vrot.lane.b32.xlu1 %v11414_v29, %s9507_s26  ;;  %v4344_v45 = vmul.f32 %v11414_v29, %v11316_v16 }
 0x319   : > { %v11422_v27 = vpop.eup %9454  ;;  %v4252_v53 = vadd.f32 1.0, %v9453_v57 }
 0x31a   : > { %v9457_v40 = vpop.eup %9456  ;;  %v4343_v48 = vmul.f32 %v11422_v27, %v11322_v31  ;;  %9466 = vpow2.f32 %v7974_v4  ;;  %v7973_v32 = vmul.f32 -1.442695, %v11418_v5  ;;  %4786 = vrot.lane.b32.xlu0 %v11422_v27, %s9507_s26  ;;  %v9005_v4 = vpop.f32.mrf.mxu1 }
 0x31b   : > { %9468 = vrcp.f32 %v4252_v53  ;;  %v4251_v38 = vadd.f32 1.0, %v9457_v40  ;;  %v9058_v61 = vpop.f32.mrf.mxu0 }
 0x31c   : > { %9470 = vpow2.f32 %v7973_v32  ;;  %v4091_v11 = vadd.f32 %v9058_v61, %v3723_v33  ;;  %9097 = vmatprep.mubr.msk.f32.mxu1 %vm2538_vm3, %v4343_v48  ;;  %v3733_v32 = vadd.f32 %v9005_v4, %v11138_v30 }
 0x31d   : > { %9472 = vrcp.f32 %v4251_v38  ;;  %v4043_v31 = vpop.f32.mrf.mxu0  ;;  %9098 = vmatmul.mubr.msk.f32.gmra.mxu1 %vm2538_vm3, %v4344_v45  ;;  %v3727_v38 = vpop.f32.mrf.mxu1 }
 0x31e   : > { %v11436_v43 = vadd.f32 %v11145_v60, %v4091_v11  ;;  %v4090_v35 = vadd.f32 %v4043_v31, %v3718_v54  ;;  %v3728_v11 = vadd.f32 %v3727_v38, %v11140_v42 }
 0x31f   : > { %v9459_v57 = vpop.eup %9458 }
 0x320   : > { %v11438_v16 = vpop.eup %9460  ;;  %v4254_v53 = vadd.f32 1.0, %v9459_v57  ;;  %v7976_v40 = vmul.f32 -1.442695, %v11436_v43  ;;  %v11442_v24 = vadd.f32 %v11145_v60, %v4090_v35 }
 0x321   : > { %v9463_v33 = vpop.eup %9462  ;;  %4792 = vrot.lane.b32.xlu1 %v11438_v16, %s9507_s26  ;;  %v4346_v31 = vmul.f32 %v11438_v16, %v11340_v46 }
 0x322   : > { %v11446_v48 = vpop.eup %9464  ;;  %9474 = vrcp.f32 %v4254_v53  ;;  %v4253_v39 = vadd.f32 1.0, %v9463_v33  ;;  %v7975_v45 = vmul.f32 -1.442695, %v11442_v24 }
 0x323   : > { %v4345_v61 = vmul.f32 %v11446_v48, %v11346_v37  ;;  %9476 = vpow2.f32 %v7976_v40  ;;  %4790 = vrot.lane.b32.xlu0 %v11446_v48, %s9507_s26  ;;  %v9061_v54 = vpop.f32.mrf.mxu0 }
 0x324   : > { %9478 = vrcp.f32 %v4253_v39  ;;  %v4093_v30 = vadd.f32 %v9061_v54, %v3733_v32 }
 0x325   : > { %9480 = vpow2.f32 %v7975_v45  ;;  %9100 = vmatprep.mubr.msk.f32.mxu1 %vm2538_vm3, %v4345_v61  ;;  %v4053_v35 = vpop.f32.mrf.mxu0 }
 0x326   : > { %v11459_v57 = vadd.f32 %v11145_v60, %v4093_v30  ;;  %v4092_v37 = vadd.f32 %v4053_v35, %v3728_v11  ;;  %9101 = vmatmul.mubr.msk.f32.gmra.mxu1 %vm2538_vm3, %v4346_v31 }
 0x327   : > { %v9467_v4 = vpop.eup %9466 }
 0x328   : > { %v11462_v53 = vpop.eup %9468  ;;  %v4256_v40 = vadd.f32 1.0, %v9467_v4  ;;  %v7978_v42 = vmul.f32 -1.442695, %v11459_v57  ;;  %v11466_v46 = vadd.f32 %v11145_v60, %v4092_v37 }
 0x329   : > { %v9471_v33 = vpop.eup %9470  ;;  %4796 = vrot.lane.b32.xlu1 %v11462_v53, %s9507_s26  ;;  %v4348_v60 = vmul.f32 %v11462_v53, %v11363_v44 }
 0x32a   : > { %v11470_v32 = vpop.eup %9472  ;;  %9482 = vrcp.f32 %v4256_v40  ;;  %v4255_v39 = vadd.f32 1.0, %v9471_v33  ;;  %v7977_v45 = vmul.f32 -1.442695, %v11466_v46 }
 0x32b   : > { %v4347_v38 = vmul.f32 %v11470_v32, %v11370_v62  ;;  %9484 = vpow2.f32 %v7978_v42  ;;  %4794 = vrot.lane.b32.xlu0 %v11470_v32, %s9507_s26 }
 0x32c   : > { %9486 = vrcp.f32 %v4255_v39 }
 0x32d   : > { %9488 = vpow2.f32 %v7977_v45  ;;  %9103 = vmatprep.mubr.msk.f32.mxu1 %vm2538_vm3, %v4347_v38 }
 0x32e   : > { %9104 = vmatmul.mubr.msk.f32.gmra.mxu1 %vm2538_vm3, %v4348_v60 }
 0x32f   : > { %v11481_v61 = vpop.eup %9474 }
 0x330   : > { %v9477_v54 = vpop.eup %9476  ;;  %4800 = vrot.lane.b32.xlu1 %v11481_v61, %s9507_s26  ;;  %v4350_v44 = vmul.f32 %v11481_v61, %v11387_v6 }
 0x331   : > { %v11485_v62 = vpop.eup %9478  ;;  %v4258_v11 = vadd.f32 1.0, %v9477_v54 }
 0x332   : > { %v9481_v31 = vpop.eup %9480  ;;  %v4349_v30 = vmul.f32 %v11485_v62, %v11394_v41  ;;  %4798 = vrot.lane.b32.xlu0 %v11485_v62, %s9507_s26  ;;  %v5510_v41 = vld [vmem:[%s13701_s11 + $0x50] sm:$0xff] }
 0x333   : > { %9490 = vrcp.f32 %v4258_v11  ;;  %v4257_v35 = vadd.f32 1.0, %v9481_v31  ;;  %5664 = vmatprep.subr.mxu0 %v5510_v41  ;;  %v5509_v11 = vld [vmem:[%s13701_s11 + $0x48] sm:$0xff] }
 0x334   : > { %9106 = vmatprep.mubr.msk.f32.mxu1 %vm2538_vm3, %v4349_v30  ;;  %v5507_v30 = vld [vmem:[%s13701_s11 + $0x38] sm:$0xff] }
 0x335   : > { %9492 = vrcp.f32 %v4257_v35  ;;  %9107 = vmatmul.mubr.msk.f32.gmra.mxu1 %vm2538_vm3, %v4350_v44 }
 0x337   : > { %v11495_v37 = vpop.eup %9482 }
 0x338   : > { %v9485_v4 = vpop.eup %9484  ;;  %4804 = vrot.lane.b32.xlu1 %v11495_v37, %s9507_s26  ;;  %v4352_v39 = vmul.f32 %v11495_v37, %v11412_v20 }
 0x339   : > { %v11502_v40 = vpop.eup %9486  ;;  %v4260_v6 = vadd.f32 1.0, %v9485_v4 }
 0x33a   : > { %v9489_v42 = vpop.eup %9488  ;;  %v4351_v33 = vmul.f32 %v11502_v40, %v11418_v5  ;;  %4802 = vrot.lane.b32.xlu0 %v11502_v40, %s9507_s26 }
 0x33b   : > { %9494 = vrcp.f32 %v4260_v6  ;;  %v4259_v45 = vadd.f32 1.0, %v9489_v42  ;;  %v5504_v6 = vld [vmem:[%s13701_s11 + $0x20] sm:$0xff] }
 0x33c   : > { %9109 = vmatprep.mubr.msk.f32.mxu1 %vm2538_vm3, %v4351_v33 }
 0x33d   : > { %9496 = vrcp.f32 %v4259_v45  ;;  %9110 = vmatmul.mubr.msk.f32.gmra.mxu1 %vm2538_vm3, %v4352_v39 }
 0x340   : > { %v11512_v38 = vpop.eup %9490 }
 0x341   : > { %4808 = vrot.lane.b32.xlu1 %v11512_v38, %s9507_s26  ;;  %v4354_v20 = vmul.f32 %v11512_v38, %v11436_v43  ;;  %v5506_v43 = vld [vmem:[%s13701_s11 + $0x30] sm:$0xff] }
 0x342   : > { %v11516_v60 = vpop.eup %9492 }
 0x343   : > { %v4353_v5 = vmul.f32 %v11516_v60, %v11442_v24  ;;  %4806 = vrot.lane.b32.xlu0 %v11516_v60, %s9507_s26 }
 0x344   : > { %v4751_v54 = vpop.permute.xlu0 %4750 }
 0x345   : > { %9112 = vmatprep.mubr.msk.f32.mxu1 %vm2538_vm3, %v4353_v5  ;;  %9126 = vmatprep.mubr.msk.f32.mxu0 %vm2538_vm3, %v4751_v54 }
 0x346   : > { %9113 = vmatmul.mubr.msk.f32.gmra.mxu1 %vm2538_vm3, %v4354_v20 }
 0x348   : > { %v11530_v31 = vpop.eup %9494  ;;  %v4753_v24 = vpop.permute.xlu0 %4752 }
 0x349   : > { %4812 = vrot.lane.b32.xlu1 %v11530_v31, %s9507_s26  ;;  %9127 = vmatmul.mubr.msk.f32.vlgmr.msra.gmra.mxu0 %vm2538_vm3, %v4753_v24  ;;  %v4356_v4 = vmul.f32 %v11530_v31, %v11459_v57  ;;  %v5501_v57 = vld [vmem:[%s13701_s11 + $0x8] sm:$0xff] }
 0x34a   : > { %v11541_v44 = vpop.eup %9496  ;;  %5665 = vmatpush1.msra.mxu0 %v5509_v11 }
 0x34b   : > { %v4355_v35 = vmul.f32 %v11541_v44, %v11466_v46  ;;  %4810 = vrot.lane.b32.xlu0 %v11541_v44, %s9507_s26  ;;  %5666 = vmatprep.subr.mxu0 %v5507_v30  ;;  %v5503_v46 = vld [vmem:[%s13701_s11 + $0x18] sm:$0xff] }
 0x34c   : > { %v4755_v41 = vpop.permute.xlu1 %4754  ;;  %5667 = vmatpush1.msra.mxu0 %v5506_v43 }
 0x34d   : > { %5514 = vrot.lane.b32.xlu1 %v11198_v10, %s9508_s29  ;;  %9115 = vmatprep.mubr.msk.f32.mxu1 %vm2538_vm3, %v4355_v35  ;;  %v5500_v10 = vld [vmem:[%s13701_s11] sm:$0xff] }
 0x34e   : > { %9116 = vmatmul.mubr.msk.f32.gmra.mxu1 %vm2538_vm3, %v4356_v4  ;;  %9129 = vmatprep.mubr.msk.f32.mxu0 %vm2538_vm3, %v4755_v41 }
 0x34f   : > { %5512 = vrot.lane.b32.xlu0 %v11204_v58, %s9508_s29  ;;  %5668 = vmatprep.subr.mxu0 %v5504_v6 }
 0x350   : > { %v4757_v42 = vpop.permute.xlu1 %4756  ;;  %5669 = vmatpush1.msra.mxu0 %v5503_v46 }
 0x351   : > { %5518 = vrot.lane.b32.xlu1 %v11222_v23, %s9508_s29  ;;  %9130 = vmatmul.mubr.msk.f32.gmra.mxu0 %vm2538_vm3, %v4757_v42 }
 0x352   : > { %5670 = vmatprep.subr.mxu0 %v5501_v57 }
 0x353   : > { %5516 = vrot.lane.b32.xlu0 %v11228_v36, %s9508_s29  ;;  %5671 = vmatpush1.msra.mxu0 %v5500_v10 }
 0x354   : > { %v4761_v58 = vpop.permute.xlu1 %4760 }
 0x355   : > { %v4759_v33 = vpop.permute.xlu0 %4758  ;;  %5522 = vrot.lane.b32.xlu1 %v11246_v47, %s9508_s29 }
 0x356   : > { %9132 = vmatprep.mubr.msk.f32.mxu0 %vm2538_vm3, %v4759_v33 }
 0x357   : > { %9133 = vmatmul.mubr.msk.f32.gmra.mxu0 %vm2538_vm3, %v4761_v58  ;;  %5520 = vrot.lane.b32.xlu0 %v11252_v55, %s9508_s29 }
 0x359   : > { %5526 = vrot.lane.b32.xlu1 %v11270_v49, %s9508_s29 }
 0x35b   : > { %5524 = vrot.lane.b32.xlu0 %v11278_v17, %s9508_s29  ;;  %v4765_v36 = vpop.permute.xlu1 %4764 }
 0x35d   : > { %v4763_v23 = vpop.permute.xlu0 %4762  ;;  %5530 = vrot.lane.b32.xlu1 %v11294_v18, %s9508_s29 }
 0x35e   : > { %9135 = vmatprep.mubr.msk.f32.mxu0 %vm2538_vm3, %v4763_v23 }
 0x35f   : > { %9136 = vmatmul.mubr.msk.f32.gmra.mxu0 %vm2538_vm3, %v4765_v36  ;;  %5528 = vrot.lane.b32.xlu0 %v11302_v8, %s9508_s29  ;;  %v13951_v36 = vmov 0.0  }
 0x361   : > { %5534 = vrot.lane.b32.xlu1 %v11318_v25, %s9508_s29  ;;  %v5146_v25 = vld [vmem:[%s13703_s13 + $0x58] sm:$0xff] }
 0x362   : > { %v4769_v55 = vpop.permute.xlu1 %4768  ;;  %9174 = vmatprep.subr.mxu1 %v5146_v25 }
 0x363   : > { %5532 = vrot.lane.b32.xlu0 %v11326_v1, %s9508_s29  ;;  %9175 = vmatpush3.msra.mxu1 %v5146_v25  ;;  %v5145_v1 = vld [vmem:[%s13703_s13 + $0x50] sm:$0xff] }
 0x364   : > { %v4767_v47 = vpop.permute.xlu0 %4766  ;;  %9176 = vmatprep.subr.mxu1 %v5145_v1 }
 0x365   : > { %5538 = vrot.lane.b32.xlu1 %v11342_v2, %s9508_s29  ;;  %9138 = vmatprep.mubr.msk.f32.mxu0 %vm2538_vm3, %v4767_v47  ;;  %v5144_v2 = vld [vmem:[%s13703_s13 + $0x48] sm:$0xff] }
 0x366   : > { %9139 = vmatmul.mubr.msk.f32.gmra.mxu0 %vm2538_vm3, %v4769_v55  ;;  %9177 = vmatpush3.msra.mxu1 %v5145_v1 }
 0x367   : > { %5536 = vrot.lane.b32.xlu0 %v11350_v51, %s9508_s29  ;;  %9178 = vmatprep.subr.mxu1 %v5144_v2 }
 0x368   : > { %9179 = vmatpush3.msra.mxu1 %v5144_v2 }
 0x369   : > { %5542 = vrot.lane.b32.xlu1 %v11366_v63, %s9508_s29  ;;  %v5143_v63 = vld [vmem:[%s13703_s13 + $0x40] sm:$0xff] }
 0x36a   : > { %v4773_v17 = vpop.permute.xlu1 %4772  ;;  %9180 = vmatprep.subr.mxu1 %v5143_v63 }
 0x36b   : > { %5540 = vrot.lane.b32.xlu0 %v11374_v14, %s9508_s29  ;;  %9181 = vmatpush3.msra.mxu1 %v5143_v63 }
 0x36c   : > { %v4771_v49 = vpop.permute.xlu0 %4770 }
 0x36d   : > { %5546 = vrot.lane.b32.xlu1 %v11390_v12, %s9508_s29  ;;  %9141 = vmatprep.mubr.msk.f32.mxu0 %vm2538_vm3, %v4771_v49  ;;  %v5142_v12 = vld [vmem:[%s13703_s13 + $0x38] sm:$0xff] }
 0x36e   : > { %9142 = vmatmul.mubr.msk.f32.gmra.mxu0 %vm2538_vm3, %v4773_v17  ;;  %9182 = vmatprep.subr.mxu1 %v5142_v12 }
 0x36f   : > { %5544 = vrot.lane.b32.xlu0 %v11398_v21, %s9508_s29  ;;  %v5141_v21 = vld [vmem:[%s13703_s13 + $0x30] sm:$0xff]  ;;  %9183 = vmatpush3.msra.mxu1 %v5142_v12 }
 0x370   : > { %9184 = vmatprep.subr.mxu1 %v5141_v21 }
 0x371   : > { %5550 = vrot.lane.b32.xlu1 %v11414_v29, %s9508_s29  ;;  %v5140_v29 = vld [vmem:[%s13703_s13 + $0x28] sm:$0xff]  ;;  %9185 = vmatpush3.msra.mxu1 %v5141_v21 }
 0x372   : > { %9186 = vmatprep.subr.mxu1 %v5140_v29 }
 0x373   : > { %5548 = vrot.lane.b32.xlu0 %v11422_v27, %s9508_s29  ;;  %v4777_v8 = vpop.permute.xlu1 %4776  ;;  %9187 = vmatpush3.msra.mxu1 %v5140_v29 }
 0x375   : > { %v4775_v18 = vpop.permute.xlu0 %4774  ;;  %5554 = vrot.lane.b32.xlu1 %v11438_v16, %s9508_s29 }
 0x376   : > { %9144 = vmatprep.mubr.msk.f32.mxu0 %vm2538_vm3, %v4775_v18  ;;  %v11741_v18 = vld [vmem:[%s13701_s11 + $0x58] sm:$0xff] }
 0x377   : > { %9145 = vmatmul.mubr.msk.f32.gmra.mxu0 %vm2538_vm3, %v4777_v8  ;;  %5552 = vrot.lane.b32.xlu0 %v11446_v48, %s9508_s29  ;;  %v5139_v48 = vld [vmem:[%s13703_s13 + $0x20] sm:$0xff] }
 0x378   : > { %9188 = vmatprep.subr.mxu1 %v5139_v48 }
 0x379   : > { %5558 = vrot.lane.b32.xlu1 %v11462_v53, %s9508_s29  ;;  %v5138_v53 = vld [vmem:[%s13703_s13 + $0x18] sm:$0xff]  ;;  %9189 = vmatpush3.msra.mxu1 %v5139_v48 }
 0x37a   : > { %9190 = vmatprep.subr.mxu1 %v5138_v53 }
 0x37b   : > { %5556 = vrot.lane.b32.xlu0 %v11470_v32, %s9508_s29  ;;  %v4781_v14 = vpop.permute.xlu1 %4780  ;;  %v5137_v32 = vld [vmem:[%s13703_s13 + $0x10] sm:$0xff]  ;;  %9191 = vmatpush3.msra.mxu1 %v5138_v53 }
 0x37c   : > { %9192 = vmatprep.subr.mxu1 %v5137_v32 }
 0x37d   : > { %v4779_v51 = vpop.permute.xlu0 %4778  ;;  %5562 = vrot.lane.b32.xlu1 %v11481_v61, %s9508_s29  ;;  %v5136_v61 = vld [vmem:[%s13703_s13 + $0x8] sm:$0xff]  ;;  %9193 = vmatpush3.msra.mxu1 %v5137_v32 }
 0x37e   : > { %9147 = vmatprep.mubr.msk.f32.mxu0 %vm2538_vm3, %v4779_v51  ;;  %9194 = vmatprep.subr.mxu1 %v5136_v61 }
 0x37f   : > { %9148 = vmatmul.mubr.msk.f32.gmra.mxu0 %vm2538_vm3, %v4781_v14  ;;  %5560 = vrot.lane.b32.xlu0 %v11485_v62, %s9508_s29 }
 0x380   : > { %9195 = vmatpush3.msra.mxu1 %v5136_v61 }
 0x381   : > { %5566 = vrot.lane.b32.xlu1 %v11495_v37, %s9508_s29 }
 0x382   : > { %v4785_v16 = vpop.permute.xlu1 %4784 }
 0x383   : > { %5564 = vrot.lane.b32.xlu0 %v11502_v40, %s9508_s29  ;;  %v5135_v40 = vld [vmem:[%s13703_s13] sm:$0xff] }
 0x384   : > { %v4783_v27 = vpop.permute.xlu0 %4782  ;;  %9196 = vmatprep.subr.mxu1 %v5135_v40 }
 0x385   : > { %5570 = vrot.lane.b32.xlu1 %v11512_v38, %s9508_s29  ;;  %9150 = vmatprep.mubr.msk.f32.mxu0 %vm2538_vm3, %v4783_v27 }
 0x386   : > { %9151 = vmatmul.mubr.msk.f32.gmra.mxu0 %vm2538_vm3, %v4785_v16  ;;  %9197 = vmatpush3.msra.mxu1 %v5135_v40 }
 0x387   : > { %5568 = vrot.lane.b32.xlu0 %v11516_v60, %s9508_s29  ;;  %9246 = vmatprep.subr.mxu1 %v11741_v18 }
 0x389   : > { %5574 = vrot.lane.b32.xlu1 %v11530_v31, %s9508_s29 }
 0x38a   : > { %v4789_v37 = vpop.permute.xlu1 %4788 }
 0x38b   : > { %5572 = vrot.lane.b32.xlu0 %v11541_v44, %s9508_s29  ;;  %s9358_s29 = smul.u32 24, %s14114_s18 }
 0x38c   : > { %v4787_v62 = vpop.permute.xlu0 %4786 }
 0x38d   : > { %9153 = vmatprep.mubr.msk.f32.mxu0 %vm2538_vm3, %v4787_v62  ;;  %s13401_s30 = scalar_lea.vmem %s13707_s17, %s9358_s29 }
 0x38e   : > { %9154 = vmatmul.mubr.msk.f32.gmra.mxu0 %vm2538_vm3, %v4789_v37 }
 0x393   : > { %v4793_v38 = vpop.permute.xlu1 %4792 }
 0x395   : > { %v4791_v39 = vpop.permute.xlu0 %4790  ;;  %v9072_v45 = vpop.f32.mrf.mxu1 }
 0x396   : > { %4683 = vst.msk [vmem:[%s11685_s25 + $0x8] sm:$0xff] %vm2538_vm3, %v9072_v45  ;;  %9156 = vmatprep.mubr.msk.f32.mxu0 %vm2538_vm3, %v4791_v39 }
 0x397   : > { %9157 = vmatmul.mubr.msk.f32.gmra.mxu0 %vm2538_vm3, %v4793_v38  ;;  %v4523_v60 = vpop.f32.mrf.mxu1 }
 0x398   : > { %4682 = vst.msk [vmem:[%s11685_s25] sm:$0xff] %vm2538_vm3, %v4523_v60 }
 0x39b   : > { %v4797_v54 = vpop.permute.xlu1 %4796 }
 0x39d   : > { %v4795_v5 = vpop.permute.xlu0 %4794  ;;  %v9075_v20 = vpop.f32.mrf.mxu1 }
 0x39e   : > { %4685 = vst.msk [vmem:[%s11685_s25 + $0x18] sm:$0xff] %vm2538_vm3, %v9075_v20  ;;  %9159 = vmatprep.mubr.msk.f32.mxu0 %vm2538_vm3, %v4795_v5 }
 0x39f   : > { %9160 = vmatmul.mubr.msk.f32.gmra.mxu0 %vm2538_vm3, %v4797_v54  ;;  %v4533_v11 = vpop.f32.mrf.mxu1 }
 0x3a0   : > { %4684 = vst.msk [vmem:[%s11685_s25 + $0x10] sm:$0xff] %vm2538_vm3, %v4533_v11 }
 0x3a2   : > { %v4801_v24 = vpop.permute.xlu1 %4800 }
 0x3a4   : > { %v4799_v31 = vpop.permute.xlu0 %4798 }
 0x3a5   : > { %9162 = vmatprep.mubr.msk.f32.mxu0 %vm2538_vm3, %v4799_v31 }
 0x3a6   : > { %v9078_v30 = vpop.f32.mrf.mxu1  ;;  %9163 = vmatmul.mubr.msk.f32.gmra.mxu0 %vm2538_vm3, %v4801_v24 }
 0x3a7   : > { %4687 = vst.msk [vmem:[%s11685_s25 + $0x28] sm:$0xff] %vm2538_vm3, %v9078_v30 }
 0x3a8   : > { %v4543_v43 = vpop.f32.mrf.mxu1 }
 0x3a9   : > { %4686 = vst.msk [vmem:[%s11685_s25 + $0x20] sm:$0xff] %vm2538_vm3, %v4543_v43 }
 0x3aa   : > { %v4805_v35 = vpop.permute.xlu1 %4804 }
 0x3ac   : > { %v4803_v44 = vpop.permute.xlu0 %4802 }
 0x3ad   : > { %9165 = vmatprep.mubr.msk.f32.mxu0 %vm2538_vm3, %v4803_v44 }
 0x3ae   : > { %v9081_v4 = vpop.f32.mrf.mxu1  ;;  %9166 = vmatmul.mubr.msk.f32.gmra.mxu0 %vm2538_vm3, %v4805_v35 }
 0x3af   : > { %4689 = vst.msk [vmem:[%s11685_s25 + $0x38] sm:$0xff] %vm2538_vm3, %v9081_v4 }
 0x3b0   : > { %v4553_v41 = vpop.f32.mrf.mxu1 }
 0x3b1   : > { %4688 = vst.msk [vmem:[%s11685_s25 + $0x30] sm:$0xff] %vm2538_vm3, %v4553_v41 }
 0x3b3   : > { %v4809_v57 = vpop.permute.xlu1 %4808 }
 0x3b5   : > { %v4807_v6 = vpop.permute.xlu0 %4806  ;;  %v9084_v46 = vpop.f32.mrf.mxu1 }
 0x3b6   : > { %4691 = vst.msk [vmem:[%s11685_s25 + $0x48] sm:$0xff] %vm2538_vm3, %v9084_v46  ;;  %9168 = vmatprep.mubr.msk.f32.mxu0 %vm2538_vm3, %v4807_v6 }
 0x3b7   : > { %9169 = vmatmul.mubr.msk.f32.gmra.mxu0 %vm2538_vm3, %v4809_v57  ;;  %v4563_v42 = vpop.f32.mrf.mxu1 }
 0x3b8   : > { %4690 = vst.msk [vmem:[%s11685_s25 + $0x40] sm:$0xff] %vm2538_vm3, %v4563_v42 }
 0x3bb   : > { %v4813_v33 = vpop.permute.xlu1 %4812 }
 0x3bd   : > { %v4811_v10 = vpop.permute.xlu0 %4810  ;;  %v9087_v58 = vpop.f32.mrf.mxu1 }
 0x3be   : > { %4693 = vst.msk [vmem:[%s11685_s25 + $0x58] sm:$0xff] %vm2538_vm3, %v9087_v58  ;;  %9171 = vmatprep.mubr.msk.f32.mxu0 %vm2538_vm3, %v4811_v10  ;;  %v5508_v10 = vld [vmem:[%s13701_s11 + $0x40] sm:$0xff] }
 0x3bf   : > { %9172 = vmatmul.mubr.msk.f32.gmra.mxu0 %vm2538_vm3, %v4813_v33  ;;  %v4573_v23 = vpop.f32.mrf.mxu1  ;;  %v11729_v55 = vpop.permute.xlu1 %5514 }
 0x3c0   : > { %4692 = vst.msk [vmem:[%s11685_s25 + $0x50] sm:$0xff] %vm2538_vm3, %v4573_v23  ;;  %5704 = vmatprep.mubr.f32.mxu0 %v13951_v36  ;;  %v5502_v23 = vld [vmem:[%s13701_s11 + $0x10] sm:$0xff] }
 0x3c1   : > { %v11724_v47 = vpop.permute.xlu0 %5512 }
 0x3c3   : > { %8075 = vmatmul.mubr.msk.f32.vlgmr.msra.gmra.mxu0 %vm2538_vm3, %v11724_v47  ;;  %v11749_v25 = vpop.permute.xlu1 %5518 }
 0x3c4   : > { %5710 = vmatprep.mubr.f32.mxu0 %v13951_v36 }
 0x3c5   : > { %v11743_v8 = vpop.permute.xlu0 %5516 }
 0x3c6   : > { %v9090_v49 = vpop.f32.mrf.mxu1 }
 0x3c7   : > { %4695 = vst.msk [vmem:[%s11685_s25 + $0x68] sm:$0xff] %vm2538_vm3, %v9090_v49  ;;  %8076 = vmatmul.mubr.msk.f32.gmra.mxu0 %vm2538_vm3, %v11729_v55  ;;  %v11763_v14 = vpop.permute.xlu1 %5522 }
 0x3c8   : > { %v4583_v17 = vpop.f32.mrf.mxu1  ;;  %5716 = vmatprep.mubr.f32.mxu0 %v13951_v36 }
 0x3c9   : > { %4694 = vst.msk [vmem:[%s11685_s25 + $0x60] sm:$0xff] %vm2538_vm3, %v4583_v17  ;;  %v11758_v51 = vpop.permute.xlu0 %5520 }
 0x3cb   : > { %8077 = vmatmul.mubr.msk.f32.gmra.mxu0 %vm2538_vm3, %v11743_v8  ;;  %v11777_v27 = vpop.permute.xlu1 %5526 }
 0x3cc   : > { %5722 = vmatprep.mubr.f32.mxu0 %v13951_v36 }
 0x3cd   : > { %v11772_v21 = vpop.permute.xlu0 %5524 }
 0x3ce   : > { %v9093_v1 = vpop.f32.mrf.mxu1 }
 0x3cf   : > { %4697 = vst.msk [vmem:[%s11685_s25 + $0x78] sm:$0xff] %vm2538_vm3, %v9093_v1  ;;  %8078 = vmatmul.mubr.msk.f32.gmra.mxu0 %vm2538_vm3, %v11749_v25  ;;  %v11791_v53 = vpop.permute.xlu1 %5530  ;;  %v6264_v1 = vld [vmem:[%s13704_s14 + $0x170] sm:$0xff] }
 0x3d0   : > { %v4593_v2 = vpop.f32.mrf.mxu1  ;;  %5728 = vmatprep.mubr.f32.mxu0 %v13951_v36 }
 0x3d1   : > { %4696 = vst.msk [vmem:[%s11685_s25 + $0x70] sm:$0xff] %vm2538_vm3, %v4593_v2  ;;  %v11786_v48 = vpop.permute.xlu0 %5528 }
 0x3d3   : > { %8079 = vmatmul.mubr.msk.f32.gmra.mxu0 %vm2538_vm3, %v11758_v51  ;;  %v11805_v37 = vpop.permute.xlu1 %5534 }
 0x3d4   : > { %5734 = vmatprep.mubr.f32.mxu0 %v13951_v36 }
 0x3d5   : > { %v9096_v63 = vpop.f32.mrf.mxu1  ;;  %v11800_v62 = vpop.permute.xlu0 %5532 }
 0x3d6   : > { %4699 = vst.msk [vmem:[%s11685_s25 + $0x88] sm:$0xff] %vm2538_vm3, %v9096_v63 }
 0x3d7   : > { %8080 = vmatmul.mubr.msk.f32.gmra.mxu0 %vm2538_vm3, %v11763_v14  ;;  %v4603_v12 = vpop.f32.mrf.mxu1  ;;  %v11819_v60 = vpop.permute.xlu1 %5538 }
 0x3d8   : > { %4698 = vst.msk [vmem:[%s11685_s25 + $0x80] sm:$0xff] %vm2538_vm3, %v4603_v12  ;;  %5740 = vmatprep.mubr.f32.mxu0 %v13951_v36 }
 0x3d9   : > { %v11814_v45 = vpop.permute.xlu0 %5536 }
 0x3db   : > { %8081 = vmatmul.mubr.msk.f32.gmra.mxu0 %vm2538_vm3, %v11772_v21  ;;  %v11833_v11 = vpop.permute.xlu1 %5542 }
 0x3dc   : > { %5746 = vmatprep.mubr.f32.mxu0 %v13951_v36 }
 0x3dd   : > { %v9099_v29 = vpop.f32.mrf.mxu1  ;;  %v11828_v20 = vpop.permute.xlu0 %5540 }
 0x3de   : > { %4701 = vst.msk [vmem:[%s11685_s25 + $0x98] sm:$0xff] %vm2538_vm3, %v9099_v29 }
 0x3df   : > { %8082 = vmatmul.mubr.msk.f32.gmra.mxu0 %vm2538_vm3, %v11777_v27  ;;  %v4613_v16 = vpop.f32.mrf.mxu1  ;;  %v11847_v30 = vpop.permute.xlu1 %5546 }
 0x3e0   : > { %4700 = vst.msk [vmem:[%s11685_s25 + $0x90] sm:$0xff] %vm2538_vm3, %v4613_v16  ;;  %5752 = vmatprep.mubr.f32.mxu0 %v13951_v36 }
 0x3e1   : > { %v11842_v24 = vpop.permute.xlu0 %5544 }
 0x3e3   : > { %8083 = vmatmul.mubr.msk.f32.gmra.mxu0 %vm2538_vm3, %v11786_v48  ;;  %v11863_v57 = vpop.permute.xlu1 %5550 }
 0x3e4   : > { %5758 = vmatprep.mubr.f32.mxu0 %v13951_v36 }
 0x3e5   : > { %v11856_v4 = vpop.permute.xlu0 %5548 }
 0x3e6   : > { %v9102_v32 = vpop.f32.mrf.mxu1 }
 0x3e7   : > { %4703 = vst.msk [vmem:[%s11685_s25 + $0xa8] sm:$0xff] %vm2538_vm3, %v9102_v32  ;;  %8084 = vmatmul.mubr.msk.f32.gmra.mxu0 %vm2538_vm3, %v11791_v53  ;;  %v11894_v2 = vpop.permute.xlu1 %5554 }
 0x3e8   : > { %v4623_v61 = vpop.f32.mrf.mxu1  ;;  %5764 = vmatprep.mubr.f32.mxu0 %v13951_v36 }
 0x3e9   : > { %4702 = vst.msk [vmem:[%s11685_s25 + $0xa0] sm:$0xff] %vm2538_vm3, %v4623_v61  ;;  %v11881_v33 = vpop.permute.xlu0 %5552 }
 0x3eb   : > { %8085 = vmatmul.mubr.msk.f32.gmra.mxu0 %vm2538_vm3, %v11800_v62  ;;  %v11910_v16 = vpop.permute.xlu1 %5558 }
 0x3ec   : > { %5770 = vmatprep.mubr.f32.mxu0 %v13951_v36 }
 0x3ee   : > { %v9105_v40 = vpop.f32.mrf.mxu1 }
 0x3ef   : > { %4705 = vst.msk [vmem:[%s11685_s25 + $0xb8] sm:$0xff] %vm2538_vm3, %v9105_v40  ;;  %8086 = vmatmul.mubr.msk.f32.gmra.mxu0 %vm2538_vm3, %v11805_v37 }
 0x3f0   : > { %v4633_v39 = vpop.f32.mrf.mxu1  ;;  %5776 = vmatprep.mubr.f32.mxu0 %v13951_v36 }
 0x3f1   : > { %4704 = vst.msk [vmem:[%s11685_s25 + $0xb0] sm:$0xff] %vm2538_vm3, %v4633_v39  ;;  %v11924_v39 = vpop.permute.xlu1 %5562 }
 0x3f3   : > { %8087 = vmatmul.mubr.msk.f32.gmra.mxu0 %vm2538_vm3, %v11814_v45 }
 0x3f4   : > { %5782 = vmatprep.mubr.f32.mxu0 %v13951_v36 }
 0x3f5   : > { %v9108_v38 = vpop.f32.mrf.mxu1 }
 0x3f6   : > { %4707 = vst.msk [vmem:[%s11685_s25 + $0xc8] sm:$0xff] %vm2538_vm3, %v9108_v38 }
 0x3f7   : > { %8088 = vmatmul.mubr.msk.f32.gmra.mxu0 %vm2538_vm3, %v11819_v60  ;;  %v4643_v5 = vpop.f32.mrf.mxu1 }
 0x3f8   : > { %4706 = vst.msk [vmem:[%s11685_s25 + $0xc0] sm:$0xff] %vm2538_vm3, %v4643_v5  ;;  %5788 = vmatprep.mubr.f32.mxu0 %v13951_v36 }
 0x3fb   : > { %8089 = vmatmul.mubr.msk.f32.gmra.mxu0 %vm2538_vm3, %v11828_v20 }
 0x3fc   : > { %5794 = vmatprep.mubr.f32.mxu0 %v13951_v36 }
 0x3fd   : > { %v9111_v54 = vpop.f32.mrf.mxu1 }
 0x3fe   : > { %4709 = vst.msk [vmem:[%s11685_s25 + $0xd8] sm:$0xff] %vm2538_vm3, %v9111_v54 }
 0x3ff   : > { %8090 = vmatmul.mubr.msk.f32.gmra.mxu0 %vm2538_vm3, %v11833_v11  ;;  %v4653_v31 = vpop.f32.mrf.mxu1 }
 0x400   : > { %4708 = vst.msk [vmem:[%s11685_s25 + $0xd0] sm:$0xff] %vm2538_vm3, %v4653_v31  ;;  %5800 = vmatprep.mubr.f32.mxu0 %v13951_v36  ;;  %v11938_v31 = vpop.permute.xlu1 %5566 }
 0x403   : > { %8091 = vmatmul.mubr.msk.f32.gmra.mxu0 %vm2538_vm3, %v11842_v24 }
 0x404   : > { %5806 = vmatprep.mubr.f32.mxu0 %v13951_v36 }
 0x406   : > { %v9114_v43 = vpop.f32.mrf.mxu1 }
 0x407   : > { %4711 = vst.msk [vmem:[%s11685_s25 + $0xe8] sm:$0xff] %vm2538_vm3, %v9114_v43  ;;  %8092 = vmatmul.mubr.msk.f32.gmra.mxu0 %vm2538_vm3, %v11847_v30 }
 0x408   : > { %v4663_v44 = vpop.f32.mrf.mxu1  ;;  %5812 = vmatprep.mubr.f32.mxu0 %v13951_v36 }
 0x409   : > { %4710 = vst.msk [vmem:[%s11685_s25 + $0xe0] sm:$0xff] %vm2538_vm3, %v4663_v44  ;;  %v9128_v35 = vpop.f32.mrf.mxu0 }
 0x40a   : > { %v5104_v46 = vmul.f32 %v9128_v35, %v10266_v50  ;;  %v5505_v50 = vld [vmem:[%s13701_s11 + $0x28] sm:$0xff] }
 0x40b   : > { %8093 = vmatmul.mubr.msk.f32.gmra.mxu0 %vm2538_vm3, %v11856_v4  ;;  %v4944_v41 = vpop.f32.mrf.mxu0 }
 0x40c   : > { %v5103_v6 = vmul.f32 %v4944_v41, %v10270_v52  ;;  %5818 = vmatprep.mubr.f32.mxu0 %v13951_v36  ;;  %v11952_v41 = vpop.permute.xlu1 %5570 }
 0x40e   : > { %v9117_v42 = vpop.f32.mrf.mxu1  ;;  %9198 = vmatprep.mubr.msk.f32.mxu1 %vm2084_vm2, %v5103_v6 }
 0x40f   : > { %4713 = vst.msk [vmem:[%s11685_s25 + $0xf8] sm:$0xff] %vm2538_vm3, %v9117_v42  ;;  %8094 = vmatmul.mubr.msk.f32.gmra.mxu0 %vm2538_vm3, %v11863_v57  ;;  %9199 = vmatmul.mubr.msk.f32.vlgmr.msra.gmra.mxu1 %vm2084_vm2, %v5104_v46 }
 0x410   : > { %v4673_v52 = vpop.f32.mrf.mxu1  ;;  %5824 = vmatprep.mubr.f32.mxu0 %v13951_v36  ;;  %9247 = vmatpush3.msra.mxu1 %v11741_v18 }
 0x411   : > { %4712 = vst.msk [vmem:[%s11685_s25 + $0xf0] sm:$0xff] %vm2538_vm3, %v4673_v52  ;;  %v9131_v58 = vpop.f32.mrf.mxu0  ;;  %9248 = vmatprep.subr.mxu1 %v5508_v10 }
 0x412   : > { %9249 = vmatpush3.msra.mxu1 %v5508_v10  ;;  %v5106_v18 = vmul.f32 %v9131_v58, %v10278_v56  ;;  %v11966_v10 = vpop.permute.xlu1 %5574 }
 0x413   : > { %8095 = vmatmul.mubr.msk.f32.gmra.mxu0 %vm2538_vm3, %v11881_v33  ;;  %v4954_v49 = vpop.f32.mrf.mxu0  ;;  %9250 = vmatprep.subr.mxu1 %v5505_v50 }
 0x414   : > { %v5105_v17 = vmul.f32 %v4954_v49, %v10286_v59  ;;  %5830 = vmatprep.mubr.f32.mxu0 %v13951_v36  ;;  %9251 = vmatpush3.msra.mxu1 %v5505_v50  ;;  %v11901_v59 = vpop.permute.xlu0 %5556  ;;  %v13952_v50 = vld [vmem:[#allocation2_spill] sm:$0xff] }
 0x415   : > { %9252 = vmatprep.subr.mxu1 %v5502_v23 }
 0x416   : > { %9201 = vmatprep.mubr.msk.f32.mxu1 %vm2084_vm2, %v5105_v17  ;;  %9253 = vmatpush3.msra.mxu1 %v5502_v23  ;;  %v13953_v17 = vld [vmem:[#allocation4_spill] sm:$0xff] }
 0x417   : > { %v9134_v63 = vpop.f32.mrf.mxu0  ;;  %8096 = vmatmul.mubr.msk.f32.gmra.mxu0 %vm2538_vm3, %v11894_v2  ;;  %9202 = vmatmul.mubr.msk.f32.gmra.mxu1 %vm2084_vm2, %v5106_v18 }
 0x418   : > { %5836 = vmatprep.mubr.f32.mxu0 %v13951_v36  ;;  %6422 = vmatprep.subr.mxu1 %v6264_v1  ;;  %v5108_v29 = vmul.f32 %v9134_v63, %v10299_v0  ;;  %v11915_v61 = vpop.permute.xlu0 %5560  ;;  %v13954_v1 = vld [vmem:[#allocation3_spill] sm:$0xff] }
 0x419   : > { %v4964_v56 = vpop.f32.mrf.mxu0 }
 0x41a   : > { %v5107_v12 = vmul.f32 %v4964_v56, %v10307_v3 }
 0x41b   : > { %8097 = vmatmul.mubr.msk.f32.gmra.mxu0 %vm2538_vm3, %v11901_v59 }
 0x41c   : > { %9204 = vmatprep.mubr.msk.f32.mxu1 %vm2084_vm2, %v5107_v12  ;;  %5842 = vmatprep.mubr.f32.mxu0 %v13951_v36 }
 0x41d   : > { %9205 = vmatmul.mubr.msk.f32.gmra.mxu1 %vm2084_vm2, %v5108_v29  ;;  %v6323_v29 = vld [vmem:[%s13704_s14 + $0x348] sm:$0xff] }
 0x41f   : > { %v9137_v32 = vpop.f32.mrf.mxu0  ;;  %8098 = vmatmul.mubr.msk.f32.gmra.mxu0 %vm2538_vm3, %v11910_v16 }
 0x420   : > { %5848 = vmatprep.mubr.f32.mxu0 %v13951_v36  ;;  %v5110_v40 = vmul.f32 %v9137_v32, %v10316_v7  ;;  %v13955_v32 = vld [vmem:[#allocation6_spill] sm:$0xff] }
 0x421   : > { %v4974_v3 = vpop.f32.mrf.mxu0 }
 0x422   : > { %v5109_v0 = vmul.f32 %v4974_v3, %v10321_v9  ;;  %v11930_v9 = vpop.permute.xlu0 %5564 }
 0x423   : > { %8099 = vmatmul.mubr.msk.f32.gmra.mxu0 %vm2538_vm3, %v11915_v61 }
 0x424   : > { %9207 = vmatprep.mubr.msk.f32.mxu1 %vm2084_vm2, %v5109_v0  ;;  %5854 = vmatprep.mubr.f32.mxu0 %v13951_v36  ;;  %v13956_v0 = vld [vmem:[#allocation5_spill] sm:$0xff] }
 0x425   : > { %9208 = vmatmul.mubr.msk.f32.gmra.mxu1 %vm2084_vm2, %v5110_v40 }
 0x426   : > { %v9140_v38 = vpop.f32.mrf.mxu0  ;;  %v11944_v44 = vpop.permute.xlu0 %5568 }
 0x427   : > { %8100 = vmatmul.mubr.msk.f32.gmra.mxu0 %vm2538_vm3, %v11924_v39  ;;  %v5112_v54 = vmul.f32 %v9140_v38, %v10330_v13 }
 0x428   : > { %v4984_v5 = vpop.f32.mrf.mxu0  ;;  %5860 = vmatprep.mubr.f32.mxu0 %v13951_v36 }
 0x429   : > { %v5111_v7 = vmul.f32 %v4984_v5, %v10335_v15 }
 0x42a   : > { %v11957_v46 = vpop.permute.xlu0 %5572 }
 0x42b   : > { %8101 = vmatmul.mubr.msk.f32.gmra.mxu0 %vm2538_vm3, %v11930_v9  ;;  %9210 = vmatprep.mubr.msk.f32.mxu1 %vm2084_vm2, %v5111_v7  ;;  %v13957_v7 = vld [vmem:[#allocation8_spill] sm:$0xff] }
 0x42c   : > { %9211 = vmatmul.mubr.msk.f32.gmra.mxu1 %vm2084_vm2, %v5112_v54  ;;  %5866 = vmatprep.mubr.f32.mxu0 %v13951_v36 }
 0x42e   : > { %v9143_v43 = vpop.f32.mrf.mxu0 }
 0x42f   : > { %8102 = vmatmul.mubr.msk.f32.gmra.mxu0 %vm2538_vm3, %v11938_v31  ;;  %v5114_v35 = vmul.f32 %v9143_v43, %v10344_v19  ;;  %v13958_v43 = vld [vmem:[#allocation7_spill] sm:$0xff] }
 0x430   : > { %v4994_v15 = vpop.f32.mrf.mxu0  ;;  %5872 = vmatprep.mubr.f32.mxu0 %v13951_v36 }
 0x431   : > { %v5113_v13 = vmul.f32 %v4994_v15, %v10350_v22 }
 0x433   : > { %8103 = vmatmul.mubr.msk.f32.gmra.mxu0 %vm2538_vm3, %v11944_v44  ;;  %9213 = vmatprep.mubr.msk.f32.mxu1 %vm2084_vm2, %v5113_v13 }
 0x434   : > { %9214 = vmatmul.mubr.msk.f32.gmra.mxu1 %vm2084_vm2, %v5114_v35  ;;  %5878 = vmatprep.mubr.f32.mxu0 %v13951_v36 }
 0x437   : > { %v9146_v6 = vpop.f32.mrf.mxu0  ;;  %8104 = vmatmul.mubr.msk.f32.gmra.mxu0 %vm2538_vm3, %v11952_v41 }
 0x438   : > { %5884 = vmatprep.mubr.f32.mxu0 %v13951_v36  ;;  %v5116_v42 = vmul.f32 %v9146_v6, %v10358_v26  ;;  %v13959_v6 = vld [vmem:[#allocation10_spill] sm:$0xff] }
 0x439   : > { %v5004_v22 = vpop.f32.mrf.mxu0 }
 0x43a   : > { %v5115_v19 = vmul.f32 %v5004_v22, %v10363_v28 }
 0x43b   : > { %8105 = vmatmul.mubr.msk.f32.gmra.mxu0 %vm2538_vm3, %v11957_v46 }
 0x43c   : > { %9216 = vmatprep.mubr.msk.f32.mxu1 %vm2084_vm2, %v5115_v19  ;;  %5890 = vmatprep.mubr.f32.mxu0 %v13951_v36  ;;  %v13960_v19 = vld [vmem:[#allocation9_spill] sm:$0xff] }
 0x43d   : > { %9217 = vmatmul.mubr.msk.f32.gmra.mxu1 %vm2084_vm2, %v5116_v42 }
 0x43f   : > { %v9149_v52 = vpop.f32.mrf.mxu0  ;;  %8106 = vmatmul.mubr.msk.f32.gmra.mxu0 %vm2538_vm3, %v11966_v10 }
 0x440   : > { %6743 = vmatprep.mubr.f32.mxu0 %v13951_v36  ;;  %v5118_v58 = vmul.f32 %v9149_v52, %v13952_v50 }
 0x441   : > { %v5014_v28 = vpop.f32.mrf.mxu0 }
 0x442   : > { %v5117_v26 = vmul.f32 %v5014_v28, %v10377_v34  ;;  %v6324_v34 = vld [vmem:[%s13704_s14 + $0x350] sm:$0xff] }
 0x443   : > { %6703 = vmatprep.subr.mxu0 %v6324_v34  ;;  %v13964_v34 = vld [vmem:[#allocation13_spill] sm:$0xff] }
 0x444   : > { %9219 = vmatprep.mubr.msk.f32.mxu1 %vm2084_vm2, %v5117_v26  ;;  %6704 = vmatpush1.msra.mxu0 %v6323_v29  ;;  %v13961_v26 = vld [vmem:[#allocation12_spill] sm:$0xff] }
 0x445   : > { %9220 = vmatmul.mubr.msk.f32.gmra.mxu1 %vm2084_vm2, %v5118_v58  ;;  %v13962_v58 = vld [vmem:[#allocation11_spill] sm:$0xff] }
 0x446   : > { %v9152_v23 = vpop.f32.mrf.mxu0 }
 0x447   : > { %v5120_v63 = vmul.f32 %v9152_v23, %v13954_v1  ;;  %v6320_v1 = vld [vmem:[%s13704_s14 + $0x330] sm:$0xff] }
 0x448   : > { %v5024_v49 = vpop.f32.mrf.mxu0 }
 0x449   : > { %v5119_v18 = vmul.f32 %v5024_v49, %v13953_v17  ;;  %v6321_v17 = vld [vmem:[%s13704_s14 + $0x338] sm:$0xff] }
 0x44a   : > { %6705 = vmatprep.subr.mxu0 %v6321_v17 }
 0x44b   : > { %9222 = vmatprep.mubr.msk.f32.mxu1 %vm2084_vm2, %v5119_v18  ;;  %6706 = vmatpush1.msra.mxu0 %v6320_v1 }
 0x44c   : > { %9223 = vmatmul.mubr.msk.f32.gmra.mxu1 %vm2084_vm2, %v5120_v63  ;;  %v13963_v63 = vld [vmem:[#allocation14_spill] sm:$0xff] }
 0x44e   : > { %v9155_v56 = vpop.f32.mrf.mxu0 }
 0x44f   : > { %v5122_v40 = vmul.f32 %v9155_v56, %v13956_v0 }
 0x450   : > { %v5034_v12 = vpop.f32.mrf.mxu0 }
 0x451   : > { %v5121_v3 = vmul.f32 %v5034_v12, %v13955_v32 }
 0x453   : > { %9225 = vmatprep.mubr.msk.f32.mxu1 %vm2084_vm2, %v5121_v3  ;;  %v13965_v3 = vld [vmem:[#allocation16_spill] sm:$0xff] }
 0x454   : > { %9226 = vmatmul.mubr.msk.f32.gmra.mxu1 %vm2084_vm2, %v5122_v40  ;;  %v13966_v40 = vld [vmem:[#allocation15_spill] sm:$0xff] }
 0x457   : > { %v9158_v38 = vpop.f32.mrf.mxu0 }
 0x458   : > { %v5124_v15 = vmul.f32 %v9158_v38, %v13958_v43 }
 0x459   : > { %v5044_v5 = vpop.f32.mrf.mxu0 }
 0x45a   : > { %v5123_v54 = vmul.f32 %v5044_v5, %v13957_v7 }
 0x45c   : > { %9228 = vmatprep.mubr.msk.f32.mxu1 %vm2084_vm2, %v5123_v54  ;;  %v13967_v54 = vld [vmem:[#allocation19_spill] sm:$0xff] }
 0x45d   : > { %9229 = vmatmul.mubr.msk.f32.gmra.mxu1 %vm2084_vm2, %v5124_v15  ;;  %v13968_v15 = vld [vmem:[#allocation17_spill] sm:$0xff] }
 0x45f   : > { %v9161_v13 = vpop.f32.mrf.mxu0 }
 0x460   : > { %v5126_v42 = vmul.f32 %v9161_v13, %v13960_v19  ;;  %v6263_v19 = vld [vmem:[%s13704_s14 + $0x168] sm:$0xff] }
 0x461   : > { %v5054_v35 = vpop.f32.mrf.mxu0 }
 0x462   : > { %v5125_v22 = vmul.f32 %v5054_v35, %v13959_v6 }
 0x464   : > { %9231 = vmatprep.mubr.msk.f32.mxu1 %vm2084_vm2, %v5125_v22 }
 0x465   : > { %9232 = vmatmul.mubr.msk.f32.gmra.mxu1 %vm2084_vm2, %v5126_v42  ;;  %v6261_v42 = vld [vmem:[%s13704_s14 + $0x158] sm:$0xff] }
 0x466   : > { %v9164_v52 = vpop.f32.mrf.mxu0 }
 0x467   : > { %v5128_v23 = vmul.f32 %v9164_v52, %v13962_v58 }
 0x468   : > { %v5064_v28 = vpop.f32.mrf.mxu0 }
 0x469   : > { %v5127_v50 = vmul.f32 %v5064_v28, %v13961_v26  ;;  %v6260_v28 = vld [vmem:[%s13704_s14 + $0x150] sm:$0xff] }
 0x46b   : > { %9234 = vmatprep.mubr.msk.f32.mxu1 %vm2084_vm2, %v5127_v50  ;;  %v6257_v50 = vld [vmem:[%s13704_s14 + $0x138] sm:$0xff] }
 0x46c   : > { %9235 = vmatmul.mubr.msk.f32.gmra.mxu1 %vm2084_vm2, %v5128_v23  ;;  %v6252_v23 = vld [vmem:[%s13704_s14 + $0x110] sm:$0xff] }
 0x46e   : > { %v9167_v49 = vpop.f32.mrf.mxu0 }
 0x46f   : > { %v5130_v12 = vmul.f32 %v9167_v49, %v13964_v34  ;;  %v6318_v49 = vld [vmem:[%s13704_s14 + $0x320] sm:$0xff] }
 0x470   : > { %v5074_v18 = vpop.f32.mrf.mxu0  ;;  %6707 = vmatprep.subr.mxu0 %v6318_v49 }
 0x471   : > { %v5129_v56 = vmul.f32 %v5074_v18, %v13963_v63  ;;  %v6249_v18 = vld [vmem:[%s13704_s14 + $0xf8] sm:$0xff]  ;;  %v6248_v63 = vld [vmem:[%s13704_s14 + $0xf0] sm:$0xff] }
 0x473   : > { %9237 = vmatprep.mubr.msk.f32.mxu1 %vm2084_vm2, %v5129_v56  ;;  %v6246_v56 = vld [vmem:[%s13704_s14 + $0xe0] sm:$0xff] }
 0x474   : > { %9238 = vmatmul.mubr.msk.f32.gmra.mxu1 %vm2084_vm2, %v5130_v12  ;;  %v6243_v12 = vld [vmem:[%s13704_s14 + $0xc8] sm:$0xff] }
 0x477   : > { %v9170_v29 = vpop.f32.mrf.mxu0 }
 0x478   : > { %v5132_v38 = vmul.f32 %v9170_v29, %v13966_v40 }
 0x479   : > { %v5084_v32 = vpop.f32.mrf.mxu0 }
 0x47a   : > { %v5131_v0 = vmul.f32 %v5084_v32, %v13965_v3  ;;  %v6240_v32 = vld [vmem:[%s13704_s14 + $0xb0] sm:$0xff] }
 0x47c   : > { %9240 = vmatprep.mubr.msk.f32.mxu1 %vm2084_vm2, %v5131_v0  ;;  %v6237_v0 = vld [vmem:[%s13704_s14 + $0x98] sm:$0xff] }
 0x47d   : > { %9241 = vmatmul.mubr.msk.f32.gmra.mxu1 %vm2084_vm2, %v5132_v38  ;;  %v6234_v38 = vld [vmem:[%s13704_s14 + $0x80] sm:$0xff] }
 0x47f   : > { %v9173_v5 = vpop.f32.mrf.mxu0 }
 0x480   : > { %v5134_v13 = vmul.f32 %v9173_v5, %v13968_v15 }
 0x481   : > { %v5094_v7 = vpop.f32.mrf.mxu0 }
 0x482   : > { %v5133_v43 = vmul.f32 %v5094_v7, %v13967_v54  ;;  %v6231_v7 = vld [vmem:[%s13704_s14 + $0x68] sm:$0xff] }
 0x483   : > { %v12017_v35 = vpop.f32.mrf.mxu0 }
 0x484   : > { %9243 = vmatprep.mubr.msk.f32.mxu1 %vm2084_vm2, %v5133_v43  ;;  %v6228_v43 = vld [vmem:[%s13704_s14 + $0x50] sm:$0xff] }
 0x485   : > { %9244 = vmatmul.mubr.msk.f32.gmra.mxu1 %vm2084_vm2, %v5134_v13  ;;  %v12021_v6 = vpop.f32.mrf.mxu0  ;;  %v6225_v13 = vld [vmem:[%s13704_s14 + $0x38] sm:$0xff] }
 0x486   : > { %9254 = vmatprep.mubr.msk.f32.mxu1 %vm2538_vm3, %v11724_v47  ;;  %v6258_v47 = vld [vmem:[%s13704_s14 + $0x140] sm:$0xff] }
 0x487   : > { %v12025_v22 = vpop.f32.mrf.mxu0 }
 0x489   : > { %v12033_v52 = vpop.f32.mrf.mxu0  ;;  %9255 = vmatmul.mubr.msk.f32.vlgmr.msra.gmra.mxu1 %vm2538_vm3, %v11729_v55  ;;  %v6255_v55 = vld [vmem:[%s13704_s14 + $0x128] sm:$0xff] }
 0x48a   : > { %9257 = vmatprep.mubr.msk.f32.mxu1 %vm2538_vm3, %v11743_v8  ;;  %6423 = vmatpush1.msra.mxu1 %v6263_v19  ;;  %v6254_v8 = vld [vmem:[%s13704_s14 + $0x120] sm:$0xff] }
 0x48b   : > { %v12045_v26 = vpop.f32.mrf.mxu0  ;;  %6424 = vmatprep.subr.mxu1 %v6261_v42  ;;  %v6222_v42 = vld [vmem:[%s13704_s14 + $0x20] sm:$0xff] }
 0x48c   : > { %6425 = vmatpush1.msra.mxu1 %v6260_v28 }
 0x48d   : > { %v12053_v58 = vpop.f32.mrf.mxu0  ;;  %9258 = vmatmul.mubr.msk.f32.gmra.mxu1 %vm2538_vm3, %v11749_v25  ;;  %6426 = vmatprep.subr.mxu1 %v6258_v47  ;;  %v6251_v25 = vld [vmem:[%s13704_s14 + $0x108] sm:$0xff] }
 0x48e   : > { %9260 = vmatprep.mubr.msk.f32.mxu1 %vm2538_vm3, %v11758_v51  ;;  %6427 = vmatpush1.msra.mxu1 %v6257_v50  ;;  %v6317_v51 = vld [vmem:[%s13704_s14 + $0x318] sm:$0xff]  ;;  %v6219_v47 = vld [vmem:[%s13704_s14 + $0x8] sm:$0xff] }
 0x48f   : > { %v12068_v17 = vpop.f32.mrf.mxu0  ;;  %6428 = vmatprep.subr.mxu1 %v6255_v55  ;;  %6708 = vmatpush1.msra.mxu0 %v6317_v51  ;;  %v6312_v55 = vld [vmem:[%s13704_s14 + $0x2f0] sm:$0xff] }
 0x490   : > { %6429 = vmatpush1.msra.mxu1 %v6254_v8 }
 0x491   : > { %v12079_v1 = vpop.f32.mrf.mxu0  ;;  %9261 = vmatmul.mubr.msk.f32.gmra.mxu1 %vm2538_vm3, %v11763_v14  ;;  %6430 = vmatprep.subr.mxu1 %v6252_v23  ;;  %v6245_v14 = vld [vmem:[%s13704_s14 + $0xd8] sm:$0xff] }
 0x492   : > { %9263 = vmatprep.mubr.msk.f32.mxu1 %vm2538_vm3, %v11772_v21  ;;  %6431 = vmatpush1.msra.mxu1 %v6251_v25  ;;  %v6242_v21 = vld [vmem:[%s13704_s14 + $0xc0] sm:$0xff]  ;;  %v6309_v23 = vld [vmem:[%s13704_s14 + $0x2d8] sm:$0xff] }
 0x493   : > { %v12091_v34 = vpop.f32.mrf.mxu0  ;;  %6432 = vmatprep.subr.mxu1 %v6249_v18  ;;  %v6306_v25 = vld [vmem:[%s13704_s14 + $0x2c0] sm:$0xff]  ;;  %v6303_v18 = vld [vmem:[%s13704_s14 + $0x2a8] sm:$0xff] }
 0x494   : > { %6433 = vmatpush1.msra.mxu1 %v6248_v63 }
 0x495   : > { %v12099_v29 = vpop.f32.mrf.mxu0  ;;  %9264 = vmatmul.mubr.msk.f32.gmra.mxu1 %vm2538_vm3, %v11777_v27  ;;  %6434 = vmatprep.subr.mxu1 %v6246_v56  ;;  %v6239_v27 = vld [vmem:[%s13704_s14 + $0xa8] sm:$0xff]  ;;  %v6300_v56 = vld [vmem:[%s13704_s14 + $0x290] sm:$0xff] }
 0x496   : > { %9266 = vmatprep.mubr.msk.f32.mxu1 %vm2538_vm3, %v11786_v48  ;;  %6435 = vmatpush1.msra.mxu1 %v6245_v14  ;;  %v6236_v48 = vld [vmem:[%s13704_s14 + $0x90] sm:$0xff]  ;;  %v6315_v14 = vld [vmem:[%s13704_s14 + $0x308] sm:$0xff] }
 0x497   : > { %v12111_v3 = vpop.f32.mrf.mxu0  ;;  %6436 = vmatprep.subr.mxu1 %v6243_v12  ;;  %6709 = vmatprep.subr.mxu0 %v6315_v14  ;;  %v6265_v14 = vld [vmem:[%s13704_s14 + $0x178] sm:$0xff] }
 0x498   : > { %6437 = vmatpush1.msra.mxu1 %v6242_v21  ;;  %v6297_v21 = vld [vmem:[%s13704_s14 + $0x278] sm:$0xff] }
 0x499   : > { %v12119_v40 = vpop.f32.mrf.mxu0  ;;  %9267 = vmatmul.mubr.msk.f32.gmra.mxu1 %vm2538_vm3, %v11791_v53  ;;  %6438 = vmatprep.subr.mxu1 %v6240_v32  ;;  %v6233_v53 = vld [vmem:[%s13704_s14 + $0x78] sm:$0xff] }
 0x49a   : > { %9269 = vmatprep.mubr.msk.f32.mxu1 %vm2538_vm3, %v11800_v62  ;;  %6439 = vmatpush1.msra.mxu1 %v6239_v27  ;;  %v6230_v62 = vld [vmem:[%s13704_s14 + $0x60] sm:$0xff]  ;;  %v6296_v27 = vld [vmem:[%s13704_s14 + $0x270] sm:$0xff] }
 0x49b   : > { %v12131_v5 = vpop.f32.mrf.mxu0  ;;  %6440 = vmatprep.subr.mxu1 %v6237_v0  ;;  %v6294_v0 = vld [vmem:[%s13704_s14 + $0x260] sm:$0xff] }
 0x49c   : > { %6441 = vmatpush1.msra.mxu1 %v6236_v48 }
 0x49d   : > { %v12139_v54 = vpop.f32.mrf.mxu0  ;;  %9270 = vmatmul.mubr.msk.f32.gmra.mxu1 %vm2538_vm3, %v11805_v37  ;;  %6442 = vmatprep.subr.mxu1 %v6234_v38  ;;  %v6227_v37 = vld [vmem:[%s13704_s14 + $0x48] sm:$0xff] }
 0x49e   : > { %9272 = vmatprep.mubr.msk.f32.mxu1 %vm2538_vm3, %v11814_v45  ;;  %6443 = vmatpush1.msra.mxu1 %v6233_v53  ;;  %v6224_v45 = vld [vmem:[%s13704_s14 + $0x30] sm:$0xff]  ;;  %v6291_v38 = vld [vmem:[%s13704_s14 + $0x248] sm:$0xff] }
 0x49f   : > { %v12151_v15 = vpop.f32.mrf.mxu0  ;;  %6444 = vmatprep.subr.mxu1 %v6231_v7  ;;  %v6288_v7 = vld [vmem:[%s13704_s14 + $0x230] sm:$0xff] }
 0x4a0   : > { %6445 = vmatpush1.msra.mxu1 %v6230_v62 }
 0x4a1   : > { %v12159_v19 = vpop.f32.mrf.mxu0  ;;  %9273 = vmatmul.mubr.msk.f32.gmra.mxu1 %vm2538_vm3, %v11819_v60  ;;  %6446 = vmatprep.subr.mxu1 %v6228_v43  ;;  %v6221_v60 = vld [vmem:[%s13704_s14 + $0x18] sm:$0xff] }
 0x4a2   : > { %9275 = vmatprep.mubr.msk.f32.mxu1 %vm2538_vm3, %v11828_v20  ;;  %6447 = vmatpush1.msra.mxu1 %v6227_v37  ;;  %v6218_v20 = vld [vmem:[%s13704_s14] sm:$0xff]  ;;  %v6285_v43 = vld [vmem:[%s13704_s14 + $0x218] sm:$0xff] }
 0x4a3   : > { %v12171_v28 = vpop.f32.mrf.mxu0  ;;  %6448 = vmatprep.subr.mxu1 %v6225_v13  ;;  %v6282_v13 = vld [vmem:[%s13704_s14 + $0x200] sm:$0xff] }
 0x4a4   : > { %6449 = vmatpush1.msra.mxu1 %v6224_v45 }
 0x4a5   : > { %v12179_v50 = vpop.f32.mrf.mxu0  ;;  %9276 = vmatmul.mubr.msk.f32.gmra.mxu1 %vm2538_vm3, %v11833_v11  ;;  %6450 = vmatprep.subr.mxu1 %v6222_v42  ;;  %v6311_v11 = vld [vmem:[%s13704_s14 + $0x2e8] sm:$0xff] }
 0x4a6   : > { %9278 = vmatprep.mubr.msk.f32.mxu1 %vm2538_vm3, %v11842_v24  ;;  %6451 = vmatpush1.msra.mxu1 %v6221_v60  ;;  %v6308_v24 = vld [vmem:[%s13704_s14 + $0x2d0] sm:$0xff]  ;;  %v6279_v42 = vld [vmem:[%s13704_s14 + $0x1e8] sm:$0xff] }
 0x4a7   : > { %v12191_v8 = vpop.f32.mrf.mxu0  ;;  %6452 = vmatprep.subr.mxu1 %v6219_v47  ;;  %v6276_v47 = vld [vmem:[%s13704_s14 + $0x1d0] sm:$0xff] }
 0x4a8   : > { %6453 = vmatpush1.msra.mxu1 %v6218_v20 }
 0x4a9   : > { %v12199_v49 = vpop.f32.mrf.mxu0  ;;  %9279 = vmatmul.mubr.msk.f32.gmra.mxu1 %vm2538_vm3, %v11847_v30  ;;  %6454 = vmatprep.subr.mxu1 %v6312_v55  ;;  %v6305_v30 = vld [vmem:[%s13704_s14 + $0x2b8] sm:$0xff] }
 0x4aa   : > { %9281 = vmatprep.mubr.msk.f32.mxu1 %vm2538_vm3, %v11856_v4  ;;  %6455 = vmatpush2.msra.mxu1 %v6311_v11  ;;  %v6302_v4 = vld [vmem:[%s13704_s14 + $0x2a0] sm:$0xff]  ;;  %v6273_v55 = vld [vmem:[%s13704_s14 + $0x1b8] sm:$0xff] }
 0x4ab   : > { %v12211_v51 = vpop.f32.mrf.mxu0  ;;  %6456 = vmatprep.subr.mxu1 %v6309_v23  ;;  %v6270_v23 = vld [vmem:[%s13704_s14 + $0x1a0] sm:$0xff] }
 0x4ac   : > { %6457 = vmatpush2.msra.mxu1 %v6308_v24 }
 0x4ad   : > { %v12219_v63 = vpop.f32.mrf.mxu0  ;;  %9282 = vmatmul.mubr.msk.f32.gmra.mxu1 %vm2538_vm3, %v11863_v57  ;;  %6458 = vmatprep.subr.mxu1 %v6306_v25  ;;  %v6299_v57 = vld [vmem:[%s13704_s14 + $0x288] sm:$0xff]  ;;  %v13969_v25 = vld [vmem:[#allocation20_spill] sm:$0xff] }
 0x4ae   : > { %9284 = vmatprep.mubr.msk.f32.mxu1 %vm2538_vm3, %v11881_v33  ;;  %6459 = vmatpush2.msra.mxu1 %v6305_v30  ;;  %v6314_v33 = vld [vmem:[%s13704_s14 + $0x300] sm:$0xff]  ;;  %v12344_v30 = vmul.f32 %v12021_v6, %v13969_v25  ;;  %v6241_v25 = vld [vmem:[%s13704_s14 + $0xb8] sm:$0xff] }
 0x4af   : > { %v12234_v12 = vpop.f32.mrf.mxu0  ;;  %6460 = vmatprep.subr.mxu1 %v6303_v18  ;;  %6710 = vmatpush1.msra.mxu0 %v6314_v33  ;;  %v13970_v6 = vld [vmem:[#allocation18_spill] sm:$0xff] }
 0x4b0   : > { %6461 = vmatpush2.msra.mxu1 %v6302_v4  ;;  %v6266_v4 = vld [vmem:[%s13704_s14 + $0x180] sm:$0xff] }
 0x4b1   : > { %v12245_v32 = vpop.f32.mrf.mxu0  ;;  %9285 = vmatmul.mubr.msk.f32.gmra.mxu1 %vm2538_vm3, %v11894_v2  ;;  %6462 = vmatprep.subr.mxu1 %v6300_v56  ;;  %v6293_v2 = vld [vmem:[%s13704_s14 + $0x258] sm:$0xff]  ;;  %v12359_v56 = vmul.f32 %v12017_v35, %v13970_v6  ;;  %v6262_v35 = vld [vmem:[%s13704_s14 + $0x160] sm:$0xff] }
 0x4b2   : > { %9287 = vmatprep.mubr.msk.f32.mxu1 %vm2538_vm3, %v11901_v59  ;;  %6463 = vmatpush2.msra.mxu1 %v6299_v57  ;;  %v6290_v59 = vld [vmem:[%s13704_s14 + $0x240] sm:$0xff]  ;;  %v13971_v57 = vld [vmem:[#allocation23_spill] sm:$0xff] }
 0x4b3   : > { %v12257_v48 = vpop.f32.mrf.mxu0  ;;  %6464 = vmatprep.subr.mxu1 %v6297_v21  ;;  %v13972_v21 = vld [vmem:[#allocation21_spill] sm:$0xff] }
 0x4b4   : > { %6465 = vmatpush2.msra.mxu1 %v6296_v27  ;;  %v12378_v27 = vmul.f32 %v12025_v22, %v13972_v21  ;;  %v6256_v22 = vld [vmem:[%s13704_s14 + $0x130] sm:$0xff]  ;;  %v13981_v21 = vld [vmem:[#allocation38_spill] sm:$0xff] }
 0x4b5   : > { %v12265_v53 = vpop.f32.mrf.mxu0  ;;  %9288 = vmatmul.mubr.msk.f32.gmra.mxu1 %vm2538_vm3, %v11910_v16  ;;  %6466 = vmatprep.subr.mxu1 %v6294_v0  ;;  %v6287_v16 = vld [vmem:[%s13704_s14 + $0x228] sm:$0xff]  ;;  %v13973_v0 = vld [vmem:[#allocation26_spill] sm:$0xff] }
 0x4b6   : > { %9290 = vmatprep.mubr.msk.f32.mxu1 %vm2538_vm3, %v11915_v61  ;;  %6467 = vmatpush2.msra.mxu1 %v6293_v2  ;;  %v6284_v61 = vld [vmem:[%s13704_s14 + $0x210] sm:$0xff]  ;;  %v12386_v2 = vmul.f32 %v12053_v58, %v13973_v0  ;;  %v12405_v58 = vld [vmem:[%s13704_s14 + $0x358] sm:$0xff] }
 0x4b7   : > { %v12277_v62 = vpop.f32.mrf.mxu0  ;;  %6468 = vmatprep.subr.mxu1 %v6291_v38  ;;  %9302 = vmatprep.subr.mxu0 %v12405_v58 }
 0x4b8   : > { %6469 = vmatpush2.msra.mxu1 %v6290_v59  ;;  %v13974_v59 = vld [vmem:[#allocation24_spill] sm:$0xff] }
 0x4b9   : > { %v12285_v37 = vpop.f32.mrf.mxu0  ;;  %9291 = vmatmul.mubr.msk.f32.gmra.mxu1 %vm2538_vm3, %v11924_v39  ;;  %6470 = vmatprep.subr.mxu1 %v6288_v7  ;;  %v6281_v39 = vld [vmem:[%s13704_s14 + $0x1f8] sm:$0xff]  ;;  %v12409_v7 = vmul.f32 %v12045_v26, %v13974_v59  ;;  %v13982_v59 = vld [vmem:[#allocation36_spill] sm:$0xff] }
 0x4ba   : > { %9293 = vmatprep.mubr.msk.f32.mxu1 %vm2538_vm3, %v11930_v9  ;;  %6471 = vmatpush2.msra.mxu1 %v6287_v16  ;;  %v6278_v9 = vld [vmem:[%s13704_s14 + $0x1e0] sm:$0xff] }
 0x4bb   : > { %v12297_v45 = vpop.f32.mrf.mxu0  ;;  %6472 = vmatprep.subr.mxu1 %v6285_v43  ;;  %v6253_v43 = vld [vmem:[%s13704_s14 + $0x118] sm:$0xff] }
 0x4bc   : > { %6473 = vmatpush2.msra.mxu1 %v6284_v61  ;;  %v13975_v61 = vld [vmem:[#allocation29_spill] sm:$0xff] }
 0x4bd   : > { %v12305_v60 = vpop.f32.mrf.mxu0  ;;  %9294 = vmatmul.mubr.msk.f32.gmra.mxu1 %vm2538_vm3, %v11938_v31  ;;  %6474 = vmatprep.subr.mxu1 %v6282_v13  ;;  %v6275_v31 = vld [vmem:[%s13704_s14 + $0x1c8] sm:$0xff]  ;;  %v12418_v13 = vmul.f32 %v12079_v1, %v13975_v61  ;;  %v13983_v61 = vld [vmem:[#allocation41_spill] sm:$0xff] }
 0x4be   : > { %9296 = vmatprep.mubr.msk.f32.mxu1 %vm2538_vm3, %v11944_v44  ;;  %6475 = vmatpush2.msra.mxu1 %v6281_v39  ;;  %v6272_v44 = vld [vmem:[%s13704_s14 + $0x1b0] sm:$0xff]  ;;  %v13976_v1 = vld [vmem:[#allocation27_spill] sm:$0xff] }
 0x4bf   : > { %v12317_v20 = vpop.f32.mrf.mxu0  ;;  %6476 = vmatprep.subr.mxu1 %v6279_v42  ;;  %v6250_v42 = vld [vmem:[%s13704_s14 + $0x100] sm:$0xff] }
 0x4c0   : > { %6477 = vmatpush2.msra.mxu1 %v6278_v9  ;;  %v12434_v9 = vmul.f32 %v12068_v17, %v13976_v1  ;;  %v6244_v17 = vld [vmem:[%s13704_s14 + $0xd0] sm:$0xff]  ;;  %v13984_v1 = vld [vmem:[#allocation39_spill] sm:$0xff] }
 0x4c1   : > { %v12325_v11 = vpop.f32.mrf.mxu0  ;;  %9297 = vmatmul.mubr.msk.f32.gmra.mxu1 %vm2538_vm3, %v11952_v41  ;;  %6478 = vmatprep.subr.mxu1 %v6276_v47  ;;  %v6269_v41 = vld [vmem:[%s13704_s14 + $0x198] sm:$0xff]  ;;  %v6247_v47 = vld [vmem:[%s13704_s14 + $0xe8] sm:$0xff] }
 0x4c2   : > { %9299 = vmatprep.mubr.msk.f32.mxu1 %vm2538_vm3, %v11957_v46  ;;  %6479 = vmatpush2.msra.mxu1 %v6275_v31  ;;  %v6267_v46 = vld [vmem:[%s13704_s14 + $0x188] sm:$0xff]  ;;  %v13977_v31 = vld [vmem:[#allocation32_spill] sm:$0xff] }
 0x4c3   : > { %v12337_v24 = vpop.f32.mrf.mxu0  ;;  %6480 = vmatprep.subr.mxu1 %v6273_v55  ;;  %v12442_v55 = vmul.f32 %v12099_v29, %v13977_v31  ;;  %v13985_v31 = vld [vmem:[#allocation44_spill] sm:$0xff] }
 0x4c4   : > { %6481 = vmatpush2.msra.mxu1 %v6272_v44 }
 0x4c5   : > { %v12349_v18 = vpop.f32.mrf.mxu0  ;;  %9300 = vmatmul.mubr.msk.f32.gmra.mxu1 %vm2538_vm3, %v11966_v10  ;;  %6482 = vmatprep.subr.mxu1 %v6270_v23  ;;  %v12366_v10 = vmul.f32 %v12033_v52, %v13971_v57  ;;  %v6259_v52 = vld [vmem:[%s13704_s14 + $0x148] sm:$0xff]  ;;  %v13978_v23 = vld [vmem:[#allocation30_spill] sm:$0xff] }
 0x4c6   : > { %6483 = vmatpush2.msra.mxu1 %v6269_v41  ;;  %6486 = vmatprep.mubr.f32.mxu1 %v12344_v30  ;;  %v12454_v41 = vmul.f32 %v12091_v34, %v13978_v23 }
 0x4c7   : > { %6484 = vmatprep.subr.mxu1 %v6267_v46  ;;  %v12368_v33 = vpop.f32.mrf.mxu0  ;;  %v13979_v46 = vld [vmem:[#allocation35_spill] sm:$0xff] }
 0x4c8   : > { %6485 = vmatpush2.msra.mxu1 %v6266_v4  ;;  %v12462_v4 = vmul.f32 %v12119_v40, %v13979_v46  ;;  %v13980_v40 = vld [vmem:[#allocation33_spill] sm:$0xff] }
 0x4c9   : > { %6487 = vmatmul.mubr.f32.vlgmr.msra.gmra.mxu1 %v12359_v56  ;;  %6936 = vmatprep.subr.mxu1 %v13951_v36  ;;  %v12388_v38 = vpop.f32.mrf.mxu0  ;;  %v12478_v57 = vmul.f32 %v12111_v3, %v13980_v40  ;;  %v6232_v3 = vld [vmem:[%s13704_s14 + $0x70] sm:$0xff] }
 0x4ca   : > { %6492 = vmatprep.mubr.f32.mxu1 %v12366_v10  ;;  %6937 = vmatpush1.msra.mxu1 %v6265_v14  ;;  %v6238_v14 = vld [vmem:[%s13704_s14 + $0xa0] sm:$0xff] }
 0x4cb   : > { %6938 = vmatprep.subr.mxu1 %v13951_v36  ;;  %v12422_v39 = vpop.f32.mrf.mxu0 }
 0x4cc   : > { %6939 = vmatpush1.msra.mxu1 %v6262_v35  ;;  %v6235_v35 = vld [vmem:[%s13704_s14 + $0x88] sm:$0xff] }
 0x4cd   : > { %6493 = vmatmul.mubr.f32.gmra.mxu1 %v12378_v27  ;;  %6940 = vmatprep.subr.mxu1 %v13951_v36  ;;  %v12444_v44 = vpop.f32.mrf.mxu0 }
 0x4ce   : > { %6498 = vmatprep.mubr.f32.mxu1 %v12386_v2  ;;  %6941 = vmatpush1.msra.mxu1 %v6259_v52  ;;  %v12486_v52 = vmul.f32 %v12139_v54, %v13981_v21  ;;  %v12500_v54 = vmul.f32 %v12131_v5, %v13982_v59  ;;  %v6226_v5 = vld [vmem:[%s13704_s14 + $0x40] sm:$0xff]  ;;  %v13988_v21 = vld [vmem:[#allocation45_spill] sm:$0xff] }
 0x4cf   : > { %v9200_v16 = vpop.f32.mrf.mxu1  ;;  %6942 = vmatprep.subr.mxu1 %v13951_v36  ;;  %v12466_v6 = vpop.f32.mrf.mxu0 }
 0x4d0   : > { %5469 = vst.msk [vmem:[%s12395_s19 + $0x8] sm:$0xff] %vm2084_vm2, %v9200_v16  ;;  %6943 = vmatpush1.msra.mxu1 %v6256_v22 }
 0x4d1   : > { %6499 = vmatmul.mubr.f32.gmra.mxu1 %v12409_v7  ;;  %v5309_v26 = vpop.f32.mrf.mxu1  ;;  %6944 = vmatprep.subr.mxu1 %v13951_v36  ;;  %v12488_v0 = vpop.f32.mrf.mxu0 }
 0x4d2   : > { %5468 = vst.msk [vmem:[%s12395_s19] sm:$0xff] %vm2084_vm2, %v5309_v26  ;;  %6504 = vmatprep.mubr.f32.mxu1 %v12418_v13  ;;  %6945 = vmatpush1.msra.mxu1 %v6253_v43  ;;  %v6229_v43 = vld [vmem:[%s13704_s14 + $0x58] sm:$0xff]  ;;  %v12508_v26 = vmul.f32 %v12159_v19, %v13983_v61  ;;  %v12522_v19 = vmul.f32 %v12151_v15, %v13984_v1  ;;  %v6220_v15 = vld [vmem:[%s13704_s14 + $0x10] sm:$0xff] }
 0x4d3   : > { %6946 = vmatprep.subr.mxu1 %v13951_v36  ;;  %v6301_v1 = vld [vmem:[%s13704_s14 + $0x298] sm:$0xff] }
 0x4d4   : > { %6947 = vmatpush1.msra.mxu1 %v6250_v42  ;;  %v12512_v42 = vpop.f32.mrf.mxu0 }
 0x4d5   : > { %6505 = vmatmul.mubr.f32.gmra.mxu1 %v12434_v9  ;;  %6948 = vmatprep.subr.mxu1 %v13951_v36 }
 0x4d6   : > { %6510 = vmatprep.mubr.f32.mxu1 %v12442_v55  ;;  %6949 = vmatpush1.msra.mxu1 %v6247_v47  ;;  %v6223_v47 = vld [vmem:[%s13704_s14 + $0x28] sm:$0xff]  ;;  %v12532_v23 = vpop.f32.mrf.mxu0 }
 0x4d7   : > { %v9203_v29 = vpop.f32.mrf.mxu1  ;;  %6950 = vmatprep.subr.mxu1 %v13951_v36 }
 0x4d8   : > { %5471 = vst.msk [vmem:[%s12395_s19 + $0x18] sm:$0xff] %vm2084_vm2, %v9203_v29  ;;  %6951 = vmatpush1.msra.mxu1 %v6244_v17  ;;  %v12530_v17 = vmul.f32 %v12179_v50, %v13985_v31 }
 0x4d9   : > { %6511 = vmatmul.mubr.f32.gmra.mxu1 %v12454_v41  ;;  %v5319_v34 = vpop.f32.mrf.mxu1  ;;  %6952 = vmatprep.subr.mxu1 %v13951_v36 }
 0x4da   : > { %5470 = vst.msk [vmem:[%s12395_s19 + $0x10] sm:$0xff] %vm2084_vm2, %v5319_v34  ;;  %6516 = vmatprep.mubr.f32.mxu1 %v12462_v4  ;;  %6953 = vmatpush1.msra.mxu1 %v6241_v25  ;;  %v13986_v25 = vld [vmem:[#allocation42_spill] sm:$0xff]  ;;  %v6313_v34 = vld [vmem:[%s13704_s14 + $0x2f8] sm:$0xff] }
 0x4db   : > { %6954 = vmatprep.subr.mxu1 %v13951_v36  ;;  %v12544_v50 = vmul.f32 %v12171_v28, %v13986_v25  ;;  %v6310_v28 = vld [vmem:[%s13704_s14 + $0x2e0] sm:$0xff] }
 0x4dc   : > { %6955 = vmatpush1.msra.mxu1 %v6238_v14  ;;  %v13987_v14 = vld [vmem:[#allocation47_spill] sm:$0xff] }
 0x4dd   : > { %v9206_v22 = vpop.f32.mrf.mxu1  ;;  %6517 = vmatmul.mubr.f32.gmra.mxu1 %v12478_v57  ;;  %6956 = vmatprep.subr.mxu1 %v13951_v36  ;;  %v12552_v40 = vmul.f32 %v12199_v49, %v13987_v14  ;;  %v12566_v49 = vmul.f32 %v12191_v8, %v13988_v21  ;;  %v6304_v8 = vld [vmem:[%s13704_s14 + $0x2b0] sm:$0xff] }
 0x4de   : > { %5473 = vst.msk [vmem:[%s12395_s19 + $0x28] sm:$0xff] %vm2084_vm2, %v9206_v22  ;;  %6522 = vmatprep.mubr.f32.mxu1 %v12486_v52  ;;  %6957 = vmatpush1.msra.mxu1 %v6235_v35  ;;  %v12556_v35 = vpop.f32.mrf.mxu0  ;;  %v6307_v22 = vld [vmem:[%s13704_s14 + $0x2c8] sm:$0xff] }
 0x4df   : > { %v5329_v16 = vpop.f32.mrf.mxu1  ;;  %6958 = vmatprep.subr.mxu1 %v13951_v36 }
 0x4e0   : > { %5472 = vst.msk [vmem:[%s12395_s19 + $0x20] sm:$0xff] %vm2084_vm2, %v5329_v16  ;;  %6959 = vmatpush1.msra.mxu1 %v6232_v3  ;;  %v13989_v3 = vld [vmem:[#allocation50_spill] sm:$0xff] }
 0x4e1   : > { %6523 = vmatmul.mubr.f32.gmra.mxu1 %v12500_v54  ;;  %6960 = vmatprep.subr.mxu1 %v13951_v36  ;;  %v12574_v59 = vmul.f32 %v12219_v63, %v13989_v3  ;;  %v13990_v63 = vld [vmem:[#allocation48_spill] sm:$0xff]  ;;  %v6289_v3 = vld [vmem:[%s13704_s14 + $0x238] sm:$0xff] }
 0x4e2   : > { %6528 = vmatprep.mubr.f32.mxu1 %v12508_v26  ;;  %6961 = vmatpush1.msra.mxu1 %v6229_v43  ;;  %v12576_v43 = vpop.f32.mrf.mxu0 }
 0x4e3   : > { %6962 = vmatprep.subr.mxu1 %v13951_v36 }
 0x4e4   : > { %6963 = vmatpush1.msra.mxu1 %v6226_v5  ;;  %v12588_v5 = vmul.f32 %v12211_v51, %v13990_v63  ;;  %v6298_v51 = vld [vmem:[%s13704_s14 + $0x280] sm:$0xff]  ;;  %v13996_v63 = vld [vmem:[#allocation57_spill] sm:$0xff] }
 0x4e5   : > { %v9209_v29 = vpop.f32.mrf.mxu1  ;;  %6529 = vmatmul.mubr.f32.gmra.mxu1 %v12522_v19  ;;  %6964 = vmatprep.subr.mxu1 %v13951_v36 }
 0x4e6   : > { %5475 = vst.msk [vmem:[%s12395_s19 + $0x38] sm:$0xff] %vm2084_vm2, %v9209_v29  ;;  %6534 = vmatprep.mubr.f32.mxu1 %v12530_v17  ;;  %6965 = vmatpush1.msra.mxu1 %v6223_v47  ;;  %v13991_v47 = vld [vmem:[#allocation53_spill] sm:$0xff]  ;;  %v12600_v29 = vpop.f32.mrf.mxu0 }
 0x4e7   : > { %v5339_v46 = vpop.f32.mrf.mxu1  ;;  %6966 = vmatprep.subr.mxu1 %v13951_v36  ;;  %v12598_v31 = vmul.f32 %v12245_v32, %v13991_v47  ;;  %v6295_v32 = vld [vmem:[%s13704_s14 + $0x268] sm:$0xff]  ;;  %v13997_v47 = vld [vmem:[#allocation62_spill] sm:$0xff] }
 0x4e8   : > { %5474 = vst.msk [vmem:[%s12395_s19 + $0x30] sm:$0xff] %vm2084_vm2, %v5339_v46  ;;  %6967 = vmatpush1.msra.mxu1 %v6220_v15  ;;  %v13992_v15 = vld [vmem:[#allocation51_spill] sm:$0xff]  ;;  %v13993_v46 = vld [vmem:[#allocation56_spill] sm:$0xff] }
 0x4e9   : > { %6535 = vmatmul.mubr.f32.gmra.mxu1 %v12544_v50  ;;  %6968 = vmatprep.subr.mxu1 %v13951_v36  ;;  %v12610_v25 = vmul.f32 %v12234_v12, %v13992_v15  ;;  %v6292_v12 = vld [vmem:[%s13704_s14 + $0x250] sm:$0xff] }
 0x4ea   : > { %6540 = vmatprep.mubr.f32.mxu1 %v12552_v40  ;;  %6969 = vmatpush2.msra.mxu1 %v6313_v34  ;;  %v12618_v34 = vmul.f32 %v12265_v53, %v13993_v46  ;;  %v13994_v53 = vld [vmem:[#allocation54_spill] sm:$0xff]  ;;  %v13998_v46 = vld [vmem:[#allocation60_spill] sm:$0xff] }
 0x4eb   : > { %6970 = vmatprep.subr.mxu1 %v13951_v36 }
 0x4ec   : > { %v9212_v16 = vpop.f32.mrf.mxu1  ;;  %6971 = vmatpush2.msra.mxu1 %v6310_v28  ;;  %v12620_v28 = vpop.f32.mrf.mxu0 }
 0x4ed   : > { %5477 = vst.msk [vmem:[%s12395_s19 + $0x48] sm:$0xff] %vm2084_vm2, %v9212_v16  ;;  %6541 = vmatmul.mubr.f32.gmra.mxu1 %v12566_v49  ;;  %6972 = vmatprep.subr.mxu1 %v13951_v36  ;;  %v13995_v16 = vld [vmem:[#allocation59_spill] sm:$0xff] }
 0x4ee   : > { %6546 = vmatprep.mubr.f32.mxu1 %v12574_v59  ;;  %v5349_v61 = vpop.f32.mrf.mxu1  ;;  %6973 = vmatpush2.msra.mxu1 %v6307_v22  ;;  %v12632_v22 = vmul.f32 %v12257_v48, %v13994_v53  ;;  %v6286_v48 = vld [vmem:[%s13704_s14 + $0x220] sm:$0xff] }
 0x4ef   : > { %5476 = vst.msk [vmem:[%s12395_s19 + $0x40] sm:$0xff] %vm2084_vm2, %v5349_v61  ;;  %6974 = vmatprep.subr.mxu1 %v13951_v36  ;;  %v12644_v61 = vpop.f32.mrf.mxu0 }
 0x4f0   : > { %6975 = vmatpush2.msra.mxu1 %v6304_v8  ;;  %v12642_v8 = vmul.f32 %v12285_v37, %v13995_v16  ;;  %v6283_v37 = vld [vmem:[%s13704_s14 + $0x208] sm:$0xff] }
 0x4f1   : > { %6547 = vmatmul.mubr.f32.gmra.mxu1 %v12588_v5  ;;  %6976 = vmatprep.subr.mxu1 %v13951_v36  ;;  %v12664_v15 = vpop.f32.mrf.mxu0  ;;  %v14000_v16 = vld [vmem:[#allocation63_spill] sm:$0xff] }
 0x4f2   : > { %6552 = vmatprep.mubr.f32.mxu1 %v12598_v31  ;;  %6977 = vmatpush2.msra.mxu1 %v6301_v1  ;;  %v12654_v1 = vmul.f32 %v12277_v62, %v13996_v63  ;;  %v6280_v62 = vld [vmem:[%s13704_s14 + $0x1f0] sm:$0xff] }
 0x4f3   : > { %6978 = vmatprep.subr.mxu1 %v13951_v36  ;;  %v14001_v63 = vld [vmem:[#allocation68_spill] sm:$0xff] }
 0x4f4   : > { %v9215_v14 = vpop.f32.mrf.mxu1  ;;  %6979 = vmatpush2.msra.mxu1 %v6298_v51  ;;  %v12662_v51 = vmul.f32 %v12305_v60, %v13997_v47  ;;  %v12676_v60 = vmul.f32 %v12297_v45, %v13998_v46  ;;  %v6274_v45 = vld [vmem:[%s13704_s14 + $0x1c0] sm:$0xff] }
 0x4f5   : > { %5479 = vst.msk [vmem:[%s12395_s19 + $0x58] sm:$0xff] %vm2084_vm2, %v9215_v14  ;;  %6553 = vmatmul.mubr.f32.gmra.mxu1 %v12610_v25  ;;  %6980 = vmatprep.subr.mxu1 %v13951_v36 }
 0x4f6   : > { %6558 = vmatprep.mubr.f32.mxu1 %v12618_v34  ;;  %v5359_v21 = vpop.f32.mrf.mxu1  ;;  %6981 = vmatpush2.msra.mxu1 %v6295_v32 }
 0x4f7   : > { %5478 = vst.msk [vmem:[%s12395_s19 + $0x50] sm:$0xff] %vm2084_vm2, %v5359_v21  ;;  %6982 = vmatprep.subr.mxu1 %v13951_v36  ;;  %v13999_v21 = vld [vmem:[#allocation65_spill] sm:$0xff] }
 0x4f8   : > { %6983 = vmatpush2.msra.mxu1 %v6292_v12  ;;  %v6277_v12 = vld [vmem:[%s13704_s14 + $0x1d8] sm:$0xff]  ;;  %v12684_v53 = vmul.f32 %v12325_v11, %v13999_v21  ;;  %v12698_v11 = vmul.f32 %v12317_v20, %v14000_v16  ;;  %v6268_v20 = vld [vmem:[%s13704_s14 + $0x190] sm:$0xff]  ;;  %v14005_v16 = vld [vmem:[#allocation74_spill] sm:$0xff] }
 0x4f9   : > { %6559 = vmatmul.mubr.f32.gmra.mxu1 %v12632_v22  ;;  %6984 = vmatprep.subr.mxu1 %v13951_v36 }
 0x4fa   : > { %6564 = vmatprep.mubr.f32.mxu1 %v12642_v8  ;;  %6985 = vmatpush2.msra.mxu1 %v6289_v3  ;;  %v12688_v3 = vpop.f32.mrf.mxu0 }
 0x4fb   : > { %6986 = vmatprep.subr.mxu1 %v13951_v36 }
 0x4fc   : > { %6987 = vmatpush2.msra.mxu1 %v6286_v48  ;;  %v6271_v48 = vld [vmem:[%s13704_s14 + $0x1a8] sm:$0xff]  ;;  %v5852_v47 = vpop.f32.mrf.mxu0 }
 0x4fd   : > { %v9218_v32 = vpop.f32.mrf.mxu1  ;;  %6565 = vmatmul.mubr.f32.gmra.mxu1 %v12654_v1  ;;  %6988 = vmatprep.subr.mxu1 %v13951_v36 }
 0x4fe   : > { %5481 = vst.msk [vmem:[%s12395_s19 + $0x68] sm:$0xff] %vm2084_vm2, %v9218_v32  ;;  %6570 = vmatprep.mubr.f32.mxu1 %v12662_v51  ;;  %6989 = vmatpush2.msra.mxu1 %v6283_v37  ;;  %v12706_v37 = vmul.f32 %v12349_v18, %v14001_v63  ;;  %v5856_v21 = vpop.f32.mrf.mxu0 }
 0x4ff   : > { %v5369_v14 = vpop.f32.mrf.mxu1  ;;  %6990 = vmatprep.subr.mxu1 %v13951_v36 }
 0x500   : > { %5480 = vst.msk [vmem:[%s12395_s19 + $0x60] sm:$0xff] %vm2084_vm2, %v5369_v14  ;;  %6991 = vmatpush2.msra.mxu1 %v6280_v62  ;;  %v14002_v62 = vld [vmem:[#allocation66_spill] sm:$0xff]  ;;  %v14003_v14 = vld [vmem:[#allocation71_spill] sm:$0xff] }
 0x501   : > { %6571 = vmatmul.mubr.f32.gmra.mxu1 %v12676_v60  ;;  %6992 = vmatprep.subr.mxu1 %v13951_v36  ;;  %v12718_v18 = vmul.f32 %v12337_v24, %v14002_v62 }
 0x502   : > { %6576 = vmatprep.mubr.f32.mxu1 %v12684_v53  ;;  %6993 = vmatpush2.msra.mxu1 %v6277_v12  ;;  %v12723_v12 = vmul.f32 %v12388_v38, %v14003_v14  ;;  %v5858_v38 = vpop.f32.mrf.mxu0  ;;  %v14008_v14 = vld [vmem:[#allocation75_spill] sm:$0xff] }
 0x503   : > { %6994 = vmatprep.subr.mxu1 %v13951_v36 }
 0x504   : > { %6995 = vmatpush2.msra.mxu1 %v6274_v45  ;;  %v14004_v45 = vld [vmem:[#allocation69_spill] sm:$0xff] }
 0x505   : > { %v9221_v32 = vpop.f32.mrf.mxu1  ;;  %6577 = vmatmul.mubr.f32.gmra.mxu1 %v12698_v11  ;;  %6996 = vmatprep.subr.mxu1 %v13951_v36  ;;  %v12731_v24 = vmul.f32 %v12368_v33, %v14004_v45  ;;  %v14007_v33 = vld [vmem:[#allocation77_spill] sm:$0xff]  ;;  %v12755_v45 = vmul.f32 %v12466_v6, %v14008_v14  ;;  %v14013_v6 = vld [vmem:[#allocation83_spill] sm:$0xff] }
 0x506   : > { %5483 = vst.msk [vmem:[%s12395_s19 + $0x78] sm:$0xff] %vm2084_vm2, %v9221_v32  ;;  %6582 = vmatprep.mubr.f32.mxu1 %v12706_v37  ;;  %6997 = vmatpush2.msra.mxu1 %v6271_v48  ;;  %v12735_v48 = vmul.f32 %v12444_v44, %v14005_v16  ;;  %v12749_v44 = vmul.f32 %v12488_v0, %v14007_v33  ;;  %v14010_v16 = vld [vmem:[#allocation80_spill] sm:$0xff] }
 0x507   : > { %v5379_v46 = vpop.f32.mrf.mxu1  ;;  %6998 = vmatprep.subr.mxu1 %v13951_v36  ;;  %14009 = vst [vmem:[#allocation2_spill] sm:$0xff] %v12755_v45 }
 0x508   : > { %5482 = vst.msk [vmem:[%s12395_s19 + $0x70] sm:$0xff] %vm2084_vm2, %v5379_v46  ;;  %6999 = vmatpush2.msra.mxu1 %v6268_v20  ;;  %v14006_v20 = vld [vmem:[#allocation72_spill] sm:$0xff]  ;;  %v5862_v46 = vpop.f32.mrf.mxu0 }
 0x509   : > { %6583 = vmatmul.mubr.f32.gmra.mxu1 %v12718_v18  ;;  %v12743_v62 = vmul.f32 %v12422_v39, %v14006_v20 }
 0x50a   : > { %6588 = vmatprep.mubr.f32.mxu1 %v12723_v12  ;;  %v5864_v20 = vpop.f32.mrf.mxu0 }
 0x50c   : > { %v9224_v63 = vpop.f32.mrf.mxu1  ;;  %v5868_v14 = vpop.f32.mrf.mxu0 }
 0x50d   : > { %5485 = vst.msk [vmem:[%s12395_s19 + $0x88] sm:$0xff] %vm2084_vm2, %v9224_v63  ;;  %6589 = vmatmul.mubr.f32.gmra.mxu1 %v12731_v24  ;;  %v12759_v63 = vmul.f32 %v12532_v23, %v14010_v16  ;;  %v12773_v23 = vmul.f32 %v12576_v43, %v14013_v6  ;;  %v14014_v16 = vld [vmem:[#allocation81_spill] sm:$0xff]  ;;  %v14018_v43 = vld [vmem:[#allocation84_spill] sm:$0xff] }
 0x50e   : > { %6594 = vmatprep.mubr.f32.mxu1 %v12735_v48  ;;  %v5389_v32 = vpop.f32.mrf.mxu1 }
 0x50f   : > { %5484 = vst.msk [vmem:[%s12395_s19 + $0x80] sm:$0xff] %vm2084_vm2, %v5389_v32  ;;  %14011 = vst [vmem:[#allocation4_spill] sm:$0xff] %v12759_v63  ;;  %v14012_v32 = vld [vmem:[#allocation78_spill] sm:$0xff] }
 0x510   : > { %v12767_v33 = vmul.f32 %v12512_v42, %v14012_v32  ;;  %v5870_v32 = vpop.f32.mrf.mxu0 }
 0x511   : > { %6595 = vmatmul.mubr.f32.gmra.mxu1 %v12743_v62 }
 0x512   : > { %6600 = vmatprep.mubr.f32.mxu1 %v12749_v44 }
 0x514   : > { %v9227_v39 = vpop.f32.mrf.mxu1 }
 0x515   : > { %5487 = vst.msk [vmem:[%s12395_s19 + $0x98] sm:$0xff] %vm2084_vm2, %v9227_v39  ;;  %6601 = vmatmul.mubr.f32.gmra.mxu1 %v12755_v45  ;;  %v12779_v39 = vmul.f32 %v12556_v35, %v14014_v16  ;;  %v14019_v35 = vld [vmem:[#allocation89_spill] sm:$0xff] }
 0x516   : > { %6606 = vmatprep.mubr.f32.mxu1 %v12759_v63  ;;  %v5399_v0 = vpop.f32.mrf.mxu1  ;;  %v14016_v63 = vld [vmem:[#allocation86_spill] sm:$0xff]  ;;  %v12795_v16 = vmul.f32 %v12664_v15, %v14019_v35 }
 0x517   : > { %5486 = vst.msk [vmem:[%s12395_s19 + $0x90] sm:$0xff] %vm2084_vm2, %v5399_v0  ;;  %14015 = vst [vmem:[#allocation3_spill] sm:$0xff] %v12779_v39  ;;  %v12783_v42 = vmul.f32 %v12620_v28, %v14016_v63  ;;  %v12791_v0 = vmul.f32 %v12600_v29, %v14018_v43  ;;  %v5874_v28 = vpop.f32.mrf.mxu0  ;;  %v14024_v15 = vld [vmem:[#allocation90_spill] sm:$0xff] }
 0x519   : > { %6607 = vmatmul.mubr.f32.gmra.mxu1 %v12767_v33  ;;  %14017 = vst [vmem:[#allocation6_spill] sm:$0xff] %v12783_v42  ;;  %v5876_v43 = vpop.f32.mrf.mxu0 }
 0x51a   : > { %6612 = vmatprep.mubr.f32.mxu1 %v12773_v23 }
 0x51d   : > { %v9230_v45 = vpop.f32.mrf.mxu1  ;;  %6613 = vmatmul.mubr.f32.gmra.mxu1 %v12779_v39 }
 0x51e   : > { %5489 = vst.msk [vmem:[%s12395_s19 + $0xa8] sm:$0xff] %vm2084_vm2, %v9230_v45  ;;  %6618 = vmatprep.mubr.f32.mxu1 %v12783_v42  ;;  %v14020_v45 = vld [vmem:[#allocation87_spill] sm:$0xff]  ;;  %v14022_v42 = vld [vmem:[#allocation92_spill] sm:$0xff] }
 0x51f   : > { %v5409_v6 = vpop.f32.mrf.mxu1  ;;  %v12803_v63 = vmul.f32 %v12644_v61, %v14020_v45  ;;  %v12806_v29 = vmul.f32 %v5852_v47, %v14022_v42  ;;  %v14026_v61 = vld [vmem:[#allocation95_spill] sm:$0xff]  ;;  %v5880_v47 = vpop.f32.mrf.mxu0  ;;  %v14028_v42 = vld [vmem:[#allocation93_spill] sm:$0xff] }
 0x520   : > { %5488 = vst.msk [vmem:[%s12395_s19 + $0xa0] sm:$0xff] %vm2084_vm2, %v5409_v6  ;;  %v12814_v6 = vmul.f32 %v12688_v3, %v14024_v15  ;;  %v12817_v45 = vmul.f32 %v5858_v38, %v14026_v61 }
 0x521   : > { %6619 = vmatmul.mubr.f32.gmra.mxu1 %v12791_v0  ;;  %14021 = vst [vmem:[#allocation5_spill] sm:$0xff] %v12803_v63  ;;  %14023 = vst [vmem:[#allocation8_spill] sm:$0xff] %v12806_v29  ;;  %v5882_v15 = vpop.f32.mrf.mxu0 }
 0x522   : > { %6624 = vmatprep.mubr.f32.mxu1 %v12795_v16  ;;  %14025 = vst [vmem:[#allocation7_spill] sm:$0xff] %v12814_v6  ;;  %14027 = vst [vmem:[#allocation10_spill] sm:$0xff] %v12817_v45 }
 0x525   : > { %v9233_v39 = vpop.f32.mrf.mxu1  ;;  %6625 = vmatmul.mubr.f32.gmra.mxu1 %v12803_v63 }
 0x526   : > { %5491 = vst.msk [vmem:[%s12395_s19 + $0xb8] sm:$0xff] %vm2084_vm2, %v9233_v39  ;;  %6630 = vmatprep.mubr.f32.mxu1 %v12806_v29  ;;  %v12824_v39 = vmul.f32 %v5856_v21, %v14028_v42  ;;  %v14030_v29 = vld [vmem:[#allocation98_spill] sm:$0xff]  ;;  %v14033_v21 = vld [vmem:[#allocation101_spill] sm:$0xff] }
 0x527   : > { %v5419_v35 = vpop.f32.mrf.mxu1  ;;  %v12827_v63 = vmul.f32 %v5864_v20, %v14030_v29  ;;  %v12839_v42 = vmul.f32 %v5870_v32, %v14033_v21  ;;  %v5886_v20 = vpop.f32.mrf.mxu0  ;;  %v14034_v29 = vld [vmem:[#allocation99_spill] sm:$0xff]  ;;  %v14036_v32 = vld [vmem:[#allocation102_spill] sm:$0xff] }
 0x528   : > { %5490 = vst.msk [vmem:[%s12395_s19 + $0xb0] sm:$0xff] %vm2084_vm2, %v5419_v35  ;;  %14029 = vst [vmem:[#allocation9_spill] sm:$0xff] %v12824_v39  ;;  %v14032_v35 = vld [vmem:[#allocation96_spill] sm:$0xff]  ;;  %v14040_v21 = vld [vmem:[#allocation110_spill] sm:$0xff] }
 0x529   : > { %6631 = vmatmul.mubr.f32.gmra.mxu1 %v12814_v6  ;;  %14031 = vst [vmem:[#allocation12_spill] sm:$0xff] %v12827_v63  ;;  %v12834_v61 = vmul.f32 %v5862_v46, %v14032_v35  ;;  %v5888_v6 = vpop.f32.mrf.mxu0 }
 0x52a   : > { %6636 = vmatprep.mubr.f32.mxu1 %v12817_v45 }
 0x52c   : > { %v9236_v3 = vpop.f32.mrf.mxu1 }
 0x52d   : > { %5493 = vst.msk [vmem:[%s12395_s19 + $0xc8] sm:$0xff] %vm2084_vm2, %v9236_v3  ;;  %6637 = vmatmul.mubr.f32.gmra.mxu1 %v12824_v39  ;;  %v12844_v3 = vmul.f32 %v5868_v14, %v14034_v29  ;;  %v14035_v39 = vld [vmem:[#allocation104_spill] sm:$0xff]  ;;  %v14037_v14 = vld [vmem:[#allocation107_spill] sm:$0xff]  ;;  %v12867_v29 = vmul.f32 %v5888_v6, %v14040_v21 }
 0x52e   : > { %6642 = vmatprep.mubr.f32.mxu1 %v12827_v63  ;;  %v5429_v38 = vpop.f32.mrf.mxu1  ;;  %v12847_v63 = vmul.f32 %v5876_v43, %v14035_v39  ;;  %v12859_v35 = vmul.f32 %v5882_v15, %v14037_v14  ;;  %v5892_v43 = vpop.f32.mrf.mxu0  ;;  %v14041_v15 = vld [vmem:[#allocation108_spill] sm:$0xff]  ;;  %v14043_v6 = vld [vmem:[#allocation111_spill] sm:$0xff] }
 0x52f   : > { %5492 = vst.msk [vmem:[%s12395_s19 + $0xc0] sm:$0xff] %vm2084_vm2, %v5429_v38  ;;  %v12854_v38 = vmul.f32 %v5874_v28, %v14036_v32 }
 0x530   : > { %14038 = vst [vmem:[#allocation11_spill] sm:$0xff] %v12859_v35  ;;  %v5894_v28 = vpop.f32.mrf.mxu0 }
 0x531   : > { %6643 = vmatmul.mubr.f32.gmra.mxu1 %v12834_v61 }
 0x532   : > { %6648 = vmatprep.mubr.f32.mxu1 %v12839_v42 }
 0x534   : > { %v9239_v45 = vpop.f32.mrf.mxu1 }
 0x535   : > { %5495 = vst.msk [vmem:[%s12395_s19 + $0xd8] sm:$0xff] %vm2084_vm2, %v9239_v45  ;;  %6649 = vmatmul.mubr.f32.gmra.mxu1 %v12844_v3  ;;  %v14039_v45 = vld [vmem:[#allocation105_spill] sm:$0xff] }
 0x536   : > { %6654 = vmatprep.mubr.f32.mxu1 %v12847_v63  ;;  %v5439_v46 = vpop.f32.mrf.mxu1  ;;  %v12864_v39 = vmul.f32 %v5880_v47, %v14039_v45  ;;  %v12884_v45 = vmul.f32 %v5892_v43, %v14043_v6 }
 0x537   : > { %5494 = vst.msk [vmem:[%s12395_s19 + $0xd0] sm:$0xff] %vm2084_vm2, %v5439_v46  ;;  %v12874_v46 = vmul.f32 %v5886_v20, %v14041_v15 }
 0x539   : > { %6655 = vmatmul.mubr.f32.gmra.mxu1 %v12854_v38 }
 0x53a   : > { %6660 = vmatprep.mubr.f32.mxu1 %v12859_v35  ;;  %v14042_v35 = vld [vmem:[#allocation113_spill] sm:$0xff] }
 0x53b   : > { %v12877_v47 = vmul.f32 %v5894_v28, %v14042_v35 }
 0x53d   : > { %v9242_v32 = vpop.f32.mrf.mxu1  ;;  %6661 = vmatmul.mubr.f32.gmra.mxu1 %v12864_v39 }
 0x53e   : > { %5497 = vst.msk [vmem:[%s12395_s19 + $0xe8] sm:$0xff] %vm2084_vm2, %v9242_v32  ;;  %6666 = vmatprep.mubr.f32.mxu1 %v12867_v29  ;;  %v14044_v32 = vld [vmem:[#allocation22_spill] sm:$0xff] }
 0x53f   : > { %v5449_v14 = vpop.f32.mrf.mxu1 }
 0x540   : > { %5496 = vst.msk [vmem:[%s12395_s19 + $0xe0] sm:$0xff] %vm2084_vm2, %v5449_v14  ;;  %v6322_v14 = vld [vmem:[%s13704_s14 + $0x340] sm:$0xff] }
 0x541   : > { %6667 = vmatmul.mubr.f32.gmra.mxu1 %v12874_v46 }
 0x542   : > { %6672 = vmatprep.mubr.f32.mxu1 %v12877_v47 }
 0x545   : > { %v9245_v21 = vpop.f32.mrf.mxu1  ;;  %6673 = vmatmul.mubr.f32.gmra.mxu1 %v12884_v45 }
 0x546   : > { %5499 = vst.msk [vmem:[%s12395_s19 + $0xf8] sm:$0xff] %vm2084_vm2, %v9245_v21  ;;  %7000 = vmatprep.mubr.f32.mxu1 %v12344_v30  ;;  %v14046_v21 = vld [vmem:[#allocation28_spill] sm:$0xff] }
 0x547   : > { %v5459_v20 = vpop.f32.mrf.mxu1 }
 0x548   : > { %5498 = vst.msk [vmem:[%s12395_s19 + $0xf0] sm:$0xff] %vm2084_vm2, %v5459_v20 }
 0x549   : > { %v9256_v35 = vpop.f32.mrf.mxu1  ;;  %7001 = vmatmul.mubr.f32.vlgmr.msra.gmra.mxu1 %v12359_v56  ;;  %v14045_v56 = vld [vmem:[#allocation25_spill] sm:$0xff] }
 0x54a   : > { %7005 = vmatprep.mubr.f32.mxu1 %v12366_v10  ;;  %v12907_v10 = vmul.f32 %v9256_v35, %v14045_v56 }
 0x54b   : > { %v5963_v28 = vpop.f32.mrf.mxu1 }
 0x54c   : > { %v12895_v15 = vmul.f32 %v5963_v28, %v14044_v32 }
 0x54d   : > { %v9259_v43 = vpop.f32.mrf.mxu1  ;;  %7006 = vmatmul.mubr.f32.gmra.mxu1 %v12378_v27  ;;  %v6319_v27 = vld [vmem:[%s13704_s14 + $0x328] sm:$0xff] }
 0x54e   : > { %8139 = vmatmul.mubr.msk.f32.vlgmr.msra.gmra.mxu0 %vm2538_vm3, %v12895_v15  ;;  %7010 = vmatprep.mubr.f32.mxu1 %v12386_v2  ;;  %v6316_v2 = vld [vmem:[%s13704_s14 + $0x310] sm:$0xff] }
 0x54f   : > { %v5973_v30 = vpop.f32.mrf.mxu1  ;;  %9303 = vmatpush3.msra.mxu0 %v12405_v58  ;;  %6749 = vmatprep.mubr.f32.mxu0 %v13951_v36 }
 0x550   : > { %9304 = vmatprep.subr.mxu0 %v6322_v14  ;;  %v12921_v20 = vmul.f32 %v5973_v30, %v14046_v21  ;;  %v14052_v21 = vld [vmem:[#allocation46_spill] sm:$0xff] }
 0x551   : > { %v9262_v6 = vpop.f32.mrf.mxu1  ;;  %7011 = vmatmul.mubr.f32.gmra.mxu1 %v12409_v7  ;;  %9305 = vmatpush3.msra.mxu0 %v6322_v14  ;;  %v14048_v14 = vld [vmem:[#allocation34_spill] sm:$0xff] }
 0x552   : > { %8140 = vmatmul.mubr.msk.f32.gmra.mxu0 %vm2538_vm3, %v12907_v10  ;;  %7015 = vmatprep.mubr.f32.mxu1 %v12418_v13  ;;  %v14047_v13 = vld [vmem:[#allocation31_spill] sm:$0xff] }
 0x553   : > { %v5983_v58 = vpop.f32.mrf.mxu1  ;;  %6755 = vmatprep.mubr.f32.mxu0 %v13951_v36  ;;  %9306 = vmatprep.subr.mxu0 %v6319_v27  ;;  %v12929_v28 = vmul.f32 %v9259_v43, %v14047_v13  ;;  %v14049_v43 = vld [vmem:[#allocation37_spill] sm:$0xff] }
 0x554   : > { %9307 = vmatpush3.msra.mxu0 %v6319_v27  ;;  %v12945_v56 = vmul.f32 %v9262_v6, %v14049_v43  ;;  %v14050_v27 = vld [vmem:[#allocation40_spill] sm:$0xff]  ;;  %v14051_v6 = vld [vmem:[#allocation43_spill] sm:$0xff] }
 0x555   : > { %v9265_v35 = vpop.f32.mrf.mxu1  ;;  %7016 = vmatmul.mubr.f32.gmra.mxu1 %v12434_v9  ;;  %9308 = vmatprep.subr.mxu0 %v6316_v2 }
 0x556   : > { %8141 = vmatmul.mubr.msk.f32.gmra.mxu0 %vm2538_vm3, %v12921_v20  ;;  %7020 = vmatprep.mubr.f32.mxu1 %v12442_v55  ;;  %v12937_v55 = vmul.f32 %v5983_v58, %v14048_v14  ;;  %v12961_v58 = vmul.f32 %v9265_v35, %v14051_v6 }
 0x557   : > { %v5993_v7 = vpop.f32.mrf.mxu1  ;;  %6761 = vmatprep.mubr.f32.mxu0 %v13951_v36  ;;  %9309 = vmatpush3.msra.mxu0 %v6316_v2 }
 0x558   : > { %v12953_v2 = vmul.f32 %v5993_v7, %v14050_v27 }
 0x559   : > { %v9268_v32 = vpop.f32.mrf.mxu1  ;;  %7021 = vmatmul.mubr.f32.gmra.mxu1 %v12454_v41 }
 0x55a   : > { %8142 = vmatmul.mubr.msk.f32.gmra.mxu0 %vm2538_vm3, %v12929_v28  ;;  %7025 = vmatprep.mubr.f32.mxu1 %v12462_v4 }
 0x55b   : > { %v6003_v9 = vpop.f32.mrf.mxu1  ;;  %6767 = vmatprep.mubr.f32.mxu0 %v13951_v36 }
 0x55d   : > { %v9271_v30 = vpop.f32.mrf.mxu1  ;;  %7026 = vmatmul.mubr.f32.gmra.mxu1 %v12478_v57 }
 0x55e   : > { %8143 = vmatmul.mubr.msk.f32.gmra.mxu0 %vm2538_vm3, %v12937_v55  ;;  %7030 = vmatprep.mubr.f32.mxu1 %v12486_v52 }
 0x55f   : > { %v6013_v41 = vpop.f32.mrf.mxu1  ;;  %6773 = vmatprep.mubr.f32.mxu0 %v13951_v36 }
 0x561   : > { %v9274_v4 = vpop.f32.mrf.mxu1  ;;  %7031 = vmatmul.mubr.f32.gmra.mxu1 %v12500_v54 }
 0x562   : > { %8144 = vmatmul.mubr.msk.f32.gmra.mxu0 %vm2538_vm3, %v12945_v56  ;;  %7035 = vmatprep.mubr.f32.mxu1 %v12508_v26 }
 0x563   : > { %v6023_v57 = vpop.f32.mrf.mxu1  ;;  %6779 = vmatprep.mubr.f32.mxu0 %v13951_v36 }
 0x565   : > { %v9277_v52 = vpop.f32.mrf.mxu1  ;;  %7036 = vmatmul.mubr.f32.gmra.mxu1 %v12522_v19 }
 0x566   : > { %8145 = vmatmul.mubr.msk.f32.gmra.mxu0 %vm2538_vm3, %v12953_v2  ;;  %7040 = vmatprep.mubr.f32.mxu1 %v12530_v17  ;;  %v12971_v17 = vmul.f32 %v6003_v9, %v14052_v21 }
 0x567   : > { %v6033_v54 = vpop.f32.mrf.mxu1  ;;  %6785 = vmatprep.mubr.f32.mxu0 %v13951_v36 }
 0x569   : > { %v12963_v26 = vpop.f32.mrf.mxu1  ;;  %7041 = vmatmul.mubr.f32.gmra.mxu1 %v12544_v50 }
 0x56a   : > { %8146 = vmatmul.mubr.msk.f32.gmra.mxu0 %vm2538_vm3, %v12961_v58  ;;  %7045 = vmatprep.mubr.f32.mxu1 %v12552_v40  ;;  %v14053_v40 = vld [vmem:[#allocation49_spill] sm:$0xff] }
 0x56b   : > { %v6043_v19 = vpop.f32.mrf.mxu1  ;;  %6791 = vmatprep.mubr.f32.mxu0 %v13951_v36  ;;  %v12983_v35 = vmul.f32 %v9268_v32, %v14053_v40 }
 0x56d   : > { %v12973_v7 = vpop.f32.mrf.mxu1  ;;  %7046 = vmatmul.mubr.f32.gmra.mxu1 %v12566_v49 }
 0x56e   : > { %8147 = vmatmul.mubr.msk.f32.gmra.mxu0 %vm2538_vm3, %v12971_v17  ;;  %7050 = vmatprep.mubr.f32.mxu1 %v12574_v59  ;;  %v14054_v59 = vld [vmem:[#allocation52_spill] sm:$0xff] }
 0x56f   : > { %v12979_v50 = vpop.f32.mrf.mxu1  ;;  %6797 = vmatprep.mubr.f32.mxu0 %v13951_v36  ;;  %v12995_v9 = vmul.f32 %v6013_v41, %v14054_v59 }
 0x571   : > { %v12985_v13 = vpop.f32.mrf.mxu1  ;;  %7051 = vmatmul.mubr.f32.gmra.mxu1 %v12588_v5 }
 0x572   : > { %8148 = vmatmul.mubr.msk.f32.gmra.mxu0 %vm2538_vm3, %v12983_v35  ;;  %7055 = vmatprep.mubr.f32.mxu1 %v12598_v31  ;;  %v14055_v31 = vld [vmem:[#allocation55_spill] sm:$0xff] }
 0x573   : > { %v12991_v49 = vpop.f32.mrf.mxu1  ;;  %6803 = vmatprep.mubr.f32.mxu0 %v13951_v36  ;;  %v13007_v32 = vmul.f32 %v9271_v30, %v14055_v31 }
 0x575   : > { %v12997_v14 = vpop.f32.mrf.mxu1  ;;  %7056 = vmatmul.mubr.f32.gmra.mxu1 %v12610_v25 }
 0x576   : > { %8149 = vmatmul.mubr.msk.f32.gmra.mxu0 %vm2538_vm3, %v12995_v9  ;;  %7060 = vmatprep.mubr.f32.mxu1 %v12618_v34  ;;  %v14056_v34 = vld [vmem:[#allocation58_spill] sm:$0xff] }
 0x577   : > { %v13003_v5 = vpop.f32.mrf.mxu1  ;;  %6809 = vmatprep.mubr.f32.mxu0 %v13951_v36  ;;  %v13019_v41 = vmul.f32 %v6023_v57, %v14056_v34 }
 0x579   : > { %v13009_v43 = vpop.f32.mrf.mxu1  ;;  %7061 = vmatmul.mubr.f32.gmra.mxu1 %v12632_v22 }
 0x57a   : > { %8150 = vmatmul.mubr.msk.f32.gmra.mxu0 %vm2538_vm3, %v13007_v32  ;;  %7065 = vmatprep.mubr.f32.mxu1 %v12642_v8  ;;  %v14057_v8 = vld [vmem:[#allocation61_spill] sm:$0xff] }
 0x57b   : > { %v13015_v25 = vpop.f32.mrf.mxu1  ;;  %6815 = vmatprep.mubr.f32.mxu0 %v13951_v36  ;;  %v13031_v30 = vmul.f32 %v9274_v4, %v14057_v8 }
 0x57d   : > { %v13021_v27 = vpop.f32.mrf.mxu1  ;;  %7066 = vmatmul.mubr.f32.gmra.mxu1 %v12654_v1 }
 0x57e   : > { %8151 = vmatmul.mubr.msk.f32.gmra.mxu0 %vm2538_vm3, %v13019_v41  ;;  %7070 = vmatprep.mubr.f32.mxu1 %v12662_v51  ;;  %v14058_v51 = vld [vmem:[#allocation64_spill] sm:$0xff] }
 0x57f   : > { %v13027_v22 = vpop.f32.mrf.mxu1  ;;  %6821 = vmatprep.mubr.f32.mxu0 %v13951_v36  ;;  %v13043_v57 = vmul.f32 %v6033_v54, %v14058_v51 }
 0x581   : > { %v13033_v6 = vpop.f32.mrf.mxu1  ;;  %7071 = vmatmul.mubr.f32.gmra.mxu1 %v12676_v60 }
 0x582   : > { %8152 = vmatmul.mubr.msk.f32.gmra.mxu0 %vm2538_vm3, %v13031_v30  ;;  %7075 = vmatprep.mubr.f32.mxu1 %v12684_v53  ;;  %v14059_v53 = vld [vmem:[#allocation67_spill] sm:$0xff] }
 0x583   : > { %v13039_v1 = vpop.f32.mrf.mxu1  ;;  %6827 = vmatprep.mubr.f32.mxu0 %v13951_v36  ;;  %v13055_v4 = vmul.f32 %v9277_v52, %v14059_v53 }
 0x585   : > { %v13045_v21 = vpop.f32.mrf.mxu1  ;;  %7076 = vmatmul.mubr.f32.gmra.mxu1 %v12698_v11 }
 0x586   : > { %8153 = vmatmul.mubr.msk.f32.gmra.mxu0 %vm2538_vm3, %v13043_v57  ;;  %7080 = vmatprep.mubr.f32.mxu1 %v12706_v37  ;;  %v14060_v37 = vld [vmem:[#allocation70_spill] sm:$0xff] }
 0x587   : > { %v13051_v60 = vpop.f32.mrf.mxu1  ;;  %6833 = vmatprep.mubr.f32.mxu0 %v13951_v36  ;;  %v13067_v54 = vmul.f32 %v6043_v19, %v14060_v37  ;;  %v14066_v37 = vld [vmem:[#allocation82_spill] sm:$0xff] }
 0x589   : > { %v13057_v40 = vpop.f32.mrf.mxu1  ;;  %7081 = vmatmul.mubr.f32.gmra.mxu1 %v12718_v18 }
 0x58a   : > { %8154 = vmatmul.mubr.msk.f32.gmra.mxu0 %vm2538_vm3, %v13055_v4  ;;  %7085 = vmatprep.mubr.f32.mxu1 %v12723_v12  ;;  %v14061_v12 = vld [vmem:[#allocation73_spill] sm:$0xff] }
 0x58b   : > { %v13063_v11 = vpop.f32.mrf.mxu1  ;;  %6839 = vmatprep.mubr.f32.mxu0 %v13951_v36  ;;  %v13080_v52 = vmul.f32 %v12963_v26, %v14061_v12  ;;  %v14063_v26 = vld [vmem:[#allocation2_spill] sm:$0xff]  ;;  %v13119_v12 = vmul.f32 %v12991_v49, %v14066_v37  ;;  %v14072_v37 = vld [vmem:[#allocation88_spill] sm:$0xff] }
 0x58d   : > { %v13069_v59 = vpop.f32.mrf.mxu1  ;;  %7086 = vmatmul.mubr.f32.gmra.mxu1 %v12731_v24 }
 0x58e   : > { %8155 = vmatmul.mubr.msk.f32.gmra.mxu0 %vm2538_vm3, %v13067_v54  ;;  %7090 = vmatprep.mubr.f32.mxu1 %v12735_v48  ;;  %v14062_v48 = vld [vmem:[#allocation76_spill] sm:$0xff] }
 0x58f   : > { %v13075_v18 = vpop.f32.mrf.mxu1  ;;  %6845 = vmatprep.mubr.f32.mxu0 %v13951_v36  ;;  %v13093_v19 = vmul.f32 %v12979_v50, %v14062_v48 }
 0x591   : > { %v13082_v31 = vpop.f32.mrf.mxu1  ;;  %7091 = vmatmul.mubr.f32.gmra.mxu1 %v12743_v62  ;;  %v14064_v62 = vld [vmem:[#allocation4_spill] sm:$0xff] }
 0x592   : > { %8156 = vmatmul.mubr.msk.f32.gmra.mxu0 %vm2538_vm3, %v13080_v52  ;;  %7095 = vmatprep.mubr.f32.mxu1 %v12749_v44  ;;  %v14065_v44 = vld [vmem:[#allocation79_spill] sm:$0xff] }
 0x593   : > { %v13088_v24 = vpop.f32.mrf.mxu1  ;;  %6851 = vmatprep.mubr.f32.mxu0 %v13951_v36  ;;  %v13106_v51 = vmul.f32 %v12973_v7, %v14065_v44  ;;  %v14067_v7 = vld [vmem:[#allocation3_spill] sm:$0xff] }
 0x595   : > { %v13095_v34 = vpop.f32.mrf.mxu1  ;;  %7096 = vmatmul.mubr.f32.gmra.mxu1 %v14063_v26 }
 0x596   : > { %8157 = vmatmul.mubr.msk.f32.gmra.mxu0 %vm2538_vm3, %v13093_v19  ;;  %7100 = vmatprep.mubr.f32.mxu1 %v14064_v62 }
 0x597   : > { %v13101_v8 = vpop.f32.mrf.mxu1  ;;  %6857 = vmatprep.mubr.f32.mxu0 %v13951_v36 }
 0x599   : > { %v13108_v53 = vpop.f32.mrf.mxu1  ;;  %7101 = vmatmul.mubr.f32.gmra.mxu1 %v12767_v33  ;;  %v14068_v33 = vld [vmem:[#allocation6_spill] sm:$0xff] }
 0x59a   : > { %8158 = vmatmul.mubr.msk.f32.gmra.mxu0 %vm2538_vm3, %v13106_v51  ;;  %7105 = vmatprep.mubr.f32.mxu1 %v12773_v23  ;;  %v14069_v23 = vld [vmem:[#allocation85_spill] sm:$0xff] }
 0x59b   : > { %v13114_v50 = vpop.f32.mrf.mxu1  ;;  %6863 = vmatprep.mubr.f32.mxu0 %v13951_v36  ;;  %v13132_v62 = vmul.f32 %v12985_v13, %v14069_v23  ;;  %v14074_v13 = vld [vmem:[#allocation5_spill] sm:$0xff] }
 0x59d   : > { %v13121_v48 = vpop.f32.mrf.mxu1  ;;  %7106 = vmatmul.mubr.f32.gmra.mxu1 %v14067_v7  ;;  %v13145_v7 = vmul.f32 %v13003_v5, %v14072_v37  ;;  %v14079_v5 = vld [vmem:[#allocation7_spill] sm:$0xff]  ;;  %v14080_v37 = vld [vmem:[#allocation10_spill] sm:$0xff] }
 0x59e   : > { %8159 = vmatmul.mubr.msk.f32.gmra.mxu0 %vm2538_vm3, %v13119_v12  ;;  %7110 = vmatprep.mubr.f32.mxu1 %v14068_v33 }
 0x59f   : > { %v13127_v26 = vpop.f32.mrf.mxu1  ;;  %6869 = vmatprep.mubr.f32.mxu0 %v13951_v36 }
 0x5a1   : > { %v13134_v44 = vpop.f32.mrf.mxu1  ;;  %7111 = vmatmul.mubr.f32.gmra.mxu1 %v12791_v0  ;;  %v14075_v0 = vld [vmem:[#allocation8_spill] sm:$0xff] }
 0x5a2   : > { %14070 = vst [vmem:[#allocation14_spill] sm:$0xff] %v13134_v44  ;;  %8160 = vmatmul.mubr.msk.f32.gmra.mxu0 %vm2538_vm3, %v13132_v62  ;;  %7115 = vmatprep.mubr.f32.mxu1 %v12795_v16  ;;  %v14077_v16 = vld [vmem:[#allocation91_spill] sm:$0xff] }
 0x5a3   : > { %v13140_v49 = vpop.f32.mrf.mxu1  ;;  %6875 = vmatprep.mubr.f32.mxu0 %v13951_v36 }
 0x5a4   : > { %14071 = vst [vmem:[#allocation13_spill] sm:$0xff] %v13140_v49  ;;  %v13158_v49 = vmul.f32 %v12997_v14, %v14077_v16  ;;  %v14083_v14 = vld [vmem:[#allocation9_spill] sm:$0xff]  ;;  %v14084_v16 = vld [vmem:[#allocation12_spill] sm:$0xff] }
 0x5a5   : > { %v13147_v33 = vpop.f32.mrf.mxu1  ;;  %7116 = vmatmul.mubr.f32.gmra.mxu1 %v14074_v13 }
 0x5a6   : > { %14073 = vst [vmem:[#allocation16_spill] sm:$0xff] %v13147_v33  ;;  %8161 = vmatmul.mubr.msk.f32.gmra.mxu0 %vm2538_vm3, %v13145_v7  ;;  %7120 = vmatprep.mubr.f32.mxu1 %v14075_v0  ;;  %v14082_v0 = vld [vmem:[#allocation94_spill] sm:$0xff] }
 0x5a7   : > { %v13153_v23 = vpop.f32.mrf.mxu1  ;;  %6881 = vmatprep.mubr.f32.mxu0 %v13951_v36 }
 0x5a8   : > { %14076 = vst [vmem:[#allocation15_spill] sm:$0xff] %v13153_v23  ;;  %v13171_v23 = vmul.f32 %v13015_v25, %v14082_v0  ;;  %v14086_v0 = vld [vmem:[#allocation100_spill] sm:$0xff] }
 0x5a9   : > { %v13160_v44 = vpop.f32.mrf.mxu1  ;;  %7121 = vmatmul.mubr.f32.gmra.mxu1 %v14079_v5 }
 0x5aa   : > { %14078 = vst [vmem:[#allocation19_spill] sm:$0xff] %v13160_v44  ;;  %8162 = vmatmul.mubr.msk.f32.gmra.mxu0 %vm2538_vm3, %v13158_v49  ;;  %7125 = vmatprep.mubr.f32.mxu1 %v14080_v37  ;;  %v14085_v37 = vld [vmem:[#allocation97_spill] sm:$0xff] }
 0x5ab   : > { %v13166_v13 = vpop.f32.mrf.mxu1  ;;  %6887 = vmatprep.mubr.f32.mxu0 %v13951_v36 }
 0x5ac   : > { %14081 = vst [vmem:[#allocation17_spill] sm:$0xff] %v13166_v13  ;;  %v13184_v13 = vmul.f32 %v13009_v43, %v14085_v37 }
 0x5ad   : > { %v13173_v33 = vpop.f32.mrf.mxu1  ;;  %7126 = vmatmul.mubr.f32.gmra.mxu1 %v14083_v14  ;;  %v13197_v14 = vmul.f32 %v13027_v22, %v14086_v0 }
 0x5ae   : > { %8163 = vmatmul.mubr.msk.f32.gmra.mxu0 %vm2538_vm3, %v13171_v23  ;;  %7130 = vmatprep.mubr.f32.mxu1 %v14084_v16 }
 0x5af   : > { %v13179_v5 = vpop.f32.mrf.mxu1  ;;  %6893 = vmatprep.mubr.f32.mxu0 %v13951_v36 }
 0x5b1   : > { %v13186_v44 = vpop.f32.mrf.mxu1  ;;  %7131 = vmatmul.mubr.f32.gmra.mxu1 %v12834_v61 }
 0x5b2   : > { %8164 = vmatmul.mubr.msk.f32.gmra.mxu0 %vm2538_vm3, %v13184_v13  ;;  %7135 = vmatprep.mubr.f32.mxu1 %v12839_v42  ;;  %v14088_v42 = vld [vmem:[#allocation103_spill] sm:$0xff] }
 0x5b3   : > { %v13192_v25 = vpop.f32.mrf.mxu1  ;;  %6899 = vmatprep.mubr.f32.mxu0 %v13951_v36  ;;  %v13210_v43 = vmul.f32 %v13021_v27, %v14088_v42  ;;  %v14091_v27 = vld [vmem:[#allocation109_spill] sm:$0xff] }
 0x5b4   : > { %v13236_v42 = vmul.f32 %v13033_v6, %v14091_v27 }
 0x5b5   : > { %v13199_v16 = vpop.f32.mrf.mxu1  ;;  %7136 = vmatmul.mubr.f32.gmra.mxu1 %v12844_v3  ;;  %v14089_v3 = vld [vmem:[#allocation11_spill] sm:$0xff] }
 0x5b6   : > { %8165 = vmatmul.mubr.msk.f32.gmra.mxu0 %vm2538_vm3, %v13197_v14  ;;  %7140 = vmatprep.mubr.f32.mxu1 %v12847_v63  ;;  %v14090_v63 = vld [vmem:[#allocation106_spill] sm:$0xff] }
 0x5b7   : > { %v13205_v61 = vpop.f32.mrf.mxu1  ;;  %6905 = vmatprep.mubr.f32.mxu0 %v13951_v36  ;;  %v13223_v0 = vmul.f32 %v13039_v1, %v14090_v63 }
 0x5b8   : > { %14087 = vst [vmem:[#allocation20_spill] sm:$0xff] %v13205_v61 }
 0x5b9   : > { %v13212_v37 = vpop.f32.mrf.mxu1  ;;  %7141 = vmatmul.mubr.f32.gmra.mxu1 %v12854_v38 }
 0x5ba   : > { %8166 = vmatmul.mubr.msk.f32.gmra.mxu0 %vm2538_vm3, %v13210_v43  ;;  %7145 = vmatprep.mubr.f32.mxu1 %v14089_v3 }
 0x5bb   : > { %v13218_v22 = vpop.f32.mrf.mxu1  ;;  %6911 = vmatprep.mubr.f32.mxu0 %v13951_v36 }
 0x5bd   : > { %v13225_v61 = vpop.f32.mrf.mxu1  ;;  %7146 = vmatmul.mubr.f32.gmra.mxu1 %v12864_v39 }
 0x5be   : > { %8167 = vmatmul.mubr.msk.f32.gmra.mxu0 %vm2538_vm3, %v13223_v0  ;;  %7150 = vmatprep.mubr.f32.mxu1 %v12867_v29  ;;  %v14092_v29 = vld [vmem:[#allocation112_spill] sm:$0xff] }
 0x5bf   : > { %v13231_v38 = vpop.f32.mrf.mxu1  ;;  %6917 = vmatprep.mubr.f32.mxu0 %v13951_v36  ;;  %v13249_v1 = vmul.f32 %v13051_v60, %v14092_v29 }
 0x5c1   : > { %v13238_v3 = vpop.f32.mrf.mxu1  ;;  %7151 = vmatmul.mubr.f32.gmra.mxu1 %v12874_v46 }
 0x5c2   : > { %8168 = vmatmul.mubr.msk.f32.gmra.mxu0 %vm2538_vm3, %v13236_v42  ;;  %7155 = vmatprep.mubr.f32.mxu1 %v12877_v47  ;;  %v14093_v47 = vld [vmem:[#allocation114_spill] sm:$0xff] }
 0x5c3   : > { %v13244_v39 = vpop.f32.mrf.mxu1  ;;  %6923 = vmatprep.mubr.f32.mxu0 %v13951_v36  ;;  %v13261_v6 = vmul.f32 %v13045_v21, %v14093_v47 }
 0x5c5   : > { %v13251_v63 = vpop.f32.mrf.mxu1  ;;  %7156 = vmatmul.mubr.f32.gmra.mxu1 %v12884_v45 }
 0x5c6   : > { %8169 = vmatmul.mubr.msk.f32.gmra.mxu0 %vm2538_vm3, %v13249_v1 }
 0x5c7   : > { %v13256_v46 = vpop.f32.mrf.mxu1  ;;  %6929 = vmatprep.mubr.f32.mxu0 %v13951_v36 }
 0x5c9   : > { %v13263_v27 = vpop.f32.mrf.mxu1 }
 0x5ca   : > { %8170 = vmatmul.mubr.msk.f32.gmra.mxu0 %vm2538_vm3, %v13261_v6 }
 0x5cb   : > { %v13267_v60 = vpop.f32.mrf.mxu1  ;;  %9310 = vmatprep.mubr.msk.f32.mxu0 %vm2538_vm3, %v12895_v15 }
 0x5cd   : > { %v13271_v45 = vpop.f32.mrf.mxu1 }
 0x5ce   : > { %9311 = vmatmul.mubr.msk.f32.vlgmr.msra.gmra.mxu0 %vm2538_vm3, %v12907_v10 }
 0x5cf   : > { %v13275_v36 = vpop.f32.mrf.mxu1  ;;  %9313 = vmatprep.mubr.msk.f32.mxu0 %vm2538_vm3, %v12921_v20 }
 0x5d1   : > { %v13279_v21 = vpop.f32.mrf.mxu1 }
 0x5d2   : > { %9314 = vmatmul.mubr.msk.f32.gmra.mxu0 %vm2538_vm3, %v12929_v28 }
 0x5d3   : > { %v13283_v29 = vpop.f32.mrf.mxu1  ;;  %9316 = vmatprep.mubr.msk.f32.mxu0 %vm2538_vm3, %v12937_v55 }
 0x5d5   : > { %v13287_v15 = vpop.f32.mrf.mxu1 }
 0x5d6   : > { %9317 = vmatmul.mubr.msk.f32.gmra.mxu0 %vm2538_vm3, %v12945_v56 }
 0x5d7   : > { %v13291_v10 = vpop.f32.mrf.mxu1  ;;  %9319 = vmatprep.mubr.msk.f32.mxu0 %vm2538_vm3, %v12953_v2 }
 0x5d9   : > { %v13295_v20 = vpop.f32.mrf.mxu1 }
 0x5da   : > { %9320 = vmatmul.mubr.msk.f32.gmra.mxu0 %vm2538_vm3, %v12961_v58 }
 0x5db   : > { %v13299_v28 = vpop.f32.mrf.mxu1  ;;  %9322 = vmatprep.mubr.msk.f32.mxu0 %vm2538_vm3, %v12971_v17 }
 0x5dd   : > { %v13303_v55 = vpop.f32.mrf.mxu1 }
 0x5de   : > { %9323 = vmatmul.mubr.msk.f32.gmra.mxu0 %vm2538_vm3, %v12983_v35 }
 0x5df   : > { %v13307_v56 = vpop.f32.mrf.mxu1  ;;  %9325 = vmatprep.mubr.msk.f32.mxu0 %vm2538_vm3, %v12995_v9 }
 0x5e1   : > { %v13311_v2 = vpop.f32.mrf.mxu1 }
 0x5e2   : > { %9326 = vmatmul.mubr.msk.f32.gmra.mxu0 %vm2538_vm3, %v13007_v32 }
 0x5e3   : > { %v13315_v58 = vpop.f32.mrf.mxu1  ;;  %9328 = vmatprep.mubr.msk.f32.mxu0 %vm2538_vm3, %v13019_v41 }
 0x5e5   : > { %v13319_v17 = vpop.f32.mrf.mxu1 }
 0x5e6   : > { %9329 = vmatmul.mubr.msk.f32.gmra.mxu0 %vm2538_vm3, %v13031_v30 }
 0x5e7   : > { %v13323_v35 = vpop.f32.mrf.mxu1  ;;  %9331 = vmatprep.mubr.msk.f32.mxu0 %vm2538_vm3, %v13043_v57 }
 0x5e9   : > { %v13327_v9 = vpop.f32.mrf.mxu1 }
 0x5ea   : > { %9332 = vmatmul.mubr.msk.f32.gmra.mxu0 %vm2538_vm3, %v13055_v4 }
 0x5eb   : > { %v13331_v32 = vpop.f32.mrf.mxu1  ;;  %9334 = vmatprep.mubr.msk.f32.mxu0 %vm2538_vm3, %v13067_v54 }
 0x5ed   : > { %v13335_v41 = vpop.f32.mrf.mxu1 }
 0x5ee   : > { %9335 = vmatmul.mubr.msk.f32.gmra.mxu0 %vm2538_vm3, %v13080_v52 }
 0x5ef   : > { %v13339_v30 = vpop.f32.mrf.mxu1  ;;  %9337 = vmatprep.mubr.msk.f32.mxu0 %vm2538_vm3, %v13093_v19 }
 0x5f1   : > { %v13343_v57 = vpop.f32.mrf.mxu1 }
 0x5f2   : > { %9338 = vmatmul.mubr.msk.f32.gmra.mxu0 %vm2538_vm3, %v13106_v51 }
 0x5f3   : > { %v13347_v4 = vpop.f32.mrf.mxu1  ;;  %9340 = vmatprep.mubr.msk.f32.mxu0 %vm2538_vm3, %v13119_v12 }
 0x5f5   : > { %v13351_v54 = vpop.f32.mrf.mxu1 }
 0x5f6   : > { %9341 = vmatmul.mubr.msk.f32.gmra.mxu0 %vm2538_vm3, %v13132_v62 }
 0x5f7   : > { %v13355_v52 = vpop.f32.mrf.mxu1  ;;  %9343 = vmatprep.mubr.msk.f32.mxu0 %vm2538_vm3, %v13145_v7 }
 0x5f9   : > { %v13359_v19 = vpop.f32.mrf.mxu1 }
 0x5fa   : > { %9344 = vmatmul.mubr.msk.f32.gmra.mxu0 %vm2538_vm3, %v13158_v49 }
 0x5fb   : > { %v13363_v51 = vpop.f32.mrf.mxu1  ;;  %9346 = vmatprep.mubr.msk.f32.mxu0 %vm2538_vm3, %v13171_v23 }
 0x5fd   : > { %v13367_v12 = vpop.f32.mrf.mxu1 }
 0x5fe   : > { %9347 = vmatmul.mubr.msk.f32.gmra.mxu0 %vm2538_vm3, %v13184_v13 }
 0x5ff   : > { %v13371_v62 = vpop.f32.mrf.mxu1  ;;  %9349 = vmatprep.mubr.msk.f32.mxu0 %vm2538_vm3, %v13197_v14 }
 0x601   : > { %v13375_v7 = vpop.f32.mrf.mxu1 }
 0x602   : > { %14094 = vst [vmem:[#allocation18_spill] sm:$0xff] %v13375_v7  ;;  %9350 = vmatmul.mubr.msk.f32.gmra.mxu0 %vm2538_vm3, %v13210_v43 }
 0x603   : > { %v13379_v49 = vpop.f32.mrf.mxu1  ;;  %9352 = vmatprep.mubr.msk.f32.mxu0 %vm2538_vm3, %v13223_v0 }
 0x604   : > { %14095 = vst [vmem:[#allocation23_spill] sm:$0xff] %v13379_v49 }
 0x605   : > { %v13383_v23 = vpop.f32.mrf.mxu1 }
 0x606   : > { %14096 = vst [vmem:[#allocation21_spill] sm:$0xff] %v13383_v23  ;;  %9353 = vmatmul.mubr.msk.f32.gmra.mxu0 %vm2538_vm3, %v13236_v42 }
 0x607   : > { %v13387_v13 = vpop.f32.mrf.mxu1  ;;  %9355 = vmatprep.mubr.msk.f32.mxu0 %vm2538_vm3, %v13249_v1 }
 0x608   : > { %14097 = vst [vmem:[#allocation26_spill] sm:$0xff] %v13387_v13 }
 0x609   : > { %v13391_v14 = vpop.f32.mrf.mxu1 }
 0x60a   : > { %14098 = vst [vmem:[#allocation24_spill] sm:$0xff] %v13391_v14  ;;  %9356 = vmatmul.mubr.msk.f32.gmra.mxu0 %vm2538_vm3, %v13261_v6 }
 0x60b   : > { %v7004_v43 = vpop.f32.mrf.mxu1 }
 0x60d   : > { %v13396_v47 = vpop.f32.mrf.mxu1 }
 0x60e   : > { %14099 = vst [vmem:[#allocation29_spill] sm:$0xff] %v13396_v47  ;;  %v6745_v0 = vpop.f32.mrf.mxu0 }
 0x60f   : > { %v6746_v42 = vadd.f32 %v6745_v0, %v13057_v40  ;;  %v7009_v1 = vpop.f32.mrf.mxu1 }
 0x610   : > { %v6747_v14 = vpop.f32.mrf.mxu0 }
 0x611   : > { %7386 = vst [vmem:[%s13401_s30] sm:$0xff] %v6746_v42  ;;  %v6748_v6 = vadd.f32 %v6747_v14, %v13063_v11  ;;  %v13406_v43 = vpop.f32.mrf.mxu1 }
 0x612   : > { %v6751_v47 = vpop.f32.mrf.mxu0 }
 0x613   : > { %7387 = vst [vmem:[%s13401_s30 + $0x8] sm:$0xff] %v6748_v6  ;;  %v6752_v13 = vadd.f32 %v6751_v47, %v13069_v59  ;;  %v7014_v23 = vpop.f32.mrf.mxu1 }
 0x614   : > { %v6753_v49 = vpop.f32.mrf.mxu0 }
 0x615   : > { %7389 = vst [vmem:[%s13401_s30 + $0x18] sm:$0xff] %v6752_v13  ;;  %v6754_v7 = vadd.f32 %v6753_v49, %v13075_v18  ;;  %v13412_v40 = vpop.f32.mrf.mxu1 }
 0x616   : > { %v6757_v0 = vpop.f32.mrf.mxu0 }
 0x617   : > { %7390 = vst [vmem:[%s13401_s30 + $0x20] sm:$0xff] %v6754_v7  ;;  %v6758_v11 = vadd.f32 %v6757_v0, %v13082_v31  ;;  %v7019_v14 = vpop.f32.mrf.mxu1 }
 0x618   : > { %v6759_v42 = vpop.f32.mrf.mxu0 }
 0x619   : > { %7392 = vst [vmem:[%s13401_s30 + $0x30] sm:$0xff] %v6758_v11  ;;  %v6760_v1 = vadd.f32 %v6759_v42, %v13088_v24  ;;  %v13418_v59 = vpop.f32.mrf.mxu1 }
 0x61a   : > { %v6763_v23 = vpop.f32.mrf.mxu0 }
 0x61b   : > { %7393 = vst [vmem:[%s13401_s30 + $0x38] sm:$0xff] %v6760_v1  ;;  %v6764_v18 = vadd.f32 %v6763_v23, %v13095_v34  ;;  %v7024_v49 = vpop.f32.mrf.mxu1 }
 0x61c   : > { %v6765_v13 = vpop.f32.mrf.mxu0  ;;  %v14100_v49 = vld [vmem:[#allocation14_spill] sm:$0xff] }
 0x61d   : > { %7395 = vst [vmem:[%s13401_s30 + $0x48] sm:$0xff] %v6764_v18  ;;  %v6766_v7 = vadd.f32 %v6765_v13, %v13101_v8  ;;  %v13424_v31 = vpop.f32.mrf.mxu1 }
 0x61e   : > { %v6769_v47 = vpop.f32.mrf.mxu0 }
 0x61f   : > { %7396 = vst [vmem:[%s13401_s30 + $0x50] sm:$0xff] %v6766_v7  ;;  %v6770_v24 = vadd.f32 %v6769_v47, %v13108_v53  ;;  %v7029_v6 = vpop.f32.mrf.mxu1  ;;  %v14101_v47 = vld [vmem:[#allocation13_spill] sm:$0xff] }
 0x620   : > { %v6771_v0 = vpop.f32.mrf.mxu0 }
 0x621   : > { %7398 = vst [vmem:[%s13401_s30 + $0x60] sm:$0xff] %v6770_v24  ;;  %v6772_v11 = vadd.f32 %v6771_v0, %v13114_v50  ;;  %v13430_v34 = vpop.f32.mrf.mxu1  ;;  %v14102_v0 = vld [vmem:[#allocation16_spill] sm:$0xff] }
 0x622   : > { %v6775_v14 = vpop.f32.mrf.mxu0 }
 0x623   : > { %7399 = vst [vmem:[%s13401_s30 + $0x68] sm:$0xff] %v6772_v11  ;;  %v6776_v8 = vadd.f32 %v6775_v14, %v13121_v48  ;;  %v7034_v42 = vpop.f32.mrf.mxu1 }
 0x624   : > { %v6777_v1 = vpop.f32.mrf.mxu0 }
 0x625   : > { %7401 = vst [vmem:[%s13401_s30 + $0x78] sm:$0xff] %v6776_v8  ;;  %v6778_v23 = vadd.f32 %v6777_v1, %v13127_v26  ;;  %v13436_v53 = vpop.f32.mrf.mxu1  ;;  %v14103_v8 = vld [vmem:[#allocation15_spill] sm:$0xff] }
 0x626   : > { %v6781_v18 = vpop.f32.mrf.mxu0 }
 0x627   : > { %7402 = vst [vmem:[%s13401_s30 + $0x80] sm:$0xff] %v6778_v23  ;;  %v6782_v50 = vadd.f32 %v6781_v18, %v14100_v49  ;;  %v7039_v13 = vpop.f32.mrf.mxu1  ;;  %v14104_v18 = vld [vmem:[#allocation19_spill] sm:$0xff] }
 0x628   : > { %v6783_v7 = vpop.f32.mrf.mxu0 }
 0x629   : > { %7404 = vst [vmem:[%s13401_s30 + $0x90] sm:$0xff] %v6782_v50  ;;  %v6784_v24 = vadd.f32 %v6783_v7, %v14101_v47  ;;  %v13442_v48 = vpop.f32.mrf.mxu1  ;;  %v14105_v7 = vld [vmem:[#allocation17_spill] sm:$0xff] }
 0x62a   : > { %v6787_v6 = vpop.f32.mrf.mxu0 }
 0x62b   : > { %7405 = vst [vmem:[%s13401_s30 + $0x98] sm:$0xff] %v6784_v24  ;;  %v6788_v26 = vadd.f32 %v6787_v6, %v14102_v0  ;;  %v7044_v11 = vpop.f32.mrf.mxu1 }
 0x62c   : > { %v6789_v14 = vpop.f32.mrf.mxu0 }
 0x62d   : > { %7407 = vst [vmem:[%s13401_s30 + $0xa8] sm:$0xff] %v6788_v26  ;;  %v6790_v42 = vadd.f32 %v6789_v14, %v14103_v8  ;;  %v13448_v1 = vpop.f32.mrf.mxu1 }
 0x62e   : > { %v6793_v23 = vpop.f32.mrf.mxu0 }
 0x62f   : > { %7408 = vst [vmem:[%s13401_s30 + $0xb0] sm:$0xff] %v6790_v42  ;;  %v6794_v49 = vadd.f32 %v6793_v23, %v14104_v18  ;;  %v7049_v50 = vpop.f32.mrf.mxu1 }
 0x630   : > { %v6795_v13 = vpop.f32.mrf.mxu0 }
 0x631   : > { %7410 = vst [vmem:[%s13401_s30 + $0xc0] sm:$0xff] %v6794_v49  ;;  %v6796_v47 = vadd.f32 %v6795_v13, %v14105_v7  ;;  %v13454_v24 = vpop.f32.mrf.mxu1 }
 0x632   : > { %v6799_v6 = vpop.f32.mrf.mxu0 }
 0x633   : > { %7411 = vst [vmem:[%s13401_s30 + $0xc8] sm:$0xff] %v6796_v47  ;;  %v6800_v0 = vadd.f32 %v6799_v6, %v13173_v33  ;;  %v7054_v26 = vpop.f32.mrf.mxu1  ;;  %v14106_v6 = vld [vmem:[#allocation20_spill] sm:$0xff] }
 0x634   : > { %v6801_v11 = vpop.f32.mrf.mxu0 }
 0x635   : > { %7413 = vst [vmem:[%s13401_s30 + $0xd8] sm:$0xff] %v6800_v0  ;;  %v6802_v14 = vadd.f32 %v6801_v11, %v13179_v5  ;;  %v13460_v8 = vpop.f32.mrf.mxu1 }
 0x636   : > { %v6805_v42 = vpop.f32.mrf.mxu0 }
 0x637   : > { %7414 = vst [vmem:[%s13401_s30 + $0xe0] sm:$0xff] %v6802_v14  ;;  %v6806_v23 = vadd.f32 %v6805_v42, %v13186_v44  ;;  %v7059_v18 = vpop.f32.mrf.mxu1 }
 0x638   : > { %v6807_v49 = vpop.f32.mrf.mxu0 }
 0x639   : > { %7416 = vst [vmem:[%s13401_s30 + $0xf0] sm:$0xff] %v6806_v23  ;;  %v6808_v50 = vadd.f32 %v6807_v49, %v13192_v25  ;;  %v13466_v33 = vpop.f32.mrf.mxu1 }
 0x63a   : > { %v6811_v13 = vpop.f32.mrf.mxu0 }
 0x63b   : > { %7417 = vst [vmem:[%s13401_s30 + $0xf8] sm:$0xff] %v6808_v50  ;;  %v6812_v5 = vadd.f32 %v6811_v13, %v13199_v16  ;;  %v7064_v7 = vpop.f32.mrf.mxu1 }
 0x63c   : > { %v6813_v47 = vpop.f32.mrf.mxu0 }
 0x63d   : > { %7419 = vst [vmem:[%s13401_s30 + $0x108] sm:$0xff] %v6812_v5  ;;  %v6814_v0 = vadd.f32 %v6813_v47, %v14106_v6  ;;  %v13472_v44 = vpop.f32.mrf.mxu1 }
 0x63e   : > { %v6817_v26 = vpop.f32.mrf.mxu0 }
 0x63f   : > { %7420 = vst [vmem:[%s13401_s30 + $0x110] sm:$0xff] %v6814_v0  ;;  %v6818_v25 = vadd.f32 %v6817_v26, %v13212_v37  ;;  %v7069_v11 = vpop.f32.mrf.mxu1 }
 0x640   : > { %v6819_v14 = vpop.f32.mrf.mxu0 }
 0x641   : > { %7422 = vst [vmem:[%s13401_s30 + $0x120] sm:$0xff] %v6818_v25  ;;  %v6820_v42 = vadd.f32 %v6819_v14, %v13218_v22  ;;  %v13478_v16 = vpop.f32.mrf.mxu1 }
 0x642   : > { %v6823_v23 = vpop.f32.mrf.mxu0 }
 0x643   : > { %7423 = vst [vmem:[%s13401_s30 + $0x128] sm:$0xff] %v6820_v42  ;;  %v6824_v18 = vadd.f32 %v6823_v23, %v13225_v61  ;;  %v7074_v49 = vpop.f32.mrf.mxu1 }
 0x644   : > { %v6825_v50 = vpop.f32.mrf.mxu0 }
 0x645   : > { %7425 = vst [vmem:[%s13401_s30 + $0x138] sm:$0xff] %v6824_v18  ;;  %v6826_v13 = vadd.f32 %v6825_v50, %v13231_v38  ;;  %v13484_v37 = vpop.f32.mrf.mxu1 }
 0x646   : > { %v6829_v5 = vpop.f32.mrf.mxu0 }
 0x647   : > { %7426 = vst [vmem:[%s13401_s30 + $0x140] sm:$0xff] %v6826_v13  ;;  %v6830_v22 = vadd.f32 %v6829_v5, %v13238_v3  ;;  %v7079_v7 = vpop.f32.mrf.mxu1 }
 0x648   : > { %v6831_v47 = vpop.f32.mrf.mxu0 }
 0x649   : > { %7428 = vst [vmem:[%s13401_s30 + $0x150] sm:$0xff] %v6830_v22  ;;  %v6832_v6 = vadd.f32 %v6831_v47, %v13244_v39  ;;  %v13490_v61 = vpop.f32.mrf.mxu1 }
 0x64a   : > { %v6835_v0 = vpop.f32.mrf.mxu0 }
 0x64b   : > { %7429 = vst [vmem:[%s13401_s30 + $0x158] sm:$0xff] %v6832_v6  ;;  %v6836_v38 = vadd.f32 %v6835_v0, %v13251_v63  ;;  %v7084_v26 = vpop.f32.mrf.mxu1 }
 0x64c   : > { %v6837_v25 = vpop.f32.mrf.mxu0 }
 0x64d   : > { %7431 = vst [vmem:[%s13401_s30 + $0x168] sm:$0xff] %v6836_v38  ;;  %v6838_v11 = vadd.f32 %v6837_v25, %v13256_v46  ;;  %v13496_v3 = vpop.f32.mrf.mxu1 }
 0x64e   : > { %v6841_v14 = vpop.f32.mrf.mxu0 }
 0x64f   : > { %7432 = vst [vmem:[%s13401_s30 + $0x170] sm:$0xff] %v6838_v11  ;;  %v6842_v39 = vadd.f32 %v6841_v14, %v13263_v27  ;;  %v7089_v42 = vpop.f32.mrf.mxu1 }
 0x650   : > { %v6843_v23 = vpop.f32.mrf.mxu0 }
 0x651   : > { %7434 = vst [vmem:[%s13401_s30 + $0x180] sm:$0xff] %v6842_v39  ;;  %v6844_v18 = vadd.f32 %v6843_v23, %v13267_v60  ;;  %v13502_v63 = vpop.f32.mrf.mxu1 }
 0x652   : > { %v6847_v49 = vpop.f32.mrf.mxu0 }
 0x653   : > { %7435 = vst [vmem:[%s13401_s30 + $0x188] sm:$0xff] %v6844_v18  ;;  %v6848_v46 = vadd.f32 %v6847_v49, %v13271_v45  ;;  %v7094_v50 = vpop.f32.mrf.mxu1 }
 0x654   : > { %v6849_v13 = vpop.f32.mrf.mxu0 }
 0x655   : > { %7437 = vst [vmem:[%s13401_s30 + $0x198] sm:$0xff] %v6848_v46  ;;  %v6850_v5 = vadd.f32 %v6849_v13, %v13275_v36  ;;  %v13508_v27 = vpop.f32.mrf.mxu1 }
 0x656   : > { %v6853_v22 = vpop.f32.mrf.mxu0 }
 0x657   : > { %7438 = vst [vmem:[%s13401_s30 + $0x1a0] sm:$0xff] %v6850_v5  ;;  %v6854_v60 = vadd.f32 %v6853_v22, %v13279_v21  ;;  %v7099_v7 = vpop.f32.mrf.mxu1 }
 0x658   : > { %v6855_v47 = vpop.f32.mrf.mxu0 }
 0x659   : > { %7440 = vst [vmem:[%s13401_s30 + $0x1b0] sm:$0xff] %v6854_v60  ;;  %v6856_v6 = vadd.f32 %v6855_v47, %v13283_v29  ;;  %v13514_v45 = vpop.f32.mrf.mxu1 }
 0x65a   : > { %v6859_v0 = vpop.f32.mrf.mxu0 }
 0x65b   : > { %7441 = vst [vmem:[%s13401_s30 + $0x1b8] sm:$0xff] %v6856_v6  ;;  %v6860_v36 = vadd.f32 %v6859_v0, %v13287_v15  ;;  %v7104_v38 = vpop.f32.mrf.mxu1 }
 0x65c   : > { %v6861_v26 = vpop.f32.mrf.mxu0 }
 0x65d   : > { %7443 = vst [vmem:[%s13401_s30 + $0x1c8] sm:$0xff] %v6860_v36  ;;  %v6862_v25 = vadd.f32 %v6861_v26, %v13291_v10  ;;  %v13520_v21 = vpop.f32.mrf.mxu1 }
 0x65e   : > { %v6865_v11 = vpop.f32.mrf.mxu0 }
 0x65f   : > { %7444 = vst [vmem:[%s13401_s30 + $0x1d0] sm:$0xff] %v6862_v25  ;;  %v6866_v29 = vadd.f32 %v6865_v11, %v13295_v20  ;;  %v7109_v14 = vpop.f32.mrf.mxu1 }
 0x660   : > { %v6867_v39 = vpop.f32.mrf.mxu0 }
 0x661   : > { %7446 = vst [vmem:[%s13401_s30 + $0x1e0] sm:$0xff] %v6866_v29  ;;  %v6868_v42 = vadd.f32 %v6867_v39, %v13299_v28  ;;  %v13526_v15 = vpop.f32.mrf.mxu1 }
 0x662   : > { %v6871_v23 = vpop.f32.mrf.mxu0 }
 0x663   : > { %7447 = vst [vmem:[%s13401_s30 + $0x1e8] sm:$0xff] %v6868_v42  ;;  %v6872_v10 = vadd.f32 %v6871_v23, %v13303_v55  ;;  %v7114_v18 = vpop.f32.mrf.mxu1 }
 0x664   : > { %v6873_v49 = vpop.f32.mrf.mxu0 }
 0x665   : > { %7449 = vst [vmem:[%s13401_s30 + $0x1f8] sm:$0xff] %v6872_v10  ;;  %v6874_v46 = vadd.f32 %v6873_v49, %v13307_v56  ;;  %v13532_v20 = vpop.f32.mrf.mxu1 }
 0x666   : > { %v6877_v50 = vpop.f32.mrf.mxu0 }
 0x667   : > { %7450 = vst [vmem:[%s13401_s30 + $0x200] sm:$0xff] %v6874_v46  ;;  %v6878_v28 = vadd.f32 %v6877_v50, %v13311_v2  ;;  %v7119_v13 = vpop.f32.mrf.mxu1 }
 0x668   : > { %v6879_v5 = vpop.f32.mrf.mxu0 }
 0x669   : > { %7452 = vst [vmem:[%s13401_s30 + $0x210] sm:$0xff] %v6878_v28  ;;  %v6880_v22 = vadd.f32 %v6879_v5, %v13315_v58  ;;  %v13538_v55 = vpop.f32.mrf.mxu1 }
 0x66a   : > { %v6883_v60 = vpop.f32.mrf.mxu0 }
 0x66b   : > { %7453 = vst [vmem:[%s13401_s30 + $0x218] sm:$0xff] %v6880_v22  ;;  %v6884_v56 = vadd.f32 %v6883_v60, %v13319_v17  ;;  %v7124_v7 = vpop.f32.mrf.mxu1 }
 0x66c   : > { %v6885_v47 = vpop.f32.mrf.mxu0 }
 0x66d   : > { %7455 = vst [vmem:[%s13401_s30 + $0x228] sm:$0xff] %v6884_v56  ;;  %v6886_v6 = vadd.f32 %v6885_v47, %v13323_v35  ;;  %v13544_v2 = vpop.f32.mrf.mxu1 }
 0x66e   : > { %v6889_v0 = vpop.f32.mrf.mxu0 }
 0x66f   : > { %7456 = vst [vmem:[%s13401_s30 + $0x230] sm:$0xff] %v6886_v6  ;;  %v6890_v58 = vadd.f32 %v6889_v0, %v13327_v9  ;;  %v7129_v36 = vpop.f32.mrf.mxu1  ;;  %v14107_v0 = vld [vmem:[#allocation18_spill] sm:$0xff] }
 0x670   : > { %v6891_v38 = vpop.f32.mrf.mxu0 }
 0x671   : > { %7458 = vst [vmem:[%s13401_s30 + $0x240] sm:$0xff] %v6890_v58  ;;  %v6892_v26 = vadd.f32 %v6891_v38, %v13331_v32  ;;  %v13550_v17 = vpop.f32.mrf.mxu1  ;;  %v14108_v38 = vld [vmem:[#allocation23_spill] sm:$0xff] }
 0x672   : > { %v6895_v25 = vpop.f32.mrf.mxu0 }
 0x673   : > { %7459 = vst [vmem:[%s13401_s30 + $0x248] sm:$0xff] %v6892_v26  ;;  %v6896_v35 = vadd.f32 %v6895_v25, %v13335_v41  ;;  %v7134_v11 = vpop.f32.mrf.mxu1  ;;  %v14109_v25 = vld [vmem:[#allocation21_spill] sm:$0xff] }
 0x674   : > { %v6897_v29 = vpop.f32.mrf.mxu0  ;;  %v14110_v11 = vld [vmem:[#allocation26_spill] sm:$0xff] }
 0x675   : > { %7461 = vst [vmem:[%s13401_s30 + $0x258] sm:$0xff] %v6896_v35  ;;  %v6898_v14 = vadd.f32 %v6897_v29, %v13339_v30  ;;  %v13556_v9 = vpop.f32.mrf.mxu1 }
 0x676   : > { %v6901_v39 = vpop.f32.mrf.mxu0 }
 0x677   : > { %7462 = vst [vmem:[%s13401_s30 + $0x260] sm:$0xff] %v6898_v14  ;;  %v6902_v32 = vadd.f32 %v6901_v39, %v13343_v57  ;;  %v7139_v42 = vpop.f32.mrf.mxu1  ;;  %v14111_v39 = vld [vmem:[#allocation29_spill] sm:$0xff] }
 0x678   : > { %v6903_v23 = vpop.f32.mrf.mxu0 }
 0x679   : > { %7464 = vst [vmem:[%s13401_s30 + $0x270] sm:$0xff] %v6902_v32  ;;  %v6904_v10 = vadd.f32 %v6903_v23, %v13347_v4  ;;  %v13562_v41 = vpop.f32.mrf.mxu1  ;;  %v14112_v23 = vld [vmem:[#allocation24_spill] sm:$0xff] }
 0x67a   : > { %v6907_v18 = vpop.f32.mrf.mxu0 }
 0x67b   : > { %7465 = vst [vmem:[%s13401_s30 + $0x278] sm:$0xff] %v6904_v10  ;;  %v6908_v30 = vadd.f32 %v6907_v18, %v13351_v54  ;;  %v7144_v49 = vpop.f32.mrf.mxu1 }
 0x67c   : > { %v6909_v46 = vpop.f32.mrf.mxu0 }
 0x67d   : > { %7467 = vst [vmem:[%s13401_s30 + $0x288] sm:$0xff] %v6908_v30  ;;  %v6910_v50 = vadd.f32 %v6909_v46, %v13355_v52  ;;  %v13568_v57 = vpop.f32.mrf.mxu1 }
 0x67e   : > { %v6913_v28 = vpop.f32.mrf.mxu0 }
 0x67f   : > { %7468 = vst [vmem:[%s13401_s30 + $0x290] sm:$0xff] %v6910_v50  ;;  %v6914_v4 = vadd.f32 %v6913_v28, %v13359_v19  ;;  %v7149_v13 = vpop.f32.mrf.mxu1 }
 0x680   : > { %v6915_v5 = vpop.f32.mrf.mxu0 }
 0x681   : > { %7470 = vst [vmem:[%s13401_s30 + $0x2a0] sm:$0xff] %v6914_v4  ;;  %v6916_v22 = vadd.f32 %v6915_v5, %v13363_v51  ;;  %v13574_v54 = vpop.f32.mrf.mxu1 }
 0x682   : > { %v6919_v60 = vpop.f32.mrf.mxu0 }
 0x683   : > { %7471 = vst [vmem:[%s13401_s30 + $0x2a8] sm:$0xff] %v6916_v22  ;;  %v6920_v52 = vadd.f32 %v6919_v60, %v13367_v12  ;;  %v7154_v56 = vpop.f32.mrf.mxu1 }
 0x684   : > { %v6921_v7 = vpop.f32.mrf.mxu0 }
 0x685   : > { %7473 = vst [vmem:[%s13401_s30 + $0x2b8] sm:$0xff] %v6920_v52  ;;  %v6922_v47 = vadd.f32 %v6921_v7, %v13371_v62  ;;  %v13580_v19 = vpop.f32.mrf.mxu1 }
 0x686   : > { %v6925_v6 = vpop.f32.mrf.mxu0 }
 0x687   : > { %7474 = vst [vmem:[%s13401_s30 + $0x2c0] sm:$0xff] %v6922_v47  ;;  %v6926_v51 = vadd.f32 %v6925_v6, %v14107_v0  ;;  %v7159_v58 = vpop.f32.mrf.mxu1 }
 0x688   : > { %v6927_v36 = vpop.f32.mrf.mxu0 }
 0x689   : > { %7476 = vst [vmem:[%s13401_s30 + $0x2d0] sm:$0xff] %v6926_v51  ;;  %v6928_v12 = vadd.f32 %v6927_v36, %v14108_v38 }
 0x68a   : > { %v6931_v26 = vpop.f32.mrf.mxu0 }
 0x68b   : > { %7477 = vst [vmem:[%s13401_s30 + $0x2d8] sm:$0xff] %v6928_v12  ;;  %v6932_v35 = vadd.f32 %v6931_v26, %v14109_v25 }
 0x68c   : > { %v6933_v62 = vpop.f32.mrf.mxu0 }
 0x68d   : > { %7479 = vst [vmem:[%s13401_s30 + $0x2e8] sm:$0xff] %v6932_v35  ;;  %v6934_v29 = vadd.f32 %v6933_v62, %v14110_v11 }
 0x68e   : > { %v9312_v14 = vpop.f32.mrf.mxu0 }
 0x68f   : > { %7480 = vst [vmem:[%s13401_s30 + $0x2f0] sm:$0xff] %v6934_v29  ;;  %v7233_v32 = vadd.f32 %v9312_v14, %v14111_v39 }
 0x690   : > { %v7227_v42 = vpop.f32.mrf.mxu0 }
 0x691   : > { %7391 = vst.msk [vmem:[%s13401_s30 + $0x28] sm:$0xff] %vm2538_vm3, %v7233_v32  ;;  %v7228_v10 = vadd.f32 %v7227_v42, %v14112_v23 }
 0x692   : > { %v9315_v18 = vpop.f32.mrf.mxu0 }
 0x693   : > { %7388 = vst.msk [vmem:[%s13401_s30 + $0x10] sm:$0xff] %vm2538_vm3, %v7228_v10  ;;  %v7243_v30 = vadd.f32 %v9315_v18, %v13412_v40 }
 0x694   : > { %v7237_v49 = vpop.f32.mrf.mxu0 }
 0x695   : > { %7397 = vst.msk [vmem:[%s13401_s30 + $0x58] sm:$0xff] %vm2538_vm3, %v7243_v30  ;;  %v7238_v46 = vadd.f32 %v7237_v49, %v13406_v43 }
 0x696   : > { %v9318_v50 = vpop.f32.mrf.mxu0 }
 0x697   : > { %7394 = vst.msk [vmem:[%s13401_s30 + $0x40] sm:$0xff] %vm2538_vm3, %v7238_v46  ;;  %v7253_v28 = vadd.f32 %v9318_v50, %v13424_v31 }
 0x698   : > { %v7247_v4 = vpop.f32.mrf.mxu0 }
 0x699   : > { %7403 = vst.msk [vmem:[%s13401_s30 + $0x88] sm:$0xff] %vm2538_vm3, %v7253_v28  ;;  %v7248_v13 = vadd.f32 %v7247_v4, %v13418_v59 }
 0x69a   : > { %v9321_v5 = vpop.f32.mrf.mxu0 }
 0x69b   : > { %7400 = vst.msk [vmem:[%s13401_s30 + $0x70] sm:$0xff] %vm2538_vm3, %v7248_v13  ;;  %v7263_v40 = vadd.f32 %v9321_v5, %v13436_v53 }
 0x69c   : > { %v7257_v22 = vpop.f32.mrf.mxu0 }
 0x69d   : > { %7409 = vst.msk [vmem:[%s13401_s30 + $0xb8] sm:$0xff] %vm2538_vm3, %v7263_v40  ;;  %v7258_v43 = vadd.f32 %v7257_v22, %v13430_v34 }
 0x69e   : > { %v9324_v60 = vpop.f32.mrf.mxu0 }
 0x69f   : > { %7406 = vst.msk [vmem:[%s13401_s30 + $0xa0] sm:$0xff] %vm2538_vm3, %v7258_v43  ;;  %v7273_v31 = vadd.f32 %v9324_v60, %v13448_v1 }
 0x6a0   : > { %v7267_v52 = vpop.f32.mrf.mxu0 }
 0x6a1   : > { %7415 = vst.msk [vmem:[%s13401_s30 + $0xe8] sm:$0xff] %vm2538_vm3, %v7273_v31  ;;  %v7268_v59 = vadd.f32 %v7267_v52, %v13442_v48 }
 0x6a2   : > { %v9327_v56 = vpop.f32.mrf.mxu0 }
 0x6a3   : > { %7412 = vst.msk [vmem:[%s13401_s30 + $0xd0] sm:$0xff] %vm2538_vm3, %v7268_v59  ;;  %v7283_v53 = vadd.f32 %v9327_v56, %v13460_v8 }
 0x6a4   : > { %v7277_v7 = vpop.f32.mrf.mxu0 }
 0x6a5   : > { %7421 = vst.msk [vmem:[%s13401_s30 + $0x118] sm:$0xff] %vm2538_vm3, %v7283_v53  ;;  %v7278_v34 = vadd.f32 %v7277_v7, %v13454_v24 }
 0x6a6   : > { %v9330_v47 = vpop.f32.mrf.mxu0 }
 0x6a7   : > { %7418 = vst.msk [vmem:[%s13401_s30 + $0x100] sm:$0xff] %vm2538_vm3, %v7278_v34  ;;  %v7293_v1 = vadd.f32 %v9330_v47, %v13472_v44 }
 0x6a8   : > { %v7287_v6 = vpop.f32.mrf.mxu0 }
 0x6a9   : > { %7427 = vst.msk [vmem:[%s13401_s30 + $0x148] sm:$0xff] %vm2538_vm3, %v7293_v1  ;;  %v7288_v48 = vadd.f32 %v7287_v6, %v13466_v33 }
 0x6aa   : > { %v9333_v0 = vpop.f32.mrf.mxu0 }
 0x6ab   : > { %7424 = vst.msk [vmem:[%s13401_s30 + $0x130] sm:$0xff] %vm2538_vm3, %v7288_v48  ;;  %v7303_v8 = vadd.f32 %v9333_v0, %v13484_v37 }
 0x6ac   : > { %v7297_v51 = vpop.f32.mrf.mxu0 }
 0x6ad   : > { %7433 = vst.msk [vmem:[%s13401_s30 + $0x178] sm:$0xff] %vm2538_vm3, %v7303_v8  ;;  %v7298_v24 = vadd.f32 %v7297_v51, %v13478_v16 }
 0x6ae   : > { %v9336_v58 = vpop.f32.mrf.mxu0 }
 0x6af   : > { %7430 = vst.msk [vmem:[%s13401_s30 + $0x160] sm:$0xff] %vm2538_vm3, %v7298_v24  ;;  %v7313_v44 = vadd.f32 %v9336_v58, %v13496_v3 }
 0x6b0   : > { %v7307_v36 = vpop.f32.mrf.mxu0 }
 0x6b1   : > { %7439 = vst.msk [vmem:[%s13401_s30 + $0x1a8] sm:$0xff] %vm2538_vm3, %v7313_v44  ;;  %v7308_v33 = vadd.f32 %v7307_v36, %v13490_v61 }
 0x6b2   : > { %v9339_v38 = vpop.f32.mrf.mxu0 }
 0x6b3   : > { %7436 = vst.msk [vmem:[%s13401_s30 + $0x190] sm:$0xff] %vm2538_vm3, %v7308_v33  ;;  %v7323_v37 = vadd.f32 %v9339_v38, %v13508_v27 }
 0x6b4   : > { %v7317_v12 = vpop.f32.mrf.mxu0 }
 0x6b5   : > { %7445 = vst.msk [vmem:[%s13401_s30 + $0x1d8] sm:$0xff] %vm2538_vm3, %v7323_v37  ;;  %v7318_v16 = vadd.f32 %v7317_v12, %v13502_v63 }
 0x6b6   : > { %v9342_v26 = vpop.f32.mrf.mxu0 }
 0x6b7   : > { %7442 = vst.msk [vmem:[%s13401_s30 + $0x1c0] sm:$0xff] %vm2538_vm3, %v7318_v16  ;;  %v7333_v3 = vadd.f32 %v9342_v26, %v13520_v21 }
 0x6b8   : > { %v7327_v25 = vpop.f32.mrf.mxu0 }
 0x6b9   : > { %7451 = vst.msk [vmem:[%s13401_s30 + $0x208] sm:$0xff] %vm2538_vm3, %v7333_v3  ;;  %v7328_v61 = vadd.f32 %v7327_v25, %v13514_v45 }
 0x6ba   : > { %v9345_v35 = vpop.f32.mrf.mxu0 }
 0x6bb   : > { %7448 = vst.msk [vmem:[%s13401_s30 + $0x1f0] sm:$0xff] %vm2538_vm3, %v7328_v61  ;;  %v7343_v27 = vadd.f32 %v9345_v35, %v13532_v20 }
 0x6bc   : > { %v7337_v62 = vpop.f32.mrf.mxu0 }
 0x6bd   : > { %7457 = vst.msk [vmem:[%s13401_s30 + $0x238] sm:$0xff] %vm2538_vm3, %v7343_v27  ;;  %v7338_v63 = vadd.f32 %v7337_v62, %v13526_v15 }
 0x6be   : > { %v9348_v11 = vpop.f32.mrf.mxu0 }
 0x6bf   : > { %7454 = vst.msk [vmem:[%s13401_s30 + $0x220] sm:$0xff] %vm2538_vm3, %v7338_v63  ;;  %v7353_v21 = vadd.f32 %v9348_v11, %v13544_v2 }
 0x6c0   : > { %v7347_v29 = vpop.f32.mrf.mxu0 }
 0x6c1   : > { %7463 = vst.msk [vmem:[%s13401_s30 + $0x268] sm:$0xff] %vm2538_vm3, %v7353_v21  ;;  %v7348_v45 = vadd.f32 %v7347_v29, %v13538_v55 }
 0x6c2   : > { %v9351_v14 = vpop.f32.mrf.mxu0 }
 0x6c3   : > { %7460 = vst.msk [vmem:[%s13401_s30 + $0x250] sm:$0xff] %vm2538_vm3, %v7348_v45  ;;  %v7363_v20 = vadd.f32 %v9351_v14, %v13556_v9 }
 0x6c4   : > { %v7357_v15 = vpop.f32.mrf.mxu0 }
 0x6c5   : > { %7469 = vst.msk [vmem:[%s13401_s30 + $0x298] sm:$0xff] %vm2538_vm3, %v7363_v20  ;;  %v7358_v39 = vadd.f32 %v7357_v15, %v13550_v17 }
 0x6c6   : > { %v9354_v32 = vpop.f32.mrf.mxu0 }
 0x6c7   : > { %7466 = vst.msk [vmem:[%s13401_s30 + $0x280] sm:$0xff] %vm2538_vm3, %v7358_v39  ;;  %v7373_v2 = vadd.f32 %v9354_v32, %v13568_v57 }
 0x6c8   : > { %v7367_v42 = vpop.f32.mrf.mxu0 }
 0x6c9   : > { %7475 = vst.msk [vmem:[%s13401_s30 + $0x2c8] sm:$0xff] %vm2538_vm3, %v7373_v2  ;;  %v7368_v55 = vadd.f32 %v7367_v42, %v13562_v41 }
 0x6ca   : > { %v9357_v23 = vpop.f32.mrf.mxu0 }
 0x6cb   : > { %7472 = vst.msk [vmem:[%s13401_s30 + $0x2b0] sm:$0xff] %vm2538_vm3, %v7368_v55  ;;  %v7383_v9 = vadd.f32 %v9357_v23, %v13580_v19 }
 0x6cc   : > { %v7377_v10 = vpop.f32.mrf.mxu0 }
 0x6cd   : > { %7481 = vst.msk [vmem:[%s13401_s30 + $0x2f8] sm:$0xff] %vm2538_vm3, %v7383_v9  ;;  %v7378_v17 = vadd.f32 %v7377_v10, %v13574_v54 }
 0x6cf   : > { %7478 = vst.msk [vmem:[%s13401_s30 + $0x2e0] sm:$0xff] %vm2538_vm3, %v7378_v17 }
 0x6d0 PF: > { %s28_s24 = sadd.s32 1, %s9504_s24  }
 0x6d1   : > { %p25_p4 = scmp.ge.s32.totalorder %s28_s24, 4  }
 0x6d3   :  { %27 = sbr.rel (!%p25_p4) target bundleno = 3 (0x3), region = 142 }

</bundles_post_ra>
